<compile_context>
chip_gen: v5e
topology: v5e:2x2
jax: 0.10.0
libtpu: 0.0.40
codegen_flags: <defaults>
</compile_context>

<pallas_src>
import math

import jax
import jax.numpy as jnp
from jax.experimental import pallas as pl
from jax.experimental.pallas import tpu as pltpu


# ----------------------------- glue: windowing ------------------------------

def window_partition(x, ws):
    """(B, C, H, W) -> (num_windows*B, C, ws, ws), matching the PyTorch helper."""
    B, C, H, W = x.shape
    x = x.reshape(B, C, H // ws, ws, W // ws, ws)
    x = x.transpose(0, 2, 4, 1, 3, 5)
    return x.reshape(-1, C, ws, ws)


def window_reverse(windows, ws, H, W):
    """(num_windows*B, C, ws, ws) -> (B, C, H, W), matching the PyTorch helper."""
    nB = windows.shape[0] // ((H // ws) * (W // ws))
    C = windows.shape[1]
    x = windows.reshape(nB, H // ws, W // ws, C, ws, ws)
    x = x.transpose(0, 3, 1, 4, 2, 5)
    return x.reshape(nB, C, H, W)


# ------------------------------- Pallas kernels -------------------------------

def gts_matmul_kernel(x_ref, op_ref, o_ref):
    """K untiled: one MXU matmul per (i, j) block. No accumulator machinery."""
    o_ref[...] = jnp.dot(x_ref[...], op_ref[...],
                         preferred_element_type=jnp.float32).astype(o_ref.dtype)


def gts_matmul_ktiled_kernel(x_ref, op_ref, o_ref):
    """K tiled: accumulate directly into the resident f32 output block."""
    k = pl.program_id(2)

    @pl.when(k == 0)
    def _():
        o_ref[...] = jnp.zeros_like(o_ref)

    o_ref[...] += jnp.dot(x_ref[...], op_ref[...],
                          preferred_element_type=jnp.float32)


# ------------------------------- tile selection -------------------------------

def _pick_tile(d, align, cap):
    """Largest `align`-aligned divisor of d that is <= cap; full extent if none."""
    cap = min(cap, d)
    start = cap - (cap % align)
    for t in range(start, align - 1, -align):
        if d % t == 0:
            return t
    return d  # full extent is always a legal block shape


def gts_pallas(xs, op, *, out_dtype=jnp.float32, vmem_budget_bytes=12 << 20):
    """xs: (M, K); op: (K, N) -> (M, N) = xs @ op with f32 accumulation."""
    M, K = xs.shape
    K2, N = op.shape
    assert K == K2
    in_b = xs.dtype.itemsize
    op_b = op.dtype.itemsize
    out_b = jnp.dtype(out_dtype).itemsize

    def footprint(tm, tk, tn):
        # Double-buffered inputs + output (Pallas default pipelining).
        return 2 * (tm * tk * in_b + tk * tn * op_b + tm * tn * out_b)

    if footprint(M, K, N) <= vmem_budget_bytes:
        # Everything fits comfortably: single block, single grid step.
        tm, tk, tn = M, K, N
    else:
        # No artificial M//2 split (useless on single-TC v5e/v6e); prefer
        # shrinking tn/tk so each step (and each v7x core) streams less of Op.
        tm = _pick_tile(M, 8, 512)
        tn = _pick_tile(N, 128, 512)
        tk = _pick_tile(K, 128, 1024)
        for cap_n, cap_k in ((512, 512), (256, 512), (256, 256), (128, 256), (128, 128)):
            if footprint(tm, tk, tn) <= vmem_budget_bytes:
                break
            tn = _pick_tile(N, 128, cap_n)
            tk = _pick_tile(K, 128, cap_k)
        assert footprint(tm, tk, tn) <= vmem_budget_bytes, (
            f"tile selection ({tm},{tk},{tn}) exceeds the VMEM budget "
            f"({vmem_budget_bytes} B); this problem size needs a factorized path")

    cost = pl.CostEstimate(flops=2 * M * K * N,
                           transcendentals=0,
                           bytes_accessed=M * K * in_b + K * N * op_b + M * N * out_b)

    if tk == K:
        # No K tiling -> no accumulator, no init/finalize branches, no scratch.
        grid = (M // tm, N // tn)
        return pl.pallas_call(
            gts_matmul_kernel,
            out_shape=jax.ShapeDtypeStruct((M, N), out_dtype),
            grid_spec=pltpu.PrefetchScalarGridSpec(
                num_scalar_prefetch=0,
                grid=grid,
                in_specs=[
                    pl.BlockSpec((tm, K), lambda i, j: (i, 0)),
                    pl.BlockSpec((K, tn), lambda i, j: (0, j)),
                ],
                out_specs=pl.BlockSpec((tm, tn), lambda i, j: (i, j)),
            ),
            compiler_params=pltpu.CompilerParams(
                dimension_semantics=("parallel", "parallel")),
            cost_estimate=cost,
        )(xs, op)

    # K tiled: accumulate into the resident output block (must be f32).
    assert out_dtype == jnp.float32, "K-tiled path accumulates in the f32 output"
    grid = (M // tm, N // tn, K // tk)
    return pl.pallas_call(
        gts_matmul_ktiled_kernel,
        out_shape=jax.ShapeDtypeStruct((M, N), out_dtype),
        grid_spec=pltpu.PrefetchScalarGridSpec(
            num_scalar_prefetch=0,
            grid=grid,
            in_specs=[
                pl.BlockSpec((tm, tk), lambda i, j, k: (i, k)),
                pl.BlockSpec((tk, tn), lambda i, j, k: (k, j)),
            ],
            out_specs=pl.BlockSpec((tm, tn), lambda i, j, k: (i, j)),
        ),
        compiler_params=pltpu.CompilerParams(
            dimension_semantics=("parallel", "parallel", "arbitrary")),
        cost_estimate=cost,
    )(xs, op)


# -------------------------- FeatureProcessingBlock ---------------------------

def precompute_operator(Wm, Hm, Cm, *, compute_dtype=jnp.bfloat16):
    """Collapse the T-term Tucker sum into one operator (once per parameter set).

    Op[c*ws*ws + h*ws + w, C*wso*wso + H*wso + W] = sum_t Cm[t,c,C]*Hm[t,h,H]*Wm[t,w,W]
    """
    T, ws, wso = Wm.shape
    Cin, Cout = Cm.shape[1], Cm.shape[2]
    Op = jnp.einsum('tcC,thH,twW->chwCHW', Cm, Hm, Wm, precision='highest')
    return Op.reshape(Cin * ws * ws, Cout * wso * wso).astype(compute_dtype)


def feature_processing_block(x, Op, *, window_size, out_window_size, out_channels,
                             compute_dtype=jnp.bfloat16):
    """Forward pass of FeatureProcessingBlock given the precomputed operator.

    x : (B, Cin, H, W) float32 (NCHW, same as PyTorch)
    Op: (Cin*ws*ws, Cout*wso*wso) collapsed multilinear operator
    """
    ws, wso = window_size, out_window_size
    b, c, h, w = x.shape
    assert h % ws == 0 and w % ws == 0, (
        "window_partition requires H and W divisible by window_size")
    c_r = wso / ws
    HW, HWo = ws * ws, wso * wso
    Cout = out_channels
    assert Op.shape == (c * HW, Cout * HWo)

    # Windows, flattened lane-dense: xs[n, cc*HW + hh*ws + ww] = win[n, cc, hh, ww].
    win = window_partition(x, ws)                       # (NW, Cin, ws, ws)
    NW = win.shape[0]
    xs = win.reshape(NW, c * HW).astype(compute_dtype)  # (NW, Cin*HW)

    out = gts_pallas(xs, Op.astype(compute_dtype),
                     out_dtype=jnp.float32)             # (NW, Cout*HWo) lane-dense

    out_win = out.reshape(NW, Cout, wso, wso)
    Hn, Wn = math.ceil(h * c_r), math.ceil(w * c_r)
    return window_reverse(out_win, wso, Hn, Wn)         # (B, Cout, Hn, Wn)


# ----------------------------------- main ------------------------------------

if __name__ == "__main__":
    # Small shapes consistent with the module's forward:
    # NW = 2*(32/8)*(32/8) = 32 windows, K = N = Cin*ws*ws = 1024 (lane-dense).
    B, Cin, H, W = 2, 16, 32, 32
    Cout = 16
    ws = wso = 8
    T = 3
    init_temperature = 1.0

    key = jax.random.PRNGKey(0)
    kx, kw, kh, kc = jax.random.split(key, 4)

    x = jax.random.normal(kx, (B, Cin, H, W), dtype=jnp.float32)

    # Deterministic parameter init mirroring TensorMultiplication_einsum.init_tensors:
    #   randn(in, out) / (init_temperature**(1/3) * sqrt(out))
    scale = init_temperature ** (1.0 / 3.0)
    Wm = jax.random.normal(kw, (T, ws, wso), jnp.float32) / (scale * math.sqrt(wso))
    Hm = jax.random.normal(kh, (T, ws, wso), jnp.float32) / (scale * math.sqrt(wso))
    Cm = jax.random.normal(kc, (T, Cin, Cout), jnp.float32) / (scale * math.sqrt(Cout))

    Hn, Wn = math.ceil(H * wso / ws), math.ceil(W * wso / ws)

    # Pure-JAX reference of the exact PyTorch semantics (TensorSum of T einsums).
    win = window_partition(x, ws)
    ref_win = jnp.einsum('nchw,twW,thH,tcC->nCHW', win, Wm, Hm, Cm,
                         precision='highest')
    ref = window_reverse(ref_win, wso, Hn, Wn)

    # f32-operand run: exact-semantics check (tight tolerance).
    Op_f32 = precompute_operator(Wm, Hm, Cm, compute_dtype=jnp.float32)
    out_f32 = feature_processing_block(x, Op_f32, window_size=ws,
                                       out_window_size=wso, out_channels=Cout,
                                       compute_dtype=jnp.float32)
    out_f32 = jax.block_until_ready(out_f32)
    assert out_f32.shape == (B, Cout, Hn, Wn)
    assert jnp.allclose(out_f32, ref, rtol=2e-3, atol=2e-3), \
        f"f32 max abs err {jnp.max(jnp.abs(out_f32 - ref))}"

    # bf16-operand run (perf path on v5e/v6e/v7x), f32 accumulation -> looser tol.
    # Op is precomputed (and cast) once per parameter set, outside the hot path.
    Op_bf16 = precompute_operator(Wm, Hm, Cm, compute_dtype=jnp.bfloat16)
    out_bf16 = feature_processing_block(x, Op_bf16, window_size=ws,
                                        out_window_size=wso, out_channels=Cout,
                                        compute_dtype=jnp.bfloat16)
    out_bf16 = jax.block_until_ready(out_bf16)
    assert out_bf16.shape == (B, Cout, Hn, Wn)
    assert jnp.allclose(out_bf16, ref, rtol=5e-2, atol=5e-2), \
        f"bf16 max abs err {jnp.max(jnp.abs(out_bf16 - ref))}"

    print("KERNEL_OK")
</pallas_src>

<mosaic_0001>
module attributes {stable_mosaic.version = 11 : i64} {
  func.func @gts_matmul_kernel(%arg0: i32, %arg1: i32, %arg2: memref<32x1024xf32, #tpu.memory_space<vmem>>, %arg3: memref<1024x1024xf32, #tpu.memory_space<vmem>>, %arg4: memref<32x1024xf32, #tpu.memory_space<vmem>>) attributes {dimension_semantics = [#tpu.dimension_semantics<parallel>, #tpu.dimension_semantics<parallel>], iteration_bounds = array<i64: 1, 1>, scalar_prefetch = 0 : i64, scratch_operands = 0 : i64, tpu.core_type = #tpu.core_type<tc>, window_params = [{transform_indices = @transform_0, window_bounds = array<i64: 32, 1024>}, {transform_indices = @transform_1, window_bounds = array<i64: 1024, 1024>}, {transform_indices = @transform_2, window_bounds = array<i64: 32, 1024>}]} {
    %c0 = arith.constant 0 : index
    %c0_0 = arith.constant 0 : index
    %0 = vector.load %arg2[%c0, %c0_0] : memref<32x1024xf32, #tpu.memory_space<vmem>>, vector<32x1024xf32>
    %c0_1 = arith.constant 0 : index
    %c0_2 = arith.constant 0 : index
    %1 = vector.load %arg3[%c0_1, %c0_2] : memref<1024x1024xf32, #tpu.memory_space<vmem>>, vector<1024x1024xf32>
    %cst = arith.constant dense<0.000000e+00> : vector<32x1024xf32>
    %2 = tpu.matmul %0, %1, %cst {dimension_numbers = #tpu.dot_dimension_numbers<[1], [0], [0], [1], [0, 0, 1, 1], [], []>} : vector<32x1024xf32>, vector<1024x1024xf32>, vector<32x1024xf32> -> vector<32x1024xf32>
    %c0_3 = arith.constant 0 : index
    %c0_4 = arith.constant 0 : index
    %3 = vector.load %arg4[%c0_3, %c0_4] : memref<32x1024xf32, #tpu.memory_space<vmem>>, vector<32x1024xf32>
    tpu.vector_store %arg4[%c0_3, %c0_4], %2 {strides = array<i32>} : memref<32x1024xf32, #tpu.memory_space<vmem>>, vector<32x1024xf32>,
    return
  }
  func.func @transform_0(%arg0: i32, %arg1: i32) -> (i32, i32) {
    %c0_i32 = arith.constant 0 : i32
    %c0_i32_0 = arith.constant 0 : i32
    return %arg0, %c0_i32 : i32, i32
  }
  func.func @transform_1(%arg0: i32, %arg1: i32) -> (i32, i32) {
    %c0_i32 = arith.constant 0 : i32
    %c0_i32_0 = arith.constant 0 : i32
    return %c0_i32, %arg1 : i32, i32
  }
  func.func @transform_2(%arg0: i32, %arg1: i32) -> (i32, i32) {
    %c0_i32 = arith.constant 0 : i32
    return %arg0, %arg1 : i32, i32
  }
}

</mosaic_0001>

<bundles_post_ra>
// kernel: tpu_custom_call.1
= control target key start
LH: loop header
LB: loop body
LE: loop exit
PB: predicated region body
PF: predicated region fallthrough
CT: control target
= control target key end

     0   :  { %7 = vsyncpa [#allocation3], 0  ;;  %s4025_s0 = inlined_call_operand.hbm [shape: f32[32,1024], index: 0, kind: input, shape index: {}]   ;;  %s4026_s1 = inlined_call_operand.hbm [shape: f32[1024,1024], index: 1, kind: input, shape index: {}]   ;;  %s4027_s2 = inlined_call_operand.hbm [shape: f32[32,1024], index: 2, kind: output, shape index: {}]  }
   0x1   :  { %8 = vsyncpa [#allocation6], 0 }
   0x2   :  { %9 = vsyncpa [#allocation4], 0  ;;  %s14_s11 = sshll.u32 %s4025_s0, 4  ;;  %s3187_s12 = smov [#allocation2]   ;;  %s15_s11 = int_to_ptr.hbm [resolvable:$true] %s14_s11 }
   0x3   :  { %s16_s13 = sshll.u32 %s3187_s12, 4  ;;  %s27_s16 = sshll.u32 %s4026_s1, 4  ;;  %s17_s13 = int_to_ptr.vmem [resolvable:$true] %s16_s13  ;;  %s28_s16 = int_to_ptr.hbm [resolvable:$true] %s27_s16 }
   0x4   :  { %s3188_s17 = smov 1024   ;;  %s3189_s18 = smov 64  }
   0x5   :  { %22 = dma.hbm_to_vmem [thread:$0]  %s15_s11, 4096, %s17_s13, [#allocation3], %s3188_s17, %s3188_s17, %s3189_s18  }
   0x6   :  { %s3190_s19 = smov [#allocation5]  }
   0x7   :  { %s29_s20 = sshll.u32 %s3190_s19, 4  ;;  %s30_s20 = int_to_ptr.vmem [resolvable:$true] %s29_s20 }
   0x8   :  { %35 = dma.hbm_to_vmem [thread:$0]  %s28_s16, 131072, %s30_s20, [#allocation6], %s3188_s17, %s3188_s17, %s3189_s18  }
   0x9   :  { %3181 = dma.done.wait [#allocation3], 4096  }
   0xa   :  { %3182 = vsyncadd [#allocation3], 4294963200 }
   0xb   :  { %3183 = dma.done.wait [#allocation6], 131072  }
   0xc   :  { %3184 = vsyncadd [#allocation6], 4294836224  ;;  %v196_v0 = vld [vmem:[#allocation5 + $0x3c0] sm:$0xff]  ;;  %v3221_v63 = vld [vmem:[#allocation2 + $0x10] sm:$0xff]  ;;  %s3191_s0 = smov [#allocation7]   ;;  %s2994_s23 = sshll.u32 %s4027_s2, 4  ;;  %s2995_s23 = int_to_ptr.hbm [resolvable:$true] %s2994_s23 }
   0xd   :  { %v452_v1 = vld [vmem:[#allocation5 + $0xbc0] sm:$0xff]  ;;  %1100 = vmatpush.msra.mxu0 %v196_v0  ;;  %s2992_s1 = sshll.u32 %s3191_s0, 4  ;;  %s2993_s1 = int_to_ptr.vmem [resolvable:$true] %s2992_s1 }
   0xe   :  { %v188_v2 = vld [vmem:[#allocation5 + $0x380] sm:$0xff]  ;;  %1158 = vmatpush.msra.mxu2 %v452_v1 }
   0xf   :  { %v324_v3 = vld [vmem:[#allocation5 + $0x7c0] sm:$0xff]  ;;  %1101 = vmatpush.msra.mxu0 %v188_v2 }
  0x10   :  { %v444_v4 = vld [vmem:[#allocation5 + $0xb80] sm:$0xff]  ;;  %1129 = vmatpush.msra.mxu1 %v324_v3 }
  0x11   :  { %v580_v5 = vld [vmem:[#allocation5 + $0xfc0] sm:$0xff]  ;;  %1159 = vmatpush.msra.mxu2 %v444_v4  ;;  %v3225_v4 = vld [vmem:[#allocation2 + $0x8] sm:$0xff] }
  0x12   :  { %1187 = vmatpush.msra.mxu3 %v580_v5  ;;  %v180_v6 = vld [vmem:[#allocation5 + $0x340] sm:$0xff]  ;;  %v3227_v5 = vld [vmem:[#allocation2 + $0x18] sm:$0xff] }
  0x13   :  { %v316_v7 = vld [vmem:[#allocation5 + $0x780] sm:$0xff]  ;;  %1102 = vmatpush.msra.mxu0 %v180_v6 }
  0x14   :  { %v436_v8 = vld [vmem:[#allocation5 + $0xb40] sm:$0xff]  ;;  %1130 = vmatpush.msra.mxu1 %v316_v7 }
  0x15   :  { %v572_v9 = vld [vmem:[#allocation5 + $0xf80] sm:$0xff]  ;;  %1160 = vmatpush.msra.mxu2 %v436_v8 }
  0x16   :  { %v308_v10 = vld [vmem:[#allocation5 + $0x740] sm:$0xff]  ;;  %1188 = vmatpush.msra.mxu3 %v572_v9 }
  0x17   :  { %v172_v11 = vld [vmem:[#allocation5 + $0x300] sm:$0xff]  ;;  %1131 = vmatpush.msra.mxu1 %v308_v10 }
  0x18   :  { %v428_v12 = vld [vmem:[#allocation5 + $0xb00] sm:$0xff]  ;;  %1103 = vmatpush.msra.mxu0 %v172_v11 }
  0x19   :  { %v564_v13 = vld [vmem:[#allocation5 + $0xf40] sm:$0xff]  ;;  %1161 = vmatpush.msra.mxu2 %v428_v12 }
  0x1a   :  { %v300_v14 = vld [vmem:[#allocation5 + $0x700] sm:$0xff]  ;;  %1189 = vmatpush.msra.mxu3 %v564_v13 }
  0x1b   :  { %v556_v15 = vld [vmem:[#allocation5 + $0xf00] sm:$0xff]  ;;  %1132 = vmatpush.msra.mxu1 %v300_v14 }
  0x1c   :  { %v164_v16 = vld [vmem:[#allocation5 + $0x2c0] sm:$0xff]  ;;  %1190 = vmatpush.msra.mxu3 %v556_v15 }
  0x1d   :  { %v420_v17 = vld [vmem:[#allocation5 + $0xac0] sm:$0xff]  ;;  %1104 = vmatpush.msra.mxu0 %v164_v16 }
  0x1e   :  { %v292_v18 = vld [vmem:[#allocation5 + $0x6c0] sm:$0xff]  ;;  %1162 = vmatpush.msra.mxu2 %v420_v17 }
  0x1f   :  { %v548_v19 = vld [vmem:[#allocation5 + $0xec0] sm:$0xff]  ;;  %1133 = vmatpush.msra.mxu1 %v292_v18 }
  0x20   :  { %v156_v20 = vld [vmem:[#allocation5 + $0x280] sm:$0xff]  ;;  %1191 = vmatpush.msra.mxu3 %v548_v19  ;;  %v3233_v19 = vld [vmem:[#allocation2 + $0x50] sm:$0xff] }
  0x21   :  { %v412_v21 = vld [vmem:[#allocation5 + $0xa80] sm:$0xff]  ;;  %1105 = vmatpush.msra.mxu0 %v156_v20 }
  0x22   :  { %v284_v22 = vld [vmem:[#allocation5 + $0x680] sm:$0xff]  ;;  %1163 = vmatpush.msra.mxu2 %v412_v21 }
  0x23   :  { %v540_v23 = vld [vmem:[#allocation5 + $0xe80] sm:$0xff]  ;;  %1134 = vmatpush.msra.mxu1 %v284_v22 }
  0x24   :  { %v148_v24 = vld [vmem:[#allocation5 + $0x240] sm:$0xff]  ;;  %1192 = vmatpush.msra.mxu3 %v540_v23 }
  0x25   :  { %v404_v25 = vld [vmem:[#allocation5 + $0xa40] sm:$0xff]  ;;  %1106 = vmatpush.msra.mxu0 %v148_v24  ;;  %v3237_v24 = vld [vmem:[#allocation2 + $0x48] sm:$0xff] }
  0x26   :  { %v276_v26 = vld [vmem:[#allocation5 + $0x640] sm:$0xff]  ;;  %1164 = vmatpush.msra.mxu2 %v404_v25  ;;  %v3239_v25 = vld [vmem:[#allocation2 + $0x58] sm:$0xff] }
  0x27   :  { %v532_v27 = vld [vmem:[#allocation5 + $0xe40] sm:$0xff]  ;;  %1135 = vmatpush.msra.mxu1 %v276_v26 }
  0x28   :  { %v140_v28 = vld [vmem:[#allocation5 + $0x200] sm:$0xff]  ;;  %1193 = vmatpush.msra.mxu3 %v532_v27 }
  0x29   :  { %v396_v29 = vld [vmem:[#allocation5 + $0xa00] sm:$0xff]  ;;  %1107 = vmatpush.msra.mxu0 %v140_v28 }
  0x2a   :  { %v268_v30 = vld [vmem:[#allocation5 + $0x600] sm:$0xff]  ;;  %1165 = vmatpush.msra.mxu2 %v396_v29 }
  0x2b   :  { %v524_v31 = vld [vmem:[#allocation5 + $0xe00] sm:$0xff]  ;;  %1136 = vmatpush.msra.mxu1 %v268_v30 }
  0x2c   :  { %v132_v32 = vld [vmem:[#allocation5 + $0x1c0] sm:$0xff]  ;;  %1194 = vmatpush.msra.mxu3 %v524_v31 }
  0x2d   :  { %v388_v33 = vld [vmem:[#allocation5 + $0x9c0] sm:$0xff]  ;;  %1108 = vmatpush.msra.mxu0 %v132_v32 }
  0x2e   :  { %v260_v34 = vld [vmem:[#allocation5 + $0x5c0] sm:$0xff]  ;;  %1166 = vmatpush.msra.mxu2 %v388_v33 }
  0x2f   :  { %v516_v35 = vld [vmem:[#allocation5 + $0xdc0] sm:$0xff]  ;;  %1137 = vmatpush.msra.mxu1 %v260_v34 }
  0x30   :  { %v124_v36 = vld [vmem:[#allocation5 + $0x180] sm:$0xff]  ;;  %1195 = vmatpush.msra.mxu3 %v516_v35 }
  0x31   :  { %v380_v37 = vld [vmem:[#allocation5 + $0x980] sm:$0xff]  ;;  %1109 = vmatpush.msra.mxu0 %v124_v36 }
  0x32   :  { %v252_v38 = vld [vmem:[#allocation5 + $0x580] sm:$0xff]  ;;  %1167 = vmatpush.msra.mxu2 %v380_v37 }
  0x33   :  { %v508_v39 = vld [vmem:[#allocation5 + $0xd80] sm:$0xff]  ;;  %1138 = vmatpush.msra.mxu1 %v252_v38 }
  0x34   :  { %v116_v40 = vld [vmem:[#allocation5 + $0x140] sm:$0xff]  ;;  %1196 = vmatpush.msra.mxu3 %v508_v39  ;;  %v3245_v39 = vld [vmem:[#allocation2 + $0x90] sm:$0xff] }
  0x35   :  { %v372_v41 = vld [vmem:[#allocation5 + $0x940] sm:$0xff]  ;;  %1110 = vmatpush.msra.mxu0 %v116_v40 }
  0x36   :  { %v244_v42 = vld [vmem:[#allocation5 + $0x540] sm:$0xff]  ;;  %1168 = vmatpush.msra.mxu2 %v372_v41 }
  0x37   :  { %v500_v43 = vld [vmem:[#allocation5 + $0xd40] sm:$0xff]  ;;  %1139 = vmatpush.msra.mxu1 %v244_v42 }
  0x38   :  { %v108_v44 = vld [vmem:[#allocation5 + $0x100] sm:$0xff]  ;;  %1197 = vmatpush.msra.mxu3 %v500_v43 }
  0x39   :  { %v364_v45 = vld [vmem:[#allocation5 + $0x900] sm:$0xff]  ;;  %1111 = vmatpush.msra.mxu0 %v108_v44  ;;  %v3249_v44 = vld [vmem:[#allocation2 + $0x88] sm:$0xff] }
  0x3a   :  { %v236_v46 = vld [vmem:[#allocation5 + $0x500] sm:$0xff]  ;;  %1169 = vmatpush.msra.mxu2 %v364_v45  ;;  %v3251_v45 = vld [vmem:[#allocation2 + $0x98] sm:$0xff] }
  0x3b   :  { %v492_v47 = vld [vmem:[#allocation5 + $0xd00] sm:$0xff]  ;;  %1140 = vmatpush.msra.mxu1 %v236_v46 }
  0x3c   :  { %v100_v48 = vld [vmem:[#allocation5 + $0xc0] sm:$0xff]  ;;  %1198 = vmatpush.msra.mxu3 %v492_v47 }
  0x3d   :  { %v356_v49 = vld [vmem:[#allocation5 + $0x8c0] sm:$0xff]  ;;  %1112 = vmatpush.msra.mxu0 %v100_v48 }
  0x3e   :  { %v228_v50 = vld [vmem:[#allocation5 + $0x4c0] sm:$0xff]  ;;  %1170 = vmatpush.msra.mxu2 %v356_v49 }
  0x3f   :  { %v484_v51 = vld [vmem:[#allocation5 + $0xcc0] sm:$0xff]  ;;  %1141 = vmatpush.msra.mxu1 %v228_v50 }
  0x40   :  { %v92_v52 = vld [vmem:[#allocation5 + $0x80] sm:$0xff]  ;;  %1199 = vmatpush.msra.mxu3 %v484_v51 }
  0x41   :  { %v348_v53 = vld [vmem:[#allocation5 + $0x880] sm:$0xff]  ;;  %1113 = vmatpush.msra.mxu0 %v92_v52 }
  0x42   :  { %v220_v54 = vld [vmem:[#allocation5 + $0x480] sm:$0xff]  ;;  %1171 = vmatpush.msra.mxu2 %v348_v53 }
  0x43   :  { %v476_v55 = vld [vmem:[#allocation5 + $0xc80] sm:$0xff]  ;;  %1142 = vmatpush.msra.mxu1 %v220_v54 }
  0x44   :  { %v84_v56 = vld [vmem:[#allocation5 + $0x40] sm:$0xff]  ;;  %1200 = vmatpush.msra.mxu3 %v476_v55 }
  0x45   :  { %v340_v57 = vld [vmem:[#allocation5 + $0x840] sm:$0xff]  ;;  %1114 = vmatpush.msra.mxu0 %v84_v56 }
  0x46   :  { %v212_v58 = vld [vmem:[#allocation5 + $0x440] sm:$0xff]  ;;  %1172 = vmatpush.msra.mxu2 %v340_v57 }
  0x47   :  { %v468_v59 = vld [vmem:[#allocation5 + $0xc40] sm:$0xff]  ;;  %1143 = vmatpush.msra.mxu1 %v212_v58 }
  0x48   :  { %v76_v60 = vld [vmem:[#allocation5] sm:$0xff]  ;;  %1201 = vmatpush.msra.mxu3 %v468_v59  ;;  %v3257_v59 = vld [vmem:[#allocation2 + $0xd0] sm:$0xff] }
  0x49   :  { %v332_v61 = vld [vmem:[#allocation5 + $0x800] sm:$0xff]  ;;  %1115 = vmatpush.msra.mxu0 %v76_v60 }
  0x4a   :  { %v3219_v62 = vld [vmem:[#allocation2] sm:$0xff]  ;;  %1173 = vmatpush.msra.mxu2 %v332_v61 }
  0x4b   :  { %v964_v0 = vld [vmem:[#allocation5 + $0x1bc0] sm:$0xff]  ;;  %1116 = vmatmul.f32.vlgmr.msra.gmra.mxu0 %v3219_v62  ;;  %1174 = vmatmul.f32.vlgmr.msra.gmra.mxu2 %v3221_v63 }
  0x4c   :  { %v204_v1 = vld [vmem:[#allocation5 + $0x400] sm:$0xff]  ;;  %1274 = vmatpush.msrb.mxu2 %v964_v0 }
  0x4d   :  { %v460_v2 = vld [vmem:[#allocation5 + $0xc00] sm:$0xff]  ;;  %1144 = vmatpush.msra.mxu1 %v204_v1 }
  0x4e   :  { %v708_v3 = vld [vmem:[#allocation5 + $0x13c0] sm:$0xff]  ;;  %1202 = vmatpush.msra.mxu3 %v460_v2  ;;  %1145 = vmatmul.f32.vlgmr.msra.gmra.mxu1 %v3225_v4  ;;  %v3261_v2 = vld [vmem:[#allocation2 + $0xc8] sm:$0xff] }
  0x4f   :  { %v956_v6 = vld [vmem:[#allocation5 + $0x1b80] sm:$0xff]  ;;  %1216 = vmatpush.msrb.mxu0 %v708_v3  ;;  %1203 = vmatmul.f32.vlgmr.msra.gmra.mxu3 %v3227_v5  ;;  %v3263_v3 = vld [vmem:[#allocation2 + $0xd8] sm:$0xff] }
  0x50   :  { %v1092_v7 = vld [vmem:[#allocation5 + $0x1fc0] sm:$0xff]  ;;  %1275 = vmatpush.msrb.mxu2 %v956_v6 }
  0x51   :  { %v700_v8 = vld [vmem:[#allocation5 + $0x1380] sm:$0xff]  ;;  %1303 = vmatpush.msrb.mxu3 %v1092_v7 }
  0x52   :  { %v836_v9 = vld [vmem:[#allocation5 + $0x17c0] sm:$0xff]  ;;  %1217 = vmatpush.msrb.mxu0 %v700_v8 }
  0x53   :  { %v948_v10 = vld [vmem:[#allocation5 + $0x1b40] sm:$0xff]  ;;  %1245 = vmatpush.msrb.mxu1 %v836_v9  ;;  %1177 = vmatmul.f32.gmra.mxu2 %v3233_v19 }
  0x54   :  { %v1084_v11 = vld [vmem:[#allocation5 + $0x1f80] sm:$0xff]  ;;  %1276 = vmatpush.msrb.mxu2 %v948_v10 }
  0x55   :  { %v692_v12 = vld [vmem:[#allocation5 + $0x1340] sm:$0xff]  ;;  %1304 = vmatpush.msrb.mxu3 %v1084_v11 }
  0x56   :  { %v828_v13 = vld [vmem:[#allocation5 + $0x1780] sm:$0xff]  ;;  %1218 = vmatpush.msrb.mxu0 %v692_v12  ;;  %1148 = vmatmul.f32.gmra.mxu1 %v3237_v24 }
  0x57   :  { %v940_v14 = vld [vmem:[#allocation5 + $0x1b00] sm:$0xff]  ;;  %1246 = vmatpush.msrb.mxu1 %v828_v13  ;;  %1206 = vmatmul.f32.gmra.mxu3 %v3239_v25 }
  0x58   :  { %v1076_v15 = vld [vmem:[#allocation5 + $0x1f40] sm:$0xff]  ;;  %1277 = vmatpush.msrb.mxu2 %v940_v14 }
  0x59   :  { %v684_v16 = vld [vmem:[#allocation5 + $0x1300] sm:$0xff]  ;;  %1305 = vmatpush.msrb.mxu3 %v1076_v15 }
  0x5a   :  { %v820_v17 = vld [vmem:[#allocation5 + $0x1740] sm:$0xff]  ;;  %1219 = vmatpush.msrb.mxu0 %v684_v16 }
  0x5b   :  { %v3231_v18 = vld [vmem:[#allocation2 + $0x40] sm:$0xff]  ;;  %1247 = vmatpush.msrb.mxu1 %v820_v17  ;;  %1180 = vmatmul.f32.gmra.mxu2 %v3245_v39 }
  0x5c   :  { %v932_v20 = vld [vmem:[#allocation5 + $0x1ac0] sm:$0xff]  ;;  %1119 = vmatmul.f32.gmra.mxu0 %v3231_v18 }
  0x5d   :  { %v1068_v21 = vld [vmem:[#allocation5 + $0x1f00] sm:$0xff]  ;;  %1278 = vmatpush.msrb.mxu2 %v932_v20 }
  0x5e   :  { %v676_v22 = vld [vmem:[#allocation5 + $0x12c0] sm:$0xff]  ;;  %1306 = vmatpush.msrb.mxu3 %v1068_v21  ;;  %1151 = vmatmul.f32.gmra.mxu1 %v3249_v44  ;;  %v3269_v21 = vld [vmem:[#allocation2 + $0x30] sm:$0xff] }
  0x5f   :  { %v812_v23 = vld [vmem:[#allocation5 + $0x1700] sm:$0xff]  ;;  %1220 = vmatpush.msrb.mxu0 %v676_v22  ;;  %1209 = vmatmul.f32.gmra.mxu3 %v3251_v45 }
  0x60   :  { %v924_v26 = vld [vmem:[#allocation5 + $0x1a80] sm:$0xff]  ;;  %1248 = vmatpush.msrb.mxu1 %v812_v23  ;;  %v453_v23 = vld [vmem:[#allocation5 + $0xbc8] sm:$0xff] }
  0x61   :  { %v1060_v27 = vld [vmem:[#allocation5 + $0x1ec0] sm:$0xff]  ;;  %1279 = vmatpush.msrb.mxu2 %v924_v26 }
  0x62   :  { %v668_v28 = vld [vmem:[#allocation5 + $0x1280] sm:$0xff]  ;;  %1307 = vmatpush.msrb.mxu3 %v1060_v27  ;;  %v197_v27 = vld [vmem:[#allocation5 + $0x3c8] sm:$0xff] }
  0x63   :  { %v804_v29 = vld [vmem:[#allocation5 + $0x16c0] sm:$0xff]  ;;  %1221 = vmatpush.msrb.mxu0 %v668_v28  ;;  %1183 = vmatmul.f32.gmra.mxu2 %v3257_v59  ;;  %v3273_v28 = vld [vmem:[#allocation2 + $0x28] sm:$0xff] }
  0x64   :  { %v916_v30 = vld [vmem:[#allocation5 + $0x1a40] sm:$0xff]  ;;  %1249 = vmatpush.msrb.mxu1 %v804_v29  ;;  %v3275_v29 = vld [vmem:[#allocation2 + $0x38] sm:$0xff] }
  0x65   :  { %v1052_v31 = vld [vmem:[#allocation5 + $0x1e80] sm:$0xff]  ;;  %1280 = vmatpush.msrb.mxu2 %v916_v30  ;;  %v445_v30 = vld [vmem:[#allocation5 + $0xb88] sm:$0xff] }
  0x66   :  { %v660_v32 = vld [vmem:[#allocation5 + $0x1240] sm:$0xff]  ;;  %1308 = vmatpush.msrb.mxu3 %v1052_v31  ;;  %1154 = vmatmul.f32.gmra.mxu1 %v3261_v2  ;;  %v581_v31 = vld [vmem:[#allocation5 + $0xfc8] sm:$0xff] }
  0x67   :  { %v796_v33 = vld [vmem:[#allocation5 + $0x1680] sm:$0xff]  ;;  %1222 = vmatpush.msrb.mxu0 %v660_v32  ;;  %1212 = vmatmul.f32.gmra.mxu3 %v3263_v3  ;;  %v189_v32 = vld [vmem:[#allocation5 + $0x388] sm:$0xff] }
  0x68   :  { %v908_v34 = vld [vmem:[#allocation5 + $0x1a00] sm:$0xff]  ;;  %1250 = vmatpush.msrb.mxu1 %v796_v33  ;;  %v325_v33 = vld [vmem:[#allocation5 + $0x7c8] sm:$0xff] }
  0x69   :  { %v1044_v35 = vld [vmem:[#allocation5 + $0x1e40] sm:$0xff]  ;;  %1281 = vmatpush.msrb.mxu2 %v908_v34  ;;  %v437_v34 = vld [vmem:[#allocation5 + $0xb48] sm:$0xff] }
  0x6a   :  { %v652_v36 = vld [vmem:[#allocation5 + $0x1200] sm:$0xff]  ;;  %1309 = vmatpush.msrb.mxu3 %v1044_v35  ;;  %v573_v35 = vld [vmem:[#allocation5 + $0xf88] sm:$0xff] }
  0x6b   :  { %v788_v37 = vld [vmem:[#allocation5 + $0x1640] sm:$0xff]  ;;  %1223 = vmatpush.msrb.mxu0 %v652_v36  ;;  %v181_v36 = vld [vmem:[#allocation5 + $0x348] sm:$0xff] }
  0x6c   :  { %v3243_v38 = vld [vmem:[#allocation2 + $0x80] sm:$0xff]  ;;  %1251 = vmatpush.msrb.mxu1 %v788_v37  ;;  %v317_v37 = vld [vmem:[#allocation5 + $0x788] sm:$0xff] }
  0x6d   :  { %v900_v40 = vld [vmem:[#allocation5 + $0x19c0] sm:$0xff]  ;;  %1122 = vmatmul.f32.gmra.mxu0 %v3243_v38 }
  0x6e   :  { %v1036_v41 = vld [vmem:[#allocation5 + $0x1e00] sm:$0xff]  ;;  %1282 = vmatpush.msrb.mxu2 %v900_v40  ;;  %v429_v40 = vld [vmem:[#allocation5 + $0xb08] sm:$0xff] }
  0x6f   :  { %v644_v42 = vld [vmem:[#allocation5 + $0x11c0] sm:$0xff]  ;;  %1310 = vmatpush.msrb.mxu3 %v1036_v41  ;;  %v565_v41 = vld [vmem:[#allocation5 + $0xf48] sm:$0xff] }
  0x70   :  { %v780_v43 = vld [vmem:[#allocation5 + $0x1600] sm:$0xff]  ;;  %1224 = vmatpush.msrb.mxu0 %v644_v42  ;;  %v173_v42 = vld [vmem:[#allocation5 + $0x308] sm:$0xff] }
  0x71   :  { %v892_v46 = vld [vmem:[#allocation5 + $0x1980] sm:$0xff]  ;;  %1252 = vmatpush.msrb.mxu1 %v780_v43  ;;  %v309_v43 = vld [vmem:[#allocation5 + $0x748] sm:$0xff] }
  0x72   :  { %v1028_v47 = vld [vmem:[#allocation5 + $0x1dc0] sm:$0xff]  ;;  %1283 = vmatpush.msrb.mxu2 %v892_v46 }
  0x73   :  { %v636_v48 = vld [vmem:[#allocation5 + $0x1180] sm:$0xff]  ;;  %1311 = vmatpush.msrb.mxu3 %v1028_v47  ;;  %v3281_v47 = vld [vmem:[#allocation2 + $0x70] sm:$0xff] }
  0x74   :  { %v772_v49 = vld [vmem:[#allocation5 + $0x15c0] sm:$0xff]  ;;  %1225 = vmatpush.msrb.mxu0 %v636_v48  ;;  %v421_v48 = vld [vmem:[#allocation5 + $0xac8] sm:$0xff] }
  0x75   :  { %v884_v50 = vld [vmem:[#allocation5 + $0x1940] sm:$0xff]  ;;  %1253 = vmatpush.msrb.mxu1 %v772_v49  ;;  %v557_v49 = vld [vmem:[#allocation5 + $0xf08] sm:$0xff] }
  0x76   :  { %v1020_v51 = vld [vmem:[#allocation5 + $0x1d80] sm:$0xff]  ;;  %1284 = vmatpush.msrb.mxu2 %v884_v50  ;;  %v165_v50 = vld [vmem:[#allocation5 + $0x2c8] sm:$0xff] }
  0x77   :  { %v628_v52 = vld [vmem:[#allocation5 + $0x1140] sm:$0xff]  ;;  %1312 = vmatpush.msrb.mxu3 %v1020_v51  ;;  %v301_v51 = vld [vmem:[#allocation5 + $0x708] sm:$0xff] }
  0x78   :  { %v764_v53 = vld [vmem:[#allocation5 + $0x1580] sm:$0xff]  ;;  %1226 = vmatpush.msrb.mxu0 %v628_v52  ;;  %v3285_v52 = vld [vmem:[#allocation2 + $0x68] sm:$0xff] }
  0x79   :  { %v876_v54 = vld [vmem:[#allocation5 + $0x1900] sm:$0xff]  ;;  %1254 = vmatpush.msrb.mxu1 %v764_v53  ;;  %v3287_v53 = vld [vmem:[#allocation2 + $0x78] sm:$0xff] }
  0x7a   :  { %v1012_v55 = vld [vmem:[#allocation5 + $0x1d40] sm:$0xff]  ;;  %1285 = vmatpush.msrb.mxu2 %v876_v54  ;;  %v413_v54 = vld [vmem:[#allocation5 + $0xa88] sm:$0xff] }
  0x7b   :  { %v620_v56 = vld [vmem:[#allocation5 + $0x1100] sm:$0xff]  ;;  %1313 = vmatpush.msrb.mxu3 %v1012_v55  ;;  %v549_v55 = vld [vmem:[#allocation5 + $0xec8] sm:$0xff] }
  0x7c   :  { %v756_v57 = vld [vmem:[#allocation5 + $0x1540] sm:$0xff]  ;;  %1227 = vmatpush.msrb.mxu0 %v620_v56  ;;  %v157_v56 = vld [vmem:[#allocation5 + $0x288] sm:$0xff] }
  0x7d   :  { %v3255_v58 = vld [vmem:[#allocation2 + $0xc0] sm:$0xff]  ;;  %1255 = vmatpush.msrb.mxu1 %v756_v57  ;;  %v293_v57 = vld [vmem:[#allocation5 + $0x6c8] sm:$0xff] }
  0x7e   :  { %v868_v60 = vld [vmem:[#allocation5 + $0x18c0] sm:$0xff]  ;;  %1125 = vmatmul.f32.gmra.mxu0 %v3255_v58 }
  0x7f   :  { %v1004_v61 = vld [vmem:[#allocation5 + $0x1d00] sm:$0xff]  ;;  %1286 = vmatpush.msrb.mxu2 %v868_v60  ;;  %v405_v60 = vld [vmem:[#allocation5 + $0xa48] sm:$0xff] }
  0x80   :  { %v612_v0 = vld [vmem:[#allocation5 + $0x10c0] sm:$0xff]  ;;  %1314 = vmatpush.msrb.mxu3 %v1004_v61  ;;  %v541_v61 = vld [vmem:[#allocation5 + $0xe88] sm:$0xff] }
  0x81   :  { %v748_v1 = vld [vmem:[#allocation5 + $0x1500] sm:$0xff]  ;;  %1228 = vmatpush.msrb.mxu0 %v612_v0  ;;  %v149_v0 = vld [vmem:[#allocation5 + $0x248] sm:$0xff] }
  0x82   :  { %v860_v6 = vld [vmem:[#allocation5 + $0x1880] sm:$0xff]  ;;  %1256 = vmatpush.msrb.mxu1 %v748_v1  ;;  %v285_v1 = vld [vmem:[#allocation5 + $0x688] sm:$0xff] }
  0x83   :  { %v996_v7 = vld [vmem:[#allocation5 + $0x1cc0] sm:$0xff]  ;;  %1287 = vmatpush.msrb.mxu2 %v860_v6  ;;  %v397_v6 = vld [vmem:[#allocation5 + $0xa08] sm:$0xff] }
  0x84   :  { %v604_v8 = vld [vmem:[#allocation5 + $0x1080] sm:$0xff]  ;;  %1315 = vmatpush.msrb.mxu3 %v996_v7  ;;  %v533_v7 = vld [vmem:[#allocation5 + $0xe48] sm:$0xff] }
  0x85   :  { %v740_v9 = vld [vmem:[#allocation5 + $0x14c0] sm:$0xff]  ;;  %1229 = vmatpush.msrb.mxu0 %v604_v8  ;;  %v141_v8 = vld [vmem:[#allocation5 + $0x208] sm:$0xff] }
  0x86   :  { %v852_v10 = vld [vmem:[#allocation5 + $0x1840] sm:$0xff]  ;;  %1257 = vmatpush.msrb.mxu1 %v740_v9  ;;  %v277_v9 = vld [vmem:[#allocation5 + $0x648] sm:$0xff] }
  0x87   :  { %v988_v11 = vld [vmem:[#allocation5 + $0x1c80] sm:$0xff]  ;;  %1288 = vmatpush.msrb.mxu2 %v852_v10 }
  0x88   :  { %v596_v12 = vld [vmem:[#allocation5 + $0x1040] sm:$0xff]  ;;  %1316 = vmatpush.msrb.mxu3 %v988_v11  ;;  %v3293_v11 = vld [vmem:[#allocation2 + $0xb0] sm:$0xff] }
  0x89   :  { %v732_v13 = vld [vmem:[#allocation5 + $0x1480] sm:$0xff]  ;;  %1230 = vmatpush.msrb.mxu0 %v596_v12  ;;  %v389_v12 = vld [vmem:[#allocation5 + $0x9c8] sm:$0xff] }
  0x8a   :  { %v844_v14 = vld [vmem:[#allocation5 + $0x1800] sm:$0xff]  ;;  %1258 = vmatpush.msrb.mxu1 %v732_v13  ;;  %v525_v13 = vld [vmem:[#allocation5 + $0xe08] sm:$0xff] }
  0x8b   :  { %v980_v15 = vld [vmem:[#allocation5 + $0x1c40] sm:$0xff]  ;;  %1289 = vmatpush.msrb.mxu2 %v844_v14  ;;  %v133_v14 = vld [vmem:[#allocation5 + $0x1c8] sm:$0xff] }
  0x8c   :  { %v588_v16 = vld [vmem:[#allocation5 + $0x1000] sm:$0xff]  ;;  %1317 = vmatpush.msrb.mxu3 %v980_v15  ;;  %1290 = vmatmul.f32.vlgmr.msrb.gmra.mxu2 %v3269_v21  ;;  %v269_v15 = vld [vmem:[#allocation5 + $0x608] sm:$0xff] }
  0x8d   :  { %v724_v17 = vld [vmem:[#allocation5 + $0x1440] sm:$0xff]  ;;  %1231 = vmatpush.msrb.mxu0 %v588_v16  ;;  %1390 = vmatpush.msra.mxu2 %v453_v23  ;;  %v3297_v16 = vld [vmem:[#allocation2 + $0xa8] sm:$0xff] }
  0x8e   :  { %v3267_v20 = vld [vmem:[#allocation2 + $0x20] sm:$0xff]  ;;  %1259 = vmatpush.msrb.mxu1 %v724_v17  ;;  %v3299_v17 = vld [vmem:[#allocation2 + $0xb8] sm:$0xff]  ;;  %v517_v23 = vld [vmem:[#allocation5 + $0xdc8] sm:$0xff] }
  0x8f   :  { %v972_v22 = vld [vmem:[#allocation5 + $0x1c00] sm:$0xff]  ;;  %1232 = vmatmul.f32.vlgmr.msrb.gmra.mxu0 %v3267_v20  ;;  %1391 = vmatpush.msra.mxu2 %v445_v30  ;;  %v373_v30 = vld [vmem:[#allocation5 + $0x948] sm:$0xff] }
  0x90   :  { %v716_v26 = vld [vmem:[#allocation5 + $0x1400] sm:$0xff]  ;;  %1318 = vmatpush.msrb.mxu3 %v972_v22  ;;  %1332 = vmatpush.msra.mxu0 %v197_v27  ;;  %v381_v22 = vld [vmem:[#allocation5 + $0x988] sm:$0xff] }
  0x91   :  { %1260 = vmatpush.msrb.mxu1 %v716_v26  ;;  %1319 = vmatmul.f32.vlgmr.msrb.gmra.mxu3 %v3275_v29  ;;  %v3279_v46 = vld [vmem:[#allocation2 + $0x60] sm:$0xff]  ;;  %v125_v26 = vld [vmem:[#allocation5 + $0x188] sm:$0xff] }
  0x92   :  { %1261 = vmatmul.f32.vlgmr.msrb.gmra.mxu1 %v3273_v28  ;;  %1419 = vmatpush.msra.mxu3 %v581_v31  ;;  %v3291_v10 = vld [vmem:[#allocation2 + $0xa0] sm:$0xff]  ;;  %v261_v27 = vld [vmem:[#allocation5 + $0x5c8] sm:$0xff] }
  0x93   :  { %1333 = vmatpush.msra.mxu0 %v189_v32  ;;  %1361 = vmatpush.msra.mxu1 %v325_v33  ;;  %v509_v31 = vld [vmem:[#allocation5 + $0xd88] sm:$0xff] }
  0x94   :  { %1392 = vmatpush.msra.mxu2 %v437_v34  ;;  %1420 = vmatpush.msra.mxu3 %v573_v35  ;;  %v117_v32 = vld [vmem:[#allocation5 + $0x148] sm:$0xff] }
  0x95   :  { %1334 = vmatpush.msra.mxu0 %v181_v36  ;;  %1362 = vmatpush.msra.mxu1 %v317_v37  ;;  %v253_v33 = vld [vmem:[#allocation5 + $0x588] sm:$0xff] }
  0x96   :  { %1393 = vmatpush.msra.mxu2 %v429_v40  ;;  %1421 = vmatpush.msra.mxu3 %v565_v41  ;;  %v365_v34 = vld [vmem:[#allocation5 + $0x908] sm:$0xff]  ;;  %v3303_v40 = vld [vmem:[#allocation2 + $0xe0] sm:$0xff]  ;;  %v3305_v41 = vld [vmem:[#allocation2 + $0xf0] sm:$0xff] }
  0x97   :  { %1335 = vmatpush.msra.mxu0 %v173_v42  ;;  %1363 = vmatpush.msra.mxu1 %v309_v43  ;;  %v501_v35 = vld [vmem:[#allocation5 + $0xd48] sm:$0xff] }
  0x98   :  { %1235 = vmatmul.f32.gmra.mxu0 %v3279_v46  ;;  %1293 = vmatmul.f32.gmra.mxu2 %v3281_v47  ;;  %v109_v36 = vld [vmem:[#allocation5 + $0x108] sm:$0xff] }
  0x99   :  { %1394 = vmatpush.msra.mxu2 %v421_v48  ;;  %1422 = vmatpush.msra.mxu3 %v557_v49  ;;  %v245_v37 = vld [vmem:[#allocation5 + $0x548] sm:$0xff] }
  0x9a   :  { %1336 = vmatpush.msra.mxu0 %v165_v50  ;;  %1364 = vmatpush.msra.mxu1 %v301_v51  ;;  %v357_v42 = vld [vmem:[#allocation5 + $0x8c8] sm:$0xff]  ;;  %v3311_v51 = vld [vmem:[#allocation2 + $0xf8] sm:$0xff] }
  0x9b   :  { %1264 = vmatmul.f32.gmra.mxu1 %v3285_v52  ;;  %1322 = vmatmul.f32.gmra.mxu3 %v3287_v53  ;;  %v493_v43 = vld [vmem:[#allocation5 + $0xd08] sm:$0xff] }
  0x9c   :  { %1395 = vmatpush.msra.mxu2 %v413_v54  ;;  %1423 = vmatpush.msra.mxu3 %v549_v55  ;;  %v101_v48 = vld [vmem:[#allocation5 + $0xc8] sm:$0xff] }
  0x9d   :  { %1337 = vmatpush.msra.mxu0 %v157_v56  ;;  %1365 = vmatpush.msra.mxu1 %v293_v57  ;;  %v237_v49 = vld [vmem:[#allocation5 + $0x508] sm:$0xff] }
  0x9e   :  { %1396 = vmatpush.msra.mxu2 %v405_v60  ;;  %1424 = vmatpush.msra.mxu3 %v541_v61  ;;  %v3309_v50 = vld [vmem:[#allocation2 + $0xe8] sm:$0xff] }
  0x9f   :  { %1338 = vmatpush.msra.mxu0 %v149_v0  ;;  %1366 = vmatpush.msra.mxu1 %v285_v1  ;;  %v349_v54 = vld [vmem:[#allocation5 + $0x888] sm:$0xff] }
  0xa0   :  { %1397 = vmatpush.msra.mxu2 %v397_v6  ;;  %1425 = vmatpush.msra.mxu3 %v533_v7  ;;  %v485_v55 = vld [vmem:[#allocation5 + $0xcc8] sm:$0xff] }
  0xa1   :  { %1339 = vmatpush.msra.mxu0 %v141_v8  ;;  %1367 = vmatpush.msra.mxu1 %v277_v9  ;;  %v93_v56 = vld [vmem:[#allocation5 + $0x88] sm:$0xff] }
  0xa2   :  { %1238 = vmatmul.f32.gmra.mxu0 %v3291_v10  ;;  %1296 = vmatmul.f32.gmra.mxu2 %v3293_v11  ;;  %v229_v57 = vld [vmem:[#allocation5 + $0x4c8] sm:$0xff] }
  0xa3   :  { %1398 = vmatpush.msra.mxu2 %v389_v12  ;;  %1426 = vmatpush.msra.mxu3 %v525_v13  ;;  %v341_v60 = vld [vmem:[#allocation5 + $0x848] sm:$0xff] }
  0xa4   :  { %1340 = vmatpush.msra.mxu0 %v133_v14  ;;  %1368 = vmatpush.msra.mxu1 %v269_v15  ;;  %v477_v61 = vld [vmem:[#allocation5 + $0xc88] sm:$0xff] }
  0xa5   :  { %1267 = vmatmul.f32.gmra.mxu1 %v3297_v16  ;;  %1325 = vmatmul.f32.gmra.mxu3 %v3299_v17  ;;  %v85_v0 = vld [vmem:[#allocation5 + $0x48] sm:$0xff] }
  0xa6   :  { %1399 = vmatpush.msra.mxu2 %v381_v22  ;;  %1427 = vmatpush.msra.mxu3 %v517_v23  ;;  %v221_v1 = vld [vmem:[#allocation5 + $0x488] sm:$0xff] }
  0xa7   :  { %1341 = vmatpush.msra.mxu0 %v125_v26  ;;  %1369 = vmatpush.msra.mxu1 %v261_v27  ;;  %v333_v6 = vld [vmem:[#allocation5 + $0x808] sm:$0xff] }
  0xa8   :  { %1400 = vmatpush.msra.mxu2 %v373_v30  ;;  %1428 = vmatpush.msra.mxu3 %v509_v31  ;;  %v469_v7 = vld [vmem:[#allocation5 + $0xc48] sm:$0xff] }
  0xa9   :  { %1342 = vmatpush.msra.mxu0 %v117_v32  ;;  %1370 = vmatpush.msra.mxu1 %v253_v33  ;;  %v77_v8 = vld [vmem:[#allocation5 + $0x8] sm:$0xff] }
  0xaa   :  { %1401 = vmatpush.msra.mxu2 %v365_v34  ;;  %1429 = vmatpush.msra.mxu3 %v501_v35  ;;  %v213_v9 = vld [vmem:[#allocation5 + $0x448] sm:$0xff] }
  0xab   :  { %1343 = vmatpush.msra.mxu0 %v109_v36  ;;  %1371 = vmatpush.msra.mxu1 %v245_v37  ;;  %v461_v12 = vld [vmem:[#allocation5 + $0xc08] sm:$0xff] }
  0xac   :  { %1241 = vmatmul.f32.gmra.mxu0 %v3303_v40  ;;  %1299 = vmatmul.f32.gmra.mxu2 %v3305_v41  ;;  %v965_v13 = vld [vmem:[#allocation5 + $0x1bc8] sm:$0xff] }
  0xad   :  { %1402 = vmatpush.msra.mxu2 %v357_v42  ;;  %1430 = vmatpush.msra.mxu3 %v493_v43  ;;  %v205_v14 = vld [vmem:[#allocation5 + $0x408] sm:$0xff] }
  0xae   :  { %1344 = vmatpush.msra.mxu0 %v101_v48  ;;  %1372 = vmatpush.msra.mxu1 %v237_v49  ;;  %v709_v15 = vld [vmem:[#allocation5 + $0x13c8] sm:$0xff] }
  0xaf   :  { %1270 = vmatmul.f32.gmra.mxu1 %v3309_v50  ;;  %1328 = vmatmul.f32.gmra.mxu3 %v3311_v51  ;;  %v957_v22 = vld [vmem:[#allocation5 + $0x1b88] sm:$0xff] }
  0xb0   :  { %1403 = vmatpush.msra.mxu2 %v349_v54  ;;  %1431 = vmatpush.msra.mxu3 %v485_v55  ;;  %v1093_v23 = vld [vmem:[#allocation5 + $0x1fc8] sm:$0xff] }
  0xb1   :  { %1345 = vmatpush.msra.mxu0 %v93_v56  ;;  %1373 = vmatpush.msra.mxu1 %v229_v57  ;;  %v701_v26 = vld [vmem:[#allocation5 + $0x1388] sm:$0xff] }
  0xb2   :  { %1404 = vmatpush.msra.mxu2 %v341_v60  ;;  %1432 = vmatpush.msra.mxu3 %v477_v61  ;;  %v837_v27 = vld [vmem:[#allocation5 + $0x17c8] sm:$0xff] }
  0xb3   :  { %1346 = vmatpush.msra.mxu0 %v85_v0  ;;  %1374 = vmatpush.msra.mxu1 %v221_v1  ;;  %v949_v30 = vld [vmem:[#allocation5 + $0x1b48] sm:$0xff] }
  0xb4   :  { %1405 = vmatpush.msra.mxu2 %v333_v6  ;;  %1433 = vmatpush.msra.mxu3 %v469_v7  ;;  %v1085_v31 = vld [vmem:[#allocation5 + $0x1f88] sm:$0xff] }
  0xb5   :  { %1347 = vmatpush.msra.mxu0 %v77_v8  ;;  %1375 = vmatpush.msra.mxu1 %v213_v9  ;;  %v693_v32 = vld [vmem:[#allocation5 + $0x1348] sm:$0xff] }
  0xb6   :  { %1348 = vmatmul.f32.vlgmr.msra.gmra.mxu0 %v3219_v62  ;;  %1406 = vmatmul.f32.vlgmr.msra.gmra.mxu2 %v3221_v63  ;;  %v829_v62 = vld [vmem:[#allocation5 + $0x1788] sm:$0xff] }
  0xb7   :  { %1434 = vmatpush.msra.mxu3 %v461_v12  ;;  %1506 = vmatpush.msrb.mxu2 %v965_v13  ;;  %v941_v63 = vld [vmem:[#allocation5 + $0x1b08] sm:$0xff] }
  0xb8   :  { %1376 = vmatpush.msra.mxu1 %v205_v14  ;;  %1448 = vmatpush.msrb.mxu0 %v709_v15  ;;  %v1077_v33 = vld [vmem:[#allocation5 + $0x1f48] sm:$0xff] }
  0xb9   :  { %1377 = vmatmul.f32.vlgmr.msra.gmra.mxu1 %v3225_v4  ;;  %1435 = vmatmul.f32.vlgmr.msra.gmra.mxu3 %v3227_v5  ;;  %v685_v34 = vld [vmem:[#allocation5 + $0x1308] sm:$0xff] }
  0xba   :  { %1507 = vmatpush.msrb.mxu2 %v957_v22  ;;  %1535 = vmatpush.msrb.mxu3 %v1093_v23  ;;  %v821_v35 = vld [vmem:[#allocation5 + $0x1748] sm:$0xff] }
  0xbb   :  { %1449 = vmatpush.msrb.mxu0 %v701_v26  ;;  %1477 = vmatpush.msrb.mxu1 %v837_v27  ;;  %v933_v4 = vld [vmem:[#allocation5 + $0x1ac8] sm:$0xff] }
  0xbc   :  { %1508 = vmatpush.msrb.mxu2 %v949_v30  ;;  %1536 = vmatpush.msrb.mxu3 %v1085_v31  ;;  %v1069_v5 = vld [vmem:[#allocation5 + $0x1f08] sm:$0xff] }
  0xbd   :  { %1450 = vmatpush.msrb.mxu0 %v693_v32  ;;  %1478 = vmatpush.msrb.mxu1 %v829_v62  ;;  %v677_v36 = vld [vmem:[#allocation5 + $0x12c8] sm:$0xff] }
  0xbe   :  { %1509 = vmatpush.msrb.mxu2 %v941_v63  ;;  %1537 = vmatpush.msrb.mxu3 %v1077_v33  ;;  %v813_v37 = vld [vmem:[#allocation5 + $0x1708] sm:$0xff] }
  0xbf   :  { %1451 = vmatpush.msrb.mxu0 %v685_v34  ;;  %1479 = vmatpush.msrb.mxu1 %v821_v35  ;;  %v925_v42 = vld [vmem:[#allocation5 + $0x1a88] sm:$0xff] }
  0xc0   :  { %1351 = vmatmul.f32.gmra.mxu0 %v3231_v18  ;;  %1409 = vmatmul.f32.gmra.mxu2 %v3233_v19  ;;  %v1061_v43 = vld [vmem:[#allocation5 + $0x1ec8] sm:$0xff] }
  0xc1   :  { %1510 = vmatpush.msrb.mxu2 %v933_v4  ;;  %1538 = vmatpush.msrb.mxu3 %v1069_v5  ;;  %v669_v48 = vld [vmem:[#allocation5 + $0x1288] sm:$0xff] }
  0xc2   :  { %1452 = vmatpush.msrb.mxu0 %v677_v36  ;;  %1480 = vmatpush.msrb.mxu1 %v813_v37  ;;  %v805_v49 = vld [vmem:[#allocation5 + $0x16c8] sm:$0xff]  ;;  %v198_v37 = vld [vmem:[#allocation5 + $0x3d0] sm:$0xff] }
  0xc3   :  { %1380 = vmatmul.f32.gmra.mxu1 %v3237_v24  ;;  %1438 = vmatmul.f32.gmra.mxu3 %v3239_v25  ;;  %v917_v54 = vld [vmem:[#allocation5 + $0x1a48] sm:$0xff] }
  0xc4   :  { %v1053_v55 = vld [vmem:[#allocation5 + $0x1e88] sm:$0xff]  ;;  %1511 = vmatpush.msrb.mxu2 %v925_v42  ;;  %1539 = vmatpush.msrb.mxu3 %v1061_v43  ;;  %v446_v42 = vld [vmem:[#allocation5 + $0xb90] sm:$0xff] }
  0xc5   :  { %v661_v56 = vld [vmem:[#allocation5 + $0x1248] sm:$0xff]  ;;  %1453 = vmatpush.msrb.mxu0 %v669_v48  ;;  %1481 = vmatpush.msrb.mxu1 %v805_v49  ;;  %v582_v43 = vld [vmem:[#allocation5 + $0xfd0] sm:$0xff] }
  0xc6   :  { %v797_v18 = vld [vmem:[#allocation5 + $0x1688] sm:$0xff]  ;;  %1512 = vmatpush.msrb.mxu2 %v917_v54  ;;  %1540 = vmatpush.msrb.mxu3 %v1053_v55  ;;  %v190_v48 = vld [vmem:[#allocation5 + $0x390] sm:$0xff] }
  0xc7   :  { %v909_v19 = vld [vmem:[#allocation5 + $0x1a08] sm:$0xff]  ;;  %1454 = vmatpush.msrb.mxu0 %v661_v56  ;;  %1482 = vmatpush.msrb.mxu1 %v797_v18  ;;  %v326_v49 = vld [vmem:[#allocation5 + $0x7d0] sm:$0xff] }
  0xc8   :  { %v1045_v57 = vld [vmem:[#allocation5 + $0x1e48] sm:$0xff]  ;;  %1513 = vmatpush.msrb.mxu2 %v909_v19  ;;  %1354 = vmatmul.f32.gmra.mxu0 %v3243_v38  ;;  %v438_v54 = vld [vmem:[#allocation5 + $0xb50] sm:$0xff]  ;;  %v3335_v19 = vpop.f32.mrf.mxu0 }
  0xc9   :  { %v653_v60 = vld [vmem:[#allocation5 + $0x1208] sm:$0xff]  ;;  %1541 = vmatpush.msrb.mxu3 %v1045_v57  ;;  %1412 = vmatmul.f32.gmra.mxu2 %v3245_v39  ;;  %v574_v55 = vld [vmem:[#allocation5 + $0xf90] sm:$0xff] }
  0xca   :  { %v789_v61 = vld [vmem:[#allocation5 + $0x1648] sm:$0xff]  ;;  %1455 = vmatpush.msrb.mxu0 %v653_v60  ;;  %v182_v56 = vld [vmem:[#allocation5 + $0x350] sm:$0xff] }
  0xcb   :  { %v901_v24 = vld [vmem:[#allocation5 + $0x19c8] sm:$0xff]  ;;  %1483 = vmatpush.msrb.mxu1 %v789_v61  ;;  %1441 = vmatmul.f32.gmra.mxu3 %v3251_v45  ;;  %v566_v18 = vld [vmem:[#allocation5 + $0xf50] sm:$0xff]  ;;  %v3337_v61 = vpop.f32.mrf.mxu1 }
  0xcc   :  { %v1037_v25 = vld [vmem:[#allocation5 + $0x1e08] sm:$0xff]  ;;  %1514 = vmatpush.msrb.mxu2 %v901_v24  ;;  %1383 = vmatmul.f32.gmra.mxu1 %v3249_v44  ;;  %v174_v57 = vld [vmem:[#allocation5 + $0x310] sm:$0xff] }
  0xcd   :  { %v645_v0 = vld [vmem:[#allocation5 + $0x11c8] sm:$0xff]  ;;  %1542 = vmatpush.msrb.mxu3 %v1037_v25  ;;  %v310_v60 = vld [vmem:[#allocation5 + $0x750] sm:$0xff] }
  0xce   :  { %v781_v1 = vld [vmem:[#allocation5 + $0x1608] sm:$0xff]  ;;  %1456 = vmatpush.msrb.mxu0 %v645_v0  ;;  %v166_v24 = vld [vmem:[#allocation5 + $0x2d0] sm:$0xff] }
  0xcf   :  { %v893_v6 = vld [vmem:[#allocation5 + $0x1988] sm:$0xff]  ;;  %1484 = vmatpush.msrb.mxu1 %v781_v1  ;;  %v302_v25 = vld [vmem:[#allocation5 + $0x710] sm:$0xff] }
  0xd0   :  { %v1029_v7 = vld [vmem:[#allocation5 + $0x1dc8] sm:$0xff]  ;;  %1515 = vmatpush.msrb.mxu2 %v893_v6  ;;  %1357 = vmatmul.f32.gmra.mxu0 %v3255_v58  ;;  %v414_v0 = vld [vmem:[#allocation5 + $0xa90] sm:$0xff] }
  0xd1   :  { %v637_v8 = vld [vmem:[#allocation5 + $0x1188] sm:$0xff]  ;;  %1543 = vmatpush.msrb.mxu3 %v1029_v7  ;;  %1415 = vmatmul.f32.gmra.mxu2 %v3257_v59  ;;  %v550_v1 = vld [vmem:[#allocation5 + $0xed0] sm:$0xff] }
  0xd2   :  { %v773_v9 = vld [vmem:[#allocation5 + $0x15c8] sm:$0xff]  ;;  %1457 = vmatpush.msrb.mxu0 %v637_v8  ;;  %v158_v6 = vld [vmem:[#allocation5 + $0x290] sm:$0xff]  ;;  %v3341_v8 = vpop.f32.mrf.mxu2 }
  0xd3   :  { %v885_v12 = vld [vmem:[#allocation5 + $0x1948] sm:$0xff]  ;;  %1485 = vmatpush.msrb.mxu1 %v773_v9  ;;  %1444 = vmatmul.f32.gmra.mxu3 %v3263_v3  ;;  %v454_v3 = vld [vmem:[#allocation5 + $0xbd0] sm:$0xff] }
  0xd4   :  { %v1021_v13 = vld [vmem:[#allocation5 + $0x1d88] sm:$0xff]  ;;  %1516 = vmatpush.msrb.mxu2 %v885_v12  ;;  %1386 = vmatmul.f32.gmra.mxu1 %v3261_v2  ;;  %v294_v7 = vld [vmem:[#allocation5 + $0x6d0] sm:$0xff] }
  0xd5   :  { %v629_v14 = vld [vmem:[#allocation5 + $0x1148] sm:$0xff]  ;;  %1544 = vmatpush.msrb.mxu3 %v1021_v13  ;;  %v406_v9 = vld [vmem:[#allocation5 + $0xa50] sm:$0xff]  ;;  %v3345_v13 = vpop.f32.mrf.mxu3 }
  0xd6   :  { %v765_v38 = vld [vmem:[#allocation5 + $0x1588] sm:$0xff]  ;;  %1458 = vmatpush.msrb.mxu0 %v629_v14  ;;  %v542_v12 = vld [vmem:[#allocation5 + $0xe90] sm:$0xff] }
  0xd7   :  { %v877_v39 = vld [vmem:[#allocation5 + $0x1908] sm:$0xff]  ;;  %1486 = vmatpush.msrb.mxu1 %v765_v38  ;;  %v398_v14 = vld [vmem:[#allocation5 + $0xa10] sm:$0xff] }
  0xd8   :  { %v1013_v15 = vld [vmem:[#allocation5 + $0x1d48] sm:$0xff]  ;;  %1517 = vmatpush.msrb.mxu2 %v877_v39  ;;  %v534_v38 = vld [vmem:[#allocation5 + $0xe50] sm:$0xff] }
  0xd9   :  { %v621_v22 = vld [vmem:[#allocation5 + $0x1108] sm:$0xff]  ;;  %1545 = vmatpush.msrb.mxu3 %v1013_v15  ;;  %v3347_v39 = vpop.f32.mrf.mxu0  ;;  %v142_v15 = vld [vmem:[#allocation5 + $0x210] sm:$0xff] }
  0xda   :  { %v757_v23 = vld [vmem:[#allocation5 + $0x1548] sm:$0xff]  ;;  %1459 = vmatpush.msrb.mxu0 %v621_v22  ;;  %v526_v22 = vld [vmem:[#allocation5 + $0xe10] sm:$0xff] }
  0xdb   :  { %v869_v44 = vld [vmem:[#allocation5 + $0x18c8] sm:$0xff]  ;;  %1487 = vmatpush.msrb.mxu1 %v757_v23  ;;  %v3349_v23 = vpop.f32.mrf.mxu1 }
  0xdc   :  { %v1005_v45 = vld [vmem:[#allocation5 + $0x1d08] sm:$0xff]  ;;  %1518 = vmatpush.msrb.mxu2 %v869_v44  ;;  %v134_v44 = vld [vmem:[#allocation5 + $0x1d0] sm:$0xff] }
  0xdd   :  { %v613_v26 = vld [vmem:[#allocation5 + $0x10c8] sm:$0xff]  ;;  %1546 = vmatpush.msrb.mxu3 %v1005_v45  ;;  %v270_v45 = vld [vmem:[#allocation5 + $0x610] sm:$0xff] }
  0xde   :  { %v749_v27 = vld [vmem:[#allocation5 + $0x1508] sm:$0xff]  ;;  %1460 = vmatpush.msrb.mxu0 %v613_v26  ;;  %v382_v26 = vld [vmem:[#allocation5 + $0x990] sm:$0xff] }
  0xdf   :  { %v861_v30 = vld [vmem:[#allocation5 + $0x1888] sm:$0xff]  ;;  %1488 = vmatpush.msrb.mxu1 %v749_v27  ;;  %v518_v27 = vld [vmem:[#allocation5 + $0xdd0] sm:$0xff] }
  0xe0   :  { %v997_v31 = vld [vmem:[#allocation5 + $0x1cc8] sm:$0xff]  ;;  %1519 = vmatpush.msrb.mxu2 %v861_v30  ;;  %v126_v30 = vld [vmem:[#allocation5 + $0x190] sm:$0xff] }
  0xe1   :  { %v605_v32 = vld [vmem:[#allocation5 + $0x1088] sm:$0xff]  ;;  %1547 = vmatpush.msrb.mxu3 %v997_v31  ;;  %v262_v31 = vld [vmem:[#allocation5 + $0x5d0] sm:$0xff] }
  0xe2   :  { %v741_v62 = vld [vmem:[#allocation5 + $0x14c8] sm:$0xff]  ;;  %1461 = vmatpush.msrb.mxu0 %v605_v32  ;;  %v3353_v32 = vpop.f32.mrf.mxu2 }
  0xe3   :  { %v853_v63 = vld [vmem:[#allocation5 + $0x1848] sm:$0xff]  ;;  %1489 = vmatpush.msrb.mxu1 %v741_v62  ;;  %v374_v62 = vld [vmem:[#allocation5 + $0x950] sm:$0xff] }
  0xe4   :  { %v989_v33 = vld [vmem:[#allocation5 + $0x1c88] sm:$0xff]  ;;  %1520 = vmatpush.msrb.mxu2 %v853_v63  ;;  %v510_v63 = vld [vmem:[#allocation5 + $0xd90] sm:$0xff] }
  0xe5   :  { %v597_v34 = vld [vmem:[#allocation5 + $0x1048] sm:$0xff]  ;;  %1548 = vmatpush.msrb.mxu3 %v989_v33  ;;  %v3357_v33 = vpop.f32.mrf.mxu3 }
  0xe6   :  { %v733_v58 = vld [vmem:[#allocation5 + $0x1488] sm:$0xff]  ;;  %1462 = vmatpush.msrb.mxu0 %v597_v34  ;;  %v366_v34 = vld [vmem:[#allocation5 + $0x910] sm:$0xff] }
  0xe7   :  { %v845_v59 = vld [vmem:[#allocation5 + $0x1808] sm:$0xff]  ;;  %1490 = vmatpush.msrb.mxu1 %v733_v58  ;;  %v502_v58 = vld [vmem:[#allocation5 + $0xd50] sm:$0xff] }
  0xe8   :  { %v981_v35 = vld [vmem:[#allocation5 + $0x1c48] sm:$0xff]  ;;  %1521 = vmatpush.msrb.mxu2 %v845_v59 }
  0xe9   :  { %v589_v4 = vld [vmem:[#allocation5 + $0x1008] sm:$0xff]  ;;  %1549 = vmatpush.msrb.mxu3 %v981_v35  ;;  %1522 = vmatmul.f32.vlgmr.msrb.gmra.mxu2 %v3269_v21  ;;  %v430_v21 = vld [vmem:[#allocation5 + $0xb10] sm:$0xff] }
  0xea   :  { %v725_v5 = vld [vmem:[#allocation5 + $0x1448] sm:$0xff]  ;;  %1463 = vmatpush.msrb.mxu0 %v589_v4  ;;  %1622 = vmatpush.msra.mxu2 %v454_v3  ;;  %v3359_v59 = vpop.f32.mrf.mxu0  ;;  %v110_v35 = vld [vmem:[#allocation5 + $0x110] sm:$0xff] }
  0xeb   :  { %v973_v2 = vld [vmem:[#allocation5 + $0x1c08] sm:$0xff]  ;;  %1491 = vmatpush.msrb.mxu1 %v725_v5  ;;  %1464 = vmatmul.f32.vlgmr.msrb.gmra.mxu0 %v3267_v20  ;;  %v318_v20 = vld [vmem:[#allocation5 + $0x790] sm:$0xff]  ;;  %v3361_v5 = vpop.f32.mrf.mxu1 }
  0xec   :  { %v717_v36 = vld [vmem:[#allocation5 + $0x1408] sm:$0xff]  ;;  %1550 = vmatpush.msrb.mxu3 %v973_v2  ;;  %1564 = vmatpush.msra.mxu0 %v198_v37  ;;  %v494_v4 = vld [vmem:[#allocation5 + $0xd10] sm:$0xff] }
  0xed   :  { %1492 = vmatpush.msrb.mxu1 %v717_v36  ;;  %1551 = vmatmul.f32.vlgmr.msrb.gmra.mxu3 %v3275_v29  ;;  %v558_v29 = vld [vmem:[#allocation5 + $0xf10] sm:$0xff] }
  0xee   :  { %1493 = vmatmul.f32.vlgmr.msrb.gmra.mxu1 %v3273_v28  ;;  %1623 = vmatpush.msra.mxu2 %v446_v42  ;;  %v422_v28 = vld [vmem:[#allocation5 + $0xad0] sm:$0xff] }
  0xef   :  { %1651 = vmatpush.msra.mxu3 %v582_v43  ;;  %1565 = vmatpush.msra.mxu0 %v190_v48  ;;  %v102_v2 = vld [vmem:[#allocation5 + $0xd0] sm:$0xff]  ;;  %v3365_v48 = vpop.f32.mrf.mxu2 }
  0xf0   :  { %1593 = vmatpush.msra.mxu1 %v326_v49  ;;  %1624 = vmatpush.msra.mxu2 %v438_v54  ;;  %v238_v3 = vld [vmem:[#allocation5 + $0x510] sm:$0xff] }
  0xf1   :  { %1652 = vmatpush.msra.mxu3 %v574_v55  ;;  %1566 = vmatpush.msra.mxu0 %v182_v56  ;;  %v350_v36 = vld [vmem:[#allocation5 + $0x890] sm:$0xff]  ;;  %v3369_v55 = vpop.f32.mrf.mxu3 }
  0xf2   :  { %1594 = vmatpush.msra.mxu1 %v318_v20  ;;  %1625 = vmatpush.msra.mxu2 %v430_v21  ;;  %v486_v37 = vld [vmem:[#allocation5 + $0xcd0] sm:$0xff] }
  0xf3   :  { %1653 = vmatpush.msra.mxu3 %v566_v18  ;;  %1567 = vmatpush.msra.mxu0 %v174_v57  ;;  %v94_v42 = vld [vmem:[#allocation5 + $0x90] sm:$0xff] }
  0xf4   :  { %1595 = vmatpush.msra.mxu1 %v310_v60  ;;  %1467 = vmatmul.f32.gmra.mxu0 %v3279_v46  ;;  %v150_v46 = vld [vmem:[#allocation5 + $0x250] sm:$0xff]  ;;  %v3373_v60 = vpop.f32.mrf.mxu1 }
  0xf5   :  { %1525 = vmatmul.f32.gmra.mxu2 %v3281_v47  ;;  %1654 = vmatpush.msra.mxu3 %v558_v29  ;;  %v286_v47 = vld [vmem:[#allocation5 + $0x690] sm:$0xff] }
  0xf6   :  { %1626 = vmatpush.msra.mxu2 %v422_v28  ;;  %1568 = vmatpush.msra.mxu0 %v166_v24  ;;  %v230_v43 = vld [vmem:[#allocation5 + $0x4d0] sm:$0xff]  ;;  %v1147_v28 = vadd.f32 %v3337_v61, %v3335_v19 }
  0xf7   :  { %1596 = vmatpush.msra.mxu1 %v302_v25  ;;  %1554 = vmatmul.f32.gmra.mxu3 %v3287_v53  ;;  %v390_v53 = vld [vmem:[#allocation5 + $0x9d0] sm:$0xff]  ;;  %v3377_v25 = vld [vmem:[#allocation2] sm:$0xff] }
  0xf8   :  { %1496 = vmatmul.f32.gmra.mxu1 %v3285_v52  ;;  %1627 = vmatpush.msra.mxu2 %v414_v0  ;;  %v278_v52 = vld [vmem:[#allocation5 + $0x650] sm:$0xff] }
  0xf9   :  { %1655 = vmatpush.msra.mxu3 %v550_v1  ;;  %1569 = vmatpush.msra.mxu0 %v158_v6  ;;  %v342_v49 = vld [vmem:[#allocation5 + $0x850] sm:$0xff] }
  0xfa   :  { %1597 = vmatpush.msra.mxu1 %v294_v7  ;;  %1628 = vmatpush.msra.mxu2 %v406_v9  ;;  %v478_v54 = vld [vmem:[#allocation5 + $0xc90] sm:$0xff]  ;;  %v1176_v7 = vadd.f32 %v3341_v8, %v1147_v28  ;;  %v3384_v9 = vpop.f32.mrf.mxu2 }
  0xfb   :  { %1656 = vmatpush.msra.mxu3 %v542_v12  ;;  %1570 = vmatpush.msra.mxu0 %v150_v46  ;;  %v334_v56 = vld [vmem:[#allocation5 + $0x810] sm:$0xff]  ;;  %v3371_v21 = vpop.f32.mrf.mxu0  ;;  %v3386_v12 = vld [vmem:[#allocation2 + $0x8] sm:$0xff]  ;;  %v3389_v46 = vld [vmem:[#allocation2 + $0x18] sm:$0xff] }
  0xfc   :  { %1598 = vmatpush.msra.mxu1 %v286_v47  ;;  %1629 = vmatpush.msra.mxu2 %v398_v14  ;;  %v470_v20 = vld [vmem:[#allocation5 + $0xc50] sm:$0xff] }
  0xfd   :  { %1657 = vmatpush.msra.mxu3 %v534_v38  ;;  %1571 = vmatpush.msra.mxu0 %v142_v15  ;;  %v78_v18 = vld [vmem:[#allocation5 + $0x10] sm:$0xff]  ;;  %v3392_v15 = vpop.f32.mrf.mxu3 }
  0xfe   :  { %1599 = vmatpush.msra.mxu1 %v278_v52  ;;  %1470 = vmatmul.f32.gmra.mxu0 %v3291_v10  ;;  %v118_v10 = vld [vmem:[#allocation5 + $0x150] sm:$0xff]  ;;  %v1205_v52 = vadd.f32 %v3345_v13, %v1176_v7 }
  0xff   :  { %1528 = vmatmul.f32.gmra.mxu2 %v3293_v11  ;;  %1658 = vmatpush.msra.mxu3 %v526_v22  ;;  %v254_v11 = vld [vmem:[#allocation5 + $0x590] sm:$0xff] }
 0x100   :  { %1630 = vmatpush.msra.mxu2 %v390_v53  ;;  %1572 = vmatpush.msra.mxu0 %v134_v44  ;;  %v966_v57 = vld [vmem:[#allocation5 + $0x1bd0] sm:$0xff] }
 0x101   :  { %1600 = vmatpush.msra.mxu1 %v270_v45  ;;  %1557 = vmatmul.f32.gmra.mxu3 %v3299_v17  ;;  %v358_v17 = vld [vmem:[#allocation5 + $0x8d0] sm:$0xff] }
 0x102   :  { %1499 = vmatmul.f32.gmra.mxu1 %v3297_v16  ;;  %1631 = vmatpush.msra.mxu2 %v382_v26  ;;  %v246_v16 = vld [vmem:[#allocation5 + $0x550] sm:$0xff] }
 0x103   :  { %1659 = vmatpush.msra.mxu3 %v518_v27  ;;  %1573 = vmatpush.msra.mxu0 %v126_v30  ;;  %v206_v29 = vld [vmem:[#allocation5 + $0x410] sm:$0xff] }
 0x104   :  { %1601 = vmatpush.msra.mxu1 %v262_v31  ;;  %1632 = vmatpush.msra.mxu2 %v374_v62  ;;  %v710_v24 = vld [vmem:[#allocation5 + $0x13d0] sm:$0xff] }
 0x105   :  { %1660 = vmatpush.msra.mxu3 %v510_v63  ;;  %1574 = vmatpush.msra.mxu0 %v118_v10  ;;  %v3380_v0 = vld [vmem:[#allocation2 + $0x10] sm:$0xff]  ;;  %v1150_v63 = vadd.f32 %v3349_v23, %v3347_v39 }
 0x106   :  { %1602 = vmatpush.msra.mxu1 %v254_v11  ;;  %1633 = vmatpush.msra.mxu2 %v366_v34  ;;  %v958_v1 = vld [vmem:[#allocation5 + $0x1b90] sm:$0xff]  ;;  %v3397_v11 = vld [vmem:[#allocation2 + $0x40] sm:$0xff] }
 0x107   :  { %1661 = vmatpush.msra.mxu3 %v502_v58  ;;  %1575 = vmatpush.msra.mxu0 %v110_v35  ;;  %v1094_v6 = vld [vmem:[#allocation5 + $0x1fd0] sm:$0xff] }
 0x108   :  { %1603 = vmatpush.msra.mxu1 %v246_v16  ;;  %1473 = vmatmul.f32.gmra.mxu0 %v3303_v40  ;;  %v86_v40 = vld [vmem:[#allocation5 + $0x50] sm:$0xff]  ;;  %v1179_v16 = vadd.f32 %v3353_v32, %v1150_v63 }
 0x109   :  { %1531 = vmatmul.f32.gmra.mxu2 %v3305_v41  ;;  %1662 = vmatpush.msra.mxu3 %v494_v4  ;;  %v222_v41 = vld [vmem:[#allocation5 + $0x490] sm:$0xff] }
 0x10a   :  { %1634 = vmatpush.msra.mxu2 %v358_v17  ;;  %1576 = vmatpush.msra.mxu0 %v102_v2  ;;  %v702_v19 = vld [vmem:[#allocation5 + $0x1390] sm:$0xff]  ;;  %v3404_v2 = vld [vmem:[#allocation2 + $0x48] sm:$0xff] }
 0x10b   :  { %1604 = vmatpush.msra.mxu1 %v238_v3  ;;  %1560 = vmatmul.f32.gmra.mxu3 %v3311_v51  ;;  %v462_v51 = vld [vmem:[#allocation5 + $0xc10] sm:$0xff]  ;;  %v3407_v3 = vld [vmem:[#allocation2 + $0x58] sm:$0xff] }
 0x10c   :  { %1502 = vmatmul.f32.gmra.mxu1 %v3309_v50  ;;  %1635 = vmatpush.msra.mxu2 %v350_v36  ;;  %v214_v50 = vld [vmem:[#allocation5 + $0x450] sm:$0xff]  ;;  %v1233_v44 = vpop.f32.mrf.mxu0 }
 0x10d   :  { %1663 = vmatpush.msra.mxu3 %v486_v37  ;;  %1577 = vmatpush.msra.mxu0 %v94_v42  ;;  %v838_v61 = vld [vmem:[#allocation5 + $0x17d0] sm:$0xff]  ;;  %v1234_v27 = vadd.f32 %v1233_v44, %v1205_v52  ;;  %v3423_v52 = vld [vmem:[#allocation2 + $0x98] sm:$0xff] }
 0x10e   :  { %1605 = vmatpush.msra.mxu1 %v230_v43  ;;  %1636 = vmatpush.msra.mxu2 %v342_v49  ;;  %v950_v47 = vld [vmem:[#allocation5 + $0x1b50] sm:$0xff] }
 0x10f   :  { %1664 = vmatpush.msra.mxu3 %v478_v54  ;;  %1578 = vmatpush.msra.mxu0 %v86_v40  ;;  %v1086_v14 = vld [vmem:[#allocation5 + $0x1f90] sm:$0xff]  ;;  %v1262_v62 = vpop.f32.mrf.mxu1  ;;  %v1291_v4 = vpop.f32.mrf.mxu2  ;;  %v1208_v54 = vadd.f32 %v3357_v33, %v1179_v16  ;;  %v1153_v33 = vadd.f32 %v3361_v5, %v3359_v59 }
 0x110   :  { %1606 = vmatpush.msra.mxu1 %v222_v41  ;;  %1637 = vmatpush.msra.mxu2 %v334_v56  ;;  %v694_v38 = vld [vmem:[#allocation5 + $0x1350] sm:$0xff]  ;;  %v1263_v17 = vadd.f32 %v1262_v62, %v1234_v27 }
 0x111   :  { %1665 = vmatpush.msra.mxu3 %v470_v20  ;;  %1579 = vmatpush.msra.mxu0 %v78_v18  ;;  %v830_v8 = vld [vmem:[#allocation5 + $0x1790] sm:$0xff] }
 0x112   :  { %1607 = vmatpush.msra.mxu1 %v214_v50  ;;  %1580 = vmatmul.f32.vlgmr.msra.gmra.mxu0 %v3377_v25  ;;  %v942_v53 = vld [vmem:[#allocation5 + $0x1b10] sm:$0xff]  ;;  %v1292_v42 = vadd.f32 %v1291_v4, %v1263_v17  ;;  %v3429_v4 = vld [vmem:[#allocation2 + $0xc0] sm:$0xff] }
 0x113   :  { %1638 = vmatmul.f32.vlgmr.msra.gmra.mxu2 %v3380_v0  ;;  %1666 = vmatpush.msra.mxu3 %v462_v51  ;;  %v1078_v22 = vld [vmem:[#allocation5 + $0x1f50] sm:$0xff] }
 0x114   :  { %1738 = vmatpush.msrb.mxu2 %v966_v57  ;;  %1608 = vmatpush.msra.mxu1 %v206_v29  ;;  %v686_v45 = vld [vmem:[#allocation5 + $0x1310] sm:$0xff]  ;;  %v1320_v49 = vpop.f32.mrf.mxu3 }
 0x115   :  { %1680 = vmatpush.msrb.mxu0 %v710_v24  ;;  %1609 = vmatmul.f32.vlgmr.msra.gmra.mxu1 %v3386_v12  ;;  %v822_v26 = vld [vmem:[#allocation5 + $0x1750] sm:$0xff]  ;;  %v1236_v56 = vpop.f32.mrf.mxu0  ;;  %v1321_v20 = vadd.f32 %v1320_v49, %v1292_v42 }
 0x116   :  { %1667 = vmatmul.f32.vlgmr.msra.gmra.mxu3 %v3389_v46  ;;  %1739 = vmatpush.msrb.mxu2 %v958_v1  ;;  %v934_v30 = vld [vmem:[#allocation5 + $0x1ad0] sm:$0xff]  ;;  %v1237_v51 = vadd.f32 %v1236_v56, %v1208_v54  ;;  %v3436_v54 = vld [vmem:[#allocation2 + $0xc8] sm:$0xff] }
 0x117   :  { %1767 = vmatpush.msrb.mxu3 %v1094_v6  ;;  %1681 = vmatpush.msrb.mxu0 %v702_v19  ;;  %v1070_v31 = vld [vmem:[#allocation5 + $0x1f10] sm:$0xff]  ;;  %2956 = vst [vmem:[#allocation7] sm:$0xff] %v1321_v20  ;;  %v3413_v6 = vld [vmem:[#allocation2 + $0x80] sm:$0xff] }
 0x118   :  { %1709 = vmatpush.msrb.mxu1 %v838_v61  ;;  %1740 = vmatpush.msrb.mxu2 %v950_v47  ;;  %v678_v13 = vld [vmem:[#allocation5 + $0x12d0] sm:$0xff]  ;;  %v1265_v29 = vpop.f32.mrf.mxu1  ;;  %v1182_v47 = vadd.f32 %v3365_v48, %v1153_v33 }
 0x119   :  { %1768 = vmatpush.msrb.mxu3 %v1086_v14  ;;  %1682 = vmatpush.msrb.mxu0 %v694_v38  ;;  %v814_v10 = vld [vmem:[#allocation5 + $0x1710] sm:$0xff]  ;;  %v1266_v14 = vadd.f32 %v1265_v29, %v1237_v51 }
 0x11a   :  { %1710 = vmatpush.msrb.mxu1 %v830_v8  ;;  %1741 = vmatpush.msrb.mxu2 %v942_v53  ;;  %v3400_v34 = vld [vmem:[#allocation2 + $0x50] sm:$0xff]  ;;  %v3420_v8 = vld [vmem:[#allocation2 + $0x88] sm:$0xff]  ;;  %v1211_v27 = vadd.f32 %v3369_v55, %v1182_v47  ;;  %v1156_v55 = vadd.f32 %v3373_v60, %v3371_v21  ;;  %v455_v47 = vld [vmem:[#allocation5 + $0xbd8] sm:$0xff] }
 0x11b   :  { %1769 = vmatpush.msrb.mxu3 %v1078_v22  ;;  %1683 = vmatpush.msrb.mxu0 %v686_v45  ;;  %v926_v58 = vld [vmem:[#allocation5 + $0x1a90] sm:$0xff]  ;;  %v1294_v38 = vpop.f32.mrf.mxu2 }
 0x11c   :  { %1711 = vmatpush.msrb.mxu1 %v822_v26  ;;  %1583 = vmatmul.f32.gmra.mxu0 %v3397_v11  ;;  %v1062_v35 = vld [vmem:[#allocation5 + $0x1ed0] sm:$0xff]  ;;  %v1295_v44 = vadd.f32 %v1294_v38, %v1266_v14 }
 0x11d   :  { %1641 = vmatmul.f32.gmra.mxu2 %v3400_v34  ;;  %1770 = vmatpush.msrb.mxu3 %v1070_v31  ;;  %v670_v39 = vld [vmem:[#allocation5 + $0x1290] sm:$0xff] }
 0x11e   :  { %1742 = vmatpush.msrb.mxu2 %v934_v30  ;;  %1684 = vmatpush.msrb.mxu0 %v678_v13  ;;  %v806_v23 = vld [vmem:[#allocation5 + $0x16d0] sm:$0xff]  ;;  %v1323_v26 = vpop.f32.mrf.mxu3 }
 0x11f   :  { %1712 = vmatpush.msrb.mxu1 %v814_v10  ;;  %1670 = vmatmul.f32.gmra.mxu3 %v3407_v3  ;;  %v918_v36 = vld [vmem:[#allocation5 + $0x1a50] sm:$0xff]  ;;  %v1239_v62 = vpop.f32.mrf.mxu0  ;;  %v1324_v63 = vadd.f32 %v1323_v26, %v1295_v44 }
 0x120   :  { %1612 = vmatmul.f32.gmra.mxu1 %v3404_v2  ;;  %v1054_v37 = vld [vmem:[#allocation5 + $0x1e90] sm:$0xff]  ;;  %1743 = vmatpush.msrb.mxu2 %v926_v58  ;;  %v1240_v58 = vadd.f32 %v1239_v62, %v1211_v27  ;;  %v3449_v27 = vld [vmem:[#allocation2 + $0x28] sm:$0xff]  ;;  %v575_v62 = vld [vmem:[#allocation5 + $0xf98] sm:$0xff] }
 0x121   :  { %1771 = vmatpush.msrb.mxu3 %v1062_v35  ;;  %v662_v32 = vld [vmem:[#allocation5 + $0x1250] sm:$0xff]  ;;  %1685 = vmatpush.msrb.mxu0 %v670_v39  ;;  %2964 = vst [vmem:[#allocation7 + $0x40] sm:$0xff] %v1324_v63 }
 0x122   :  { %v798_v43 = vld [vmem:[#allocation5 + $0x1690] sm:$0xff]  ;;  %1713 = vmatpush.msrb.mxu1 %v806_v23  ;;  %1744 = vmatpush.msrb.mxu2 %v918_v36  ;;  %v1268_v17 = vpop.f32.mrf.mxu1 }
 0x123   :  { %v910_v40 = vld [vmem:[#allocation5 + $0x1a10] sm:$0xff]  ;;  %1772 = vmatpush.msrb.mxu3 %v1054_v37  ;;  %1686 = vmatpush.msrb.mxu0 %v662_v32  ;;  %v1185_v32 = vadd.f32 %v3384_v9, %v1156_v55 }
 0x124   :  { %v1046_v41 = vld [vmem:[#allocation5 + $0x1e50] sm:$0xff]  ;;  %1714 = vmatpush.msrb.mxu1 %v798_v43  ;;  %1745 = vmatpush.msrb.mxu2 %v910_v40  ;;  %v1269_v43 = vadd.f32 %v1268_v17, %v1240_v58  ;;  %v3439_v40 = vld [vmem:[#allocation2 + $0xd8] sm:$0xff] }
 0x125   :  { %v654_v18 = vld [vmem:[#allocation5 + $0x1210] sm:$0xff]  ;;  %1773 = vmatpush.msrb.mxu3 %v1046_v41  ;;  %1586 = vmatmul.f32.gmra.mxu0 %v3413_v6  ;;  %v1297_v49 = vpop.f32.mrf.mxu2  ;;  %v1214_v51 = vadd.f32 %v3392_v15, %v1185_v32 }
 0x126   :  { %v790_v50 = vld [vmem:[#allocation5 + $0x1650] sm:$0xff]  ;;  %1687 = vmatpush.msrb.mxu0 %v654_v18  ;;  %v1298_v20 = vadd.f32 %v1297_v49, %v1269_v43  ;;  %v167_v43 = vld [vmem:[#allocation5 + $0x2d8] sm:$0xff] }
 0x127   :  { %v902_v57 = vld [vmem:[#allocation5 + $0x19d0] sm:$0xff]  ;;  %1715 = vmatpush.msrb.mxu1 %v790_v50  ;;  %1673 = vmatmul.f32.gmra.mxu3 %v3423_v52 }
 0x128   :  { %v1038_v28 = vld [vmem:[#allocation5 + $0x1e10] sm:$0xff]  ;;  %1746 = vmatpush.msrb.mxu2 %v902_v57  ;;  %1615 = vmatmul.f32.gmra.mxu1 %v3420_v8  ;;  %v1326_v50 = vpop.f32.mrf.mxu3 }
 0x129   :  { %v646_v24 = vld [vmem:[#allocation5 + $0x11d0] sm:$0xff]  ;;  %1774 = vmatpush.msrb.mxu3 %v1038_v28  ;;  %v1242_v29 = vpop.f32.mrf.mxu0  ;;  %v1327_v33 = vadd.f32 %v1326_v50, %v1298_v20  ;;  %v159_v20 = vld [vmem:[#allocation5 + $0x298] sm:$0xff]  ;;  %v3467_v50 = vld [vmem:[#allocation2 + $0x68] sm:$0xff] }
 0x12a   :  { %v782_v1 = vld [vmem:[#allocation5 + $0x1610] sm:$0xff]  ;;  %1688 = vmatpush.msrb.mxu0 %v646_v24 }
 0x12b   :  { %v3416_v7 = vld [vmem:[#allocation2 + $0x90] sm:$0xff]  ;;  %1716 = vmatpush.msrb.mxu1 %v782_v1  ;;  %2972 = vst [vmem:[#allocation7 + $0x80] sm:$0xff] %v1327_v33  ;;  %v287_v33 = vld [vmem:[#allocation5 + $0x698] sm:$0xff] }
 0x12c   :  { %1644 = vmatmul.f32.gmra.mxu2 %v3416_v7  ;;  %v894_v19 = vld [vmem:[#allocation5 + $0x1990] sm:$0xff]  ;;  %v1271_v14 = vpop.f32.mrf.mxu1 }
 0x12d   :  { %v1030_v61 = vld [vmem:[#allocation5 + $0x1dd0] sm:$0xff]  ;;  %1747 = vmatpush.msrb.mxu2 %v894_v19  ;;  %1589 = vmatmul.f32.gmra.mxu0 %v3429_v4  ;;  %v1243_v19 = vadd.f32 %v1242_v29, %v1214_v51  ;;  %v3470_v51 = vld [vmem:[#allocation2 + $0x78] sm:$0xff] }
 0x12e   :  { %v638_v59 = vld [vmem:[#allocation5 + $0x1190] sm:$0xff]  ;;  %1775 = vmatpush.msrb.mxu3 %v1030_v61  ;;  %v151_v29 = vld [vmem:[#allocation5 + $0x258] sm:$0xff] }
 0x12f   :  { %v774_v5 = vld [vmem:[#allocation5 + $0x15d0] sm:$0xff]  ;;  %1689 = vmatpush.msrb.mxu0 %v638_v59  ;;  %1676 = vmatmul.f32.gmra.mxu3 %v3439_v40  ;;  %v199_v59 = vld [vmem:[#allocation5 + $0x3d8] sm:$0xff]  ;;  %v1272_v44 = vadd.f32 %v1271_v14, %v1243_v19  ;;  %v1300_v26 = vpop.f32.mrf.mxu2 }
 0x130   :  { %v886_v53 = vld [vmem:[#allocation5 + $0x1950] sm:$0xff]  ;;  %1717 = vmatpush.msrb.mxu1 %v774_v5  ;;  %v3443_v5 = vld [vmem:[#allocation2 + $0x20] sm:$0xff]  ;;  %v535_v19 = vld [vmem:[#allocation5 + $0xe58] sm:$0xff] }
 0x131   :  { %v1022_v22 = vld [vmem:[#allocation5 + $0x1d90] sm:$0xff]  ;;  %1748 = vmatpush.msrb.mxu2 %v886_v53  ;;  %1618 = vmatmul.f32.gmra.mxu1 %v3436_v54  ;;  %v447_v53 = vld [vmem:[#allocation5 + $0xb98] sm:$0xff]  ;;  %v1301_v63 = vadd.f32 %v1300_v26, %v1272_v44 }
 0x132   :  { %v630_v48 = vld [vmem:[#allocation5 + $0x1150] sm:$0xff]  ;;  %1776 = vmatpush.msrb.mxu3 %v1022_v22  ;;  %v583_v22 = vld [vmem:[#allocation5 + $0xfd8] sm:$0xff]  ;;  %v1329_v58 = vpop.f32.mrf.mxu3 }
 0x133   :  { %v766_v45 = vld [vmem:[#allocation5 + $0x1590] sm:$0xff]  ;;  %1690 = vmatpush.msrb.mxu0 %v630_v48  ;;  %v191_v48 = vld [vmem:[#allocation5 + $0x398] sm:$0xff]  ;;  %v1330_v17 = vadd.f32 %v1329_v58, %v1301_v63  ;;  %v3455_v55 = vpop.f32.mrf.mxu0 }
 0x134   :  { %v878_v30 = vld [vmem:[#allocation5 + $0x1910] sm:$0xff]  ;;  %1718 = vmatpush.msrb.mxu1 %v766_v45  ;;  %v327_v45 = vld [vmem:[#allocation5 + $0x7d8] sm:$0xff] }
 0x135   :  { %v1014_v31 = vld [vmem:[#allocation5 + $0x1d50] sm:$0xff]  ;;  %1749 = vmatpush.msrb.mxu2 %v878_v30  ;;  %v3452_v30 = vld [vmem:[#allocation2 + $0x38] sm:$0xff]  ;;  %2980 = vst [vmem:[#allocation7 + $0xc0] sm:$0xff] %v1330_v17 }
 0x136   :  { %v622_v13 = vld [vmem:[#allocation5 + $0x1110] sm:$0xff]  ;;  %1777 = vmatpush.msrb.mxu3 %v1014_v31  ;;  %v439_v31 = vld [vmem:[#allocation5 + $0xb58] sm:$0xff]  ;;  %v3457_v32 = vpop.f32.mrf.mxu1 }
 0x137   :  { %v758_v10 = vld [vmem:[#allocation5 + $0x1550] sm:$0xff]  ;;  %1691 = vmatpush.msrb.mxu0 %v622_v13  ;;  %v183_v13 = vld [vmem:[#allocation5 + $0x358] sm:$0xff] }
 0x138   :  { %v870_v35 = vld [vmem:[#allocation5 + $0x18d0] sm:$0xff]  ;;  %1719 = vmatpush.msrb.mxu1 %v758_v10  ;;  %v319_v10 = vld [vmem:[#allocation5 + $0x798] sm:$0xff] }
 0x139   :  { %v1006_v16 = vld [vmem:[#allocation5 + $0x1d10] sm:$0xff]  ;;  %1750 = vmatpush.msrb.mxu2 %v870_v35  ;;  %v431_v35 = vld [vmem:[#allocation5 + $0xb18] sm:$0xff] }
 0x13a   :  { %v614_v39 = vld [vmem:[#allocation5 + $0x10d0] sm:$0xff]  ;;  %1778 = vmatpush.msrb.mxu3 %v1006_v16  ;;  %v567_v16 = vld [vmem:[#allocation5 + $0xf58] sm:$0xff] }
 0x13b   :  { %v750_v23 = vld [vmem:[#allocation5 + $0x1510] sm:$0xff]  ;;  %1692 = vmatpush.msrb.mxu0 %v614_v39  ;;  %v175_v39 = vld [vmem:[#allocation5 + $0x318] sm:$0xff] }
 0x13c   :  { %v3432_v36 = vld [vmem:[#allocation2 + $0xd0] sm:$0xff]  ;;  %1720 = vmatpush.msrb.mxu1 %v750_v23  ;;  %v311_v23 = vld [vmem:[#allocation5 + $0x758] sm:$0xff] }
 0x13d   :  { %1647 = vmatmul.f32.gmra.mxu2 %v3432_v36  ;;  %v862_v37 = vld [vmem:[#allocation5 + $0x1890] sm:$0xff]  ;;  %v279_v14 = vld [vmem:[#allocation5 + $0x658] sm:$0xff] }
 0x13e   :  { %v998_v42 = vld [vmem:[#allocation5 + $0x1cd0] sm:$0xff]  ;;  %1751 = vmatpush.msrb.mxu2 %v862_v37  ;;  %v423_v37 = vld [vmem:[#allocation5 + $0xad8] sm:$0xff] }
 0x13f   :  { %v606_v21 = vld [vmem:[#allocation5 + $0x1090] sm:$0xff]  ;;  %1779 = vmatpush.msrb.mxu3 %v998_v42  ;;  %v559_v42 = vld [vmem:[#allocation5 + $0xf18] sm:$0xff] }
 0x140   :  { %v742_v60 = vld [vmem:[#allocation5 + $0x14d0] sm:$0xff]  ;;  %1693 = vmatpush.msrb.mxu0 %v606_v21  ;;  %v303_v21 = vld [vmem:[#allocation5 + $0x718] sm:$0xff] }
 0x141   :  { %v854_v41 = vld [vmem:[#allocation5 + $0x1850] sm:$0xff]  ;;  %1721 = vmatpush.msrb.mxu1 %v742_v60  ;;  %v3459_v60 = vld [vmem:[#allocation2 + $0x60] sm:$0xff]  ;;  %v271_v44 = vld [vmem:[#allocation5 + $0x618] sm:$0xff] }
 0x142   :  { %v990_v56 = vld [vmem:[#allocation5 + $0x1c90] sm:$0xff]  ;;  %1752 = vmatpush.msrb.mxu2 %v854_v41  ;;  %v415_v41 = vld [vmem:[#allocation5 + $0xa98] sm:$0xff] }
 0x143   :  { %v598_v9 = vld [vmem:[#allocation5 + $0x1050] sm:$0xff]  ;;  %1780 = vmatpush.msrb.mxu3 %v990_v56  ;;  %v551_v56 = vld [vmem:[#allocation5 + $0xed8] sm:$0xff] }
 0x144   :  { %v734_v18 = vld [vmem:[#allocation5 + $0x1490] sm:$0xff]  ;;  %1694 = vmatpush.msrb.mxu0 %v598_v9  ;;  %v295_v9 = vld [vmem:[#allocation5 + $0x6d8] sm:$0xff] }
 0x145   :  { %v846_v57 = vld [vmem:[#allocation5 + $0x1810] sm:$0xff]  ;;  %1722 = vmatpush.msrb.mxu1 %v734_v18  ;;  %v3465_v18 = vpop.f32.mrf.mxu2  ;;  %v383_v26 = vld [vmem:[#allocation5 + $0x998] sm:$0xff] }
 0x146   :  { %v982_v28 = vld [vmem:[#allocation5 + $0x1c50] sm:$0xff]  ;;  %1753 = vmatpush.msrb.mxu2 %v846_v57  ;;  %v407_v57 = vld [vmem:[#allocation5 + $0xa58] sm:$0xff] }
 0x147   :  { %v590_v24 = vld [vmem:[#allocation5 + $0x1010] sm:$0xff]  ;;  %1781 = vmatpush.msrb.mxu3 %v982_v28  ;;  %v543_v28 = vld [vmem:[#allocation5 + $0xe98] sm:$0xff] }
 0x148   :  { %v726_v1 = vld [vmem:[#allocation5 + $0x1450] sm:$0xff]  ;;  %1695 = vmatpush.msrb.mxu0 %v590_v24  ;;  %1854 = vmatpush.msra.mxu2 %v455_v47  ;;  %v3473_v24 = vpop.f32.mrf.mxu3  ;;  %v143_v47 = vld [vmem:[#allocation5 + $0x218] sm:$0xff] }
 0x149   :  { %v974_v61 = vld [vmem:[#allocation5 + $0x1c10] sm:$0xff]  ;;  %1723 = vmatpush.msrb.mxu1 %v726_v1  ;;  %1696 = vmatmul.f32.vlgmr.msrb.gmra.mxu0 %v3443_v5  ;;  %v399_v1 = vld [vmem:[#allocation5 + $0xa18] sm:$0xff] }
 0x14a   :  { %v718_v15 = vld [vmem:[#allocation5 + $0x1410] sm:$0xff]  ;;  %1782 = vmatpush.msrb.mxu3 %v974_v61  ;;  %1796 = vmatpush.msra.mxu0 %v199_v59  ;;  %v3475_v61 = vpop.f32.mrf.mxu0  ;;  %v527_v59 = vld [vmem:[#allocation5 + $0xe18] sm:$0xff] }
 0x14b   :  { %v3446_v38 = vld [vmem:[#allocation2 + $0x30] sm:$0xff]  ;;  %1724 = vmatpush.msrb.mxu1 %v718_v15  ;;  %1783 = vmatmul.f32.vlgmr.msrb.gmra.mxu3 %v3452_v30  ;;  %v391_v15 = vld [vmem:[#allocation5 + $0x9d8] sm:$0xff] }
 0x14c   :  { %1754 = vmatmul.f32.vlgmr.msrb.gmra.mxu2 %v3446_v38  ;;  %1725 = vmatmul.f32.vlgmr.msrb.gmra.mxu1 %v3449_v27  ;;  %v3462_v49 = vld [vmem:[#allocation2 + $0x70] sm:$0xff]  ;;  %v263_v63 = vld [vmem:[#allocation5 + $0x5d8] sm:$0xff] }
 0x14d   :  { %1855 = vmatpush.msra.mxu2 %v447_v53  ;;  %1883 = vmatpush.msra.mxu3 %v583_v22  ;;  %v3477_v53 = vpop.f32.mrf.mxu1  ;;  %v135_v22 = vld [vmem:[#allocation5 + $0x1d8] sm:$0xff] }
 0x14e   :  { %1797 = vmatpush.msra.mxu0 %v191_v48  ;;  %1825 = vmatpush.msra.mxu1 %v327_v45  ;;  %v3479_v48 = vld [vmem:[#allocation2 + $0xa0] sm:$0xff]  ;;  %v3482_v45 = vld [vmem:[#allocation2 + $0xb0] sm:$0xff]  ;;  %v3490_v58 = vld [vmem:[#allocation2 + $0xb8] sm:$0xff] }
 0x14f   :  { %1856 = vmatpush.msra.mxu2 %v439_v31  ;;  %1884 = vmatpush.msra.mxu3 %v575_v62  ;;  %v519_v31 = vld [vmem:[#allocation5 + $0xdd8] sm:$0xff] }
 0x150   :  { %1798 = vmatpush.msra.mxu0 %v183_v13  ;;  %1826 = vmatpush.msra.mxu1 %v319_v10  ;;  %v127_v62 = vld [vmem:[#allocation5 + $0x198] sm:$0xff]  ;;  %v3485_v13 = vpop.f32.mrf.mxu2  ;;  %v3487_v10 = vld [vmem:[#allocation2 + $0xa8] sm:$0xff] }
 0x151   :  { %1857 = vmatpush.msra.mxu2 %v431_v35  ;;  %1885 = vmatpush.msra.mxu3 %v567_v16  ;;  %v375_v35 = vld [vmem:[#allocation5 + $0x958] sm:$0xff] }
 0x152   :  { %1799 = vmatpush.msra.mxu0 %v175_v39  ;;  %1827 = vmatpush.msra.mxu1 %v311_v23  ;;  %v511_v16 = vld [vmem:[#allocation5 + $0xd98] sm:$0xff]  ;;  %v3493_v23 = vpop.f32.mrf.mxu3 }
 0x153   :  { %1699 = vmatmul.f32.gmra.mxu0 %v3459_v60  ;;  %1858 = vmatpush.msra.mxu2 %v423_v37  ;;  %v119_v17 = vld [vmem:[#allocation5 + $0x158] sm:$0xff] }
 0x154   :  { %1757 = vmatmul.f32.gmra.mxu2 %v3462_v49  ;;  %1886 = vmatpush.msra.mxu3 %v559_v42  ;;  %v255_v39 = vld [vmem:[#allocation5 + $0x598] sm:$0xff] }
 0x155   :  { %1800 = vmatpush.msra.mxu0 %v167_v43  ;;  %1828 = vmatpush.msra.mxu1 %v303_v21  ;;  %v367_v37 = vld [vmem:[#allocation5 + $0x918] sm:$0xff]  ;;  %v3495_v43 = vpop.f32.mrf.mxu0 }
 0x156   :  { %1728 = vmatmul.f32.gmra.mxu1 %v3467_v50  ;;  %1786 = vmatmul.f32.gmra.mxu3 %v3470_v51  ;;  %v503_v42 = vld [vmem:[#allocation5 + $0xd58] sm:$0xff] }
 0x157   :  { %1859 = vmatpush.msra.mxu2 %v415_v41  ;;  %1887 = vmatpush.msra.mxu3 %v551_v56  ;;  %v111_v21 = vld [vmem:[#allocation5 + $0x118] sm:$0xff] }
 0x158   :  { %1801 = vmatpush.msra.mxu0 %v159_v20  ;;  %1829 = vmatpush.msra.mxu1 %v295_v9  ;;  %v247_v41 = vld [vmem:[#allocation5 + $0x558] sm:$0xff]  ;;  %v3497_v9 = vpop.f32.mrf.mxu1 }
 0x159   :  { %1860 = vmatpush.msra.mxu2 %v407_v57  ;;  %1888 = vmatpush.msra.mxu3 %v543_v28  ;;  %v359_v56 = vld [vmem:[#allocation5 + $0x8d8] sm:$0xff] }
 0x15a   :  { %1802 = vmatpush.msra.mxu0 %v151_v29  ;;  %1830 = vmatpush.msra.mxu1 %v287_v33  ;;  %v495_v20 = vld [vmem:[#allocation5 + $0xd18] sm:$0xff]  ;;  %v3499_v29 = vld [vmem:[#allocation2 + $0xe0] sm:$0xff]  ;;  %v3502_v33 = vld [vmem:[#allocation2 + $0xf0] sm:$0xff] }
 0x15b   :  { %1861 = vmatpush.msra.mxu2 %v399_v1  ;;  %1889 = vmatpush.msra.mxu3 %v535_v19  ;;  %v103_v57 = vld [vmem:[#allocation5 + $0xd8] sm:$0xff] }
 0x15c   :  { %1803 = vmatpush.msra.mxu0 %v143_v47  ;;  %1831 = vmatpush.msra.mxu1 %v279_v14  ;;  %v239_v28 = vld [vmem:[#allocation5 + $0x518] sm:$0xff] }
 0x15d   :  { %1702 = vmatmul.f32.gmra.mxu0 %v3479_v48  ;;  %1760 = vmatmul.f32.gmra.mxu2 %v3482_v45  ;;  %v351_v1 = vld [vmem:[#allocation5 + $0x898] sm:$0xff] }
 0x15e   :  { %1862 = vmatpush.msra.mxu2 %v391_v15  ;;  %1890 = vmatpush.msra.mxu3 %v527_v59  ;;  %v487_v19 = vld [vmem:[#allocation5 + $0xcd8] sm:$0xff]  ;;  %v3505_v15 = vpop.f32.mrf.mxu2  ;;  %v3507_v59 = vld [vmem:[#allocation2 + $0xe8] sm:$0xff] }
 0x15f   :  { %1804 = vmatpush.msra.mxu0 %v135_v22  ;;  %1832 = vmatpush.msra.mxu1 %v271_v44  ;;  %v95_v47 = vld [vmem:[#allocation5 + $0x98] sm:$0xff] }
 0x160   :  { %1731 = vmatmul.f32.gmra.mxu1 %v3487_v10  ;;  %1789 = vmatmul.f32.gmra.mxu3 %v3490_v58  ;;  %v231_v14 = vld [vmem:[#allocation5 + $0x4d8] sm:$0xff] }
 0x161   :  { %1863 = vmatpush.msra.mxu2 %v383_v26  ;;  %1891 = vmatpush.msra.mxu3 %v519_v31  ;;  %v3510_v22 = vld [vmem:[#allocation2 + $0xf8] sm:$0xff] }
 0x162   :  { %1805 = vmatpush.msra.mxu0 %v127_v62  ;;  %1833 = vmatpush.msra.mxu1 %v263_v63  ;;  %v343_v44 = vld [vmem:[#allocation5 + $0x858] sm:$0xff]  ;;  %v3513_v63 = vpop.f32.mrf.mxu3 }
 0x163   :  { %1864 = vmatpush.msra.mxu2 %v375_v35  ;;  %1892 = vmatpush.msra.mxu3 %v511_v16  ;;  %v479_v26 = vld [vmem:[#allocation5 + $0xc98] sm:$0xff] }
 0x164   :  { %1806 = vmatpush.msra.mxu0 %v119_v17  ;;  %1834 = vmatpush.msra.mxu1 %v255_v39  ;;  %v87_v31 = vld [vmem:[#allocation5 + $0x58] sm:$0xff]  ;;  %v3515_v17 = vpop.f32.mrf.mxu0 }
 0x165   :  { %1865 = vmatpush.msra.mxu2 %v367_v37  ;;  %1893 = vmatpush.msra.mxu3 %v503_v42  ;;  %v223_v62 = vld [vmem:[#allocation5 + $0x498] sm:$0xff] }
 0x166   :  { %1807 = vmatpush.msra.mxu0 %v111_v21  ;;  %1835 = vmatpush.msra.mxu1 %v247_v41  ;;  %v335_v35 = vld [vmem:[#allocation5 + $0x818] sm:$0xff]  ;;  %v3517_v41 = vpop.f32.mrf.mxu1 }
 0x167   :  { %1705 = vmatmul.f32.gmra.mxu0 %v3499_v29  ;;  %1763 = vmatmul.f32.gmra.mxu2 %v3502_v33  ;;  %v471_v16 = vld [vmem:[#allocation5 + $0xc58] sm:$0xff] }
 0x168   :  { %1866 = vmatpush.msra.mxu2 %v359_v56  ;;  %1894 = vmatpush.msra.mxu3 %v495_v20  ;;  %v79_v39 = vld [vmem:[#allocation5 + $0x18] sm:$0xff]  ;;  %v1379_v56 = vadd.f32 %v3457_v32, %v3455_v55 }
 0x169   :  { %1808 = vmatpush.msra.mxu0 %v103_v57  ;;  %1836 = vmatpush.msra.mxu1 %v239_v28  ;;  %v215_v37 = vld [vmem:[#allocation5 + $0x458] sm:$0xff] }
 0x16a   :  { %1734 = vmatmul.f32.gmra.mxu1 %v3507_v59  ;;  %1792 = vmatmul.f32.gmra.mxu3 %v3510_v22  ;;  %v463_v42 = vld [vmem:[#allocation5 + $0xc18] sm:$0xff] }
 0x16b   :  { %1867 = vmatpush.msra.mxu2 %v351_v1  ;;  %1895 = vmatpush.msra.mxu3 %v487_v19  ;;  %v967_v21 = vld [vmem:[#allocation5 + $0x1bd8] sm:$0xff]  ;;  %v1408_v19 = vadd.f32 %v3465_v18, %v1379_v56 }
 0x16c   :  { %1809 = vmatpush.msra.mxu0 %v95_v47  ;;  %1837 = vmatpush.msra.mxu1 %v231_v14  ;;  %v207_v20 = vld [vmem:[#allocation5 + $0x418] sm:$0xff] }
 0x16d   :  { %1868 = vmatpush.msra.mxu2 %v343_v44  ;;  %1896 = vmatpush.msra.mxu3 %v479_v26  ;;  %v711_v57 = vld [vmem:[#allocation5 + $0x13d8] sm:$0xff]  ;;  %v3524_v44 = vpop.f32.mrf.mxu2  ;;  %v3528_v26 = vpop.f32.mrf.mxu3  ;;  %v1437_v18 = vadd.f32 %v3473_v24, %v1408_v19 }
 0x16e   :  { %1810 = vmatpush.msra.mxu0 %v87_v31  ;;  %1838 = vmatpush.msra.mxu1 %v223_v62  ;;  %v959_v28 = vld [vmem:[#allocation5 + $0x1b98] sm:$0xff] }
 0x16f   :  { %1869 = vmatpush.msra.mxu2 %v335_v35  ;;  %1897 = vmatpush.msra.mxu3 %v471_v16  ;;  %v1095_v1 = vld [vmem:[#allocation5 + $0x1fd8] sm:$0xff]  ;;  %v1465_v35 = vpop.f32.mrf.mxu0 }
 0x170   :  { %1811 = vmatpush.msra.mxu0 %v79_v39  ;;  %1839 = vmatpush.msra.mxu1 %v215_v37  ;;  %v703_v47 = vld [vmem:[#allocation5 + $0x1398] sm:$0xff] }
 0x171   :  { %1812 = vmatmul.f32.vlgmr.msra.gmra.mxu0 %v3377_v25  ;;  %1870 = vmatmul.f32.vlgmr.msra.gmra.mxu2 %v3380_v0  ;;  %v839_v14 = vld [vmem:[#allocation5 + $0x17d8] sm:$0xff] }
 0x172   :  { %1898 = vmatpush.msra.mxu3 %v463_v42  ;;  %1970 = vmatpush.msrb.mxu2 %v967_v21  ;;  %v951_v55 = vld [vmem:[#allocation5 + $0x1b58] sm:$0xff]  ;;  %v1494_v42 = vpop.f32.mrf.mxu1  ;;  %v1382_v21 = vadd.f32 %v3477_v53, %v3475_v61 }
 0x173   :  { %1840 = vmatpush.msra.mxu1 %v207_v20  ;;  %1912 = vmatpush.msrb.mxu0 %v711_v57  ;;  %v1087_v25 = vld [vmem:[#allocation5 + $0x1f98] sm:$0xff] }
 0x174   :  { %1841 = vmatmul.f32.vlgmr.msra.gmra.mxu1 %v3386_v12  ;;  %1899 = vmatmul.f32.vlgmr.msra.gmra.mxu3 %v3389_v46  ;;  %v695_v0 = vld [vmem:[#allocation5 + $0x1358] sm:$0xff]  ;;  %v1466_v46 = vadd.f32 %v1465_v35, %v1437_v18 }
 0x175   :  { %1971 = vmatpush.msrb.mxu2 %v959_v28  ;;  %1999 = vmatpush.msrb.mxu3 %v1095_v1  ;;  %v831_v32 = vld [vmem:[#allocation5 + $0x1798] sm:$0xff]  ;;  %v1411_v28 = vadd.f32 %v3485_v13, %v1382_v21  ;;  %v1523_v61 = vpop.f32.mrf.mxu2 }
 0x176   :  { %1913 = vmatpush.msrb.mxu0 %v703_v47  ;;  %1941 = vmatpush.msrb.mxu1 %v839_v14  ;;  %v943_v31 = vld [vmem:[#allocation5 + $0x1b18] sm:$0xff]  ;;  %v1495_v1 = vadd.f32 %v1494_v42, %v1466_v46 }
 0x177   :  { %v1079_v62 = vld [vmem:[#allocation5 + $0x1f58] sm:$0xff]  ;;  %1972 = vmatpush.msrb.mxu2 %v951_v55  ;;  %2000 = vmatpush.msrb.mxu3 %v1087_v25  ;;  %v1552_v25 = vpop.f32.mrf.mxu3  ;;  %v1440_v13 = vadd.f32 %v3493_v23, %v1411_v28  ;;  %v1468_v18 = vpop.f32.mrf.mxu0  ;;  %v1385_v23 = vadd.f32 %v3497_v9, %v3495_v43 }
 0x178   :  { %v687_v12 = vld [vmem:[#allocation5 + $0x1318] sm:$0xff]  ;;  %1914 = vmatpush.msrb.mxu0 %v695_v0  ;;  %1942 = vmatpush.msrb.mxu1 %v831_v32  ;;  %v1524_v14 = vadd.f32 %v1523_v61, %v1495_v1 }
 0x179   :  { %v823_v16 = vld [vmem:[#allocation5 + $0x1758] sm:$0xff]  ;;  %1973 = vmatpush.msrb.mxu2 %v943_v31  ;;  %2001 = vmatpush.msrb.mxu3 %v1079_v62  ;;  %v1469_v62 = vadd.f32 %v1468_v18, %v1440_v13  ;;  %v1414_v21 = vadd.f32 %v3505_v15, %v1385_v23 }
 0x17a   :  { %v935_v39 = vld [vmem:[#allocation5 + $0x1ad8] sm:$0xff]  ;;  %1915 = vmatpush.msrb.mxu0 %v687_v12  ;;  %1943 = vmatpush.msrb.mxu1 %v823_v16  ;;  %v1553_v31 = vadd.f32 %v1552_v25, %v1524_v14  ;;  %v1497_v16 = vpop.f32.mrf.mxu1 }
 0x17b   :  { %v1071_v37 = vld [vmem:[#allocation5 + $0x1f18] sm:$0xff]  ;;  %1815 = vmatmul.f32.gmra.mxu0 %v3397_v11  ;;  %1873 = vmatmul.f32.gmra.mxu2 %v3400_v34  ;;  %v1443_v15 = vadd.f32 %v3513_v63, %v1414_v21  ;;  %v1388_v63 = vadd.f32 %v3517_v41, %v3515_v17  ;;  %v456_v21 = vld [vmem:[#allocation5 + $0xbe0] sm:$0xff] }
 0x17c   :  { %v679_v24 = vld [vmem:[#allocation5 + $0x12d8] sm:$0xff]  ;;  %1974 = vmatpush.msrb.mxu2 %v935_v39  ;;  %2002 = vmatpush.msrb.mxu3 %v1071_v37  ;;  %2957 = vst [vmem:[#allocation7 + $0x8] sm:$0xff] %v1553_v31 }
 0x17d   :  { %v815_v56 = vld [vmem:[#allocation5 + $0x1718] sm:$0xff]  ;;  %1916 = vmatpush.msrb.mxu0 %v679_v24  ;;  %1844 = vmatmul.f32.gmra.mxu1 %v3404_v2  ;;  %v1498_v24 = vadd.f32 %v1497_v16, %v1469_v62  ;;  %v1526_v43 = vpop.f32.mrf.mxu2  ;;  %v1417_v18 = vadd.f32 %v3524_v44, %v1388_v63  ;;  %v416_v63 = vld [vmem:[#allocation5 + $0xaa0] sm:$0xff] }
 0x17e   :  { %v927_v20 = vld [vmem:[#allocation5 + $0x1a98] sm:$0xff]  ;;  %1944 = vmatpush.msrb.mxu1 %v815_v56  ;;  %1902 = vmatmul.f32.gmra.mxu3 %v3407_v3 }
 0x17f   :  { %v1063_v57 = vld [vmem:[#allocation5 + $0x1ed8] sm:$0xff]  ;;  %1975 = vmatpush.msrb.mxu2 %v927_v20  ;;  %v1555_v1 = vpop.f32.mrf.mxu3  ;;  %v1471_v61 = vpop.f32.mrf.mxu0  ;;  %v1446_v44 = vadd.f32 %v3528_v26, %v1417_v18  ;;  %v408_v18 = vld [vmem:[#allocation5 + $0xa60] sm:$0xff] }
 0x180   :  { %v671_v19 = vld [vmem:[#allocation5 + $0x1298] sm:$0xff]  ;;  %2003 = vmatpush.msrb.mxu3 %v1063_v57  ;;  %v1527_v57 = vadd.f32 %v1526_v43, %v1498_v24  ;;  %v584_v43 = vld [vmem:[#allocation5 + $0xfe0] sm:$0xff] }
 0x181   :  { %v807_v47 = vld [vmem:[#allocation5 + $0x16d8] sm:$0xff]  ;;  %1917 = vmatpush.msrb.mxu0 %v671_v19 }
 0x182   :  { %v919_v53 = vld [vmem:[#allocation5 + $0x1a58] sm:$0xff]  ;;  %1945 = vmatpush.msrb.mxu1 %v807_v47 }
 0x183   :  { %v1055_v11 = vld [vmem:[#allocation5 + $0x1e98] sm:$0xff]  ;;  %1976 = vmatpush.msrb.mxu2 %v919_v53  ;;  %1818 = vmatmul.f32.gmra.mxu0 %v3413_v6  ;;  %v1556_v53 = vadd.f32 %v1555_v1, %v1527_v57  ;;  %v328_v57 = vld [vmem:[#allocation5 + $0x7e0] sm:$0xff] }
 0x184   :  { %v663_v34 = vld [vmem:[#allocation5 + $0x1258] sm:$0xff]  ;;  %2004 = vmatpush.msrb.mxu3 %v1055_v11  ;;  %1876 = vmatmul.f32.gmra.mxu2 %v3416_v7  ;;  %v1472_v11 = vadd.f32 %v1471_v61, %v1443_v15  ;;  %v576_v1 = vld [vmem:[#allocation5 + $0xfa0] sm:$0xff] }
 0x185   :  { %v799_v55 = vld [vmem:[#allocation5 + $0x1698] sm:$0xff]  ;;  %1918 = vmatpush.msrb.mxu0 %v663_v34  ;;  %1847 = vmatmul.f32.gmra.mxu1 %v3420_v8  ;;  %2965 = vst [vmem:[#allocation7 + $0x48] sm:$0xff] %v1556_v53  ;;  %v1529_v17 = vpop.f32.mrf.mxu2  ;;  %v568_v61 = vld [vmem:[#allocation5 + $0xf60] sm:$0xff] }
 0x186   :  { %v911_v0 = vld [vmem:[#allocation5 + $0x1a18] sm:$0xff]  ;;  %1946 = vmatpush.msrb.mxu1 %v799_v55  ;;  %1905 = vmatmul.f32.gmra.mxu3 %v3423_v52  ;;  %v1500_v55 = vpop.f32.mrf.mxu1 }
 0x187   :  { %v1047_v32 = vld [vmem:[#allocation5 + $0x1e58] sm:$0xff]  ;;  %1977 = vmatpush.msrb.mxu2 %v911_v0  ;;  %v1501_v31 = vadd.f32 %v1500_v55, %v1472_v11  ;;  %v560_v11 = vld [vmem:[#allocation5 + $0xf20] sm:$0xff] }
 0x188   :  { %v655_v2 = vld [vmem:[#allocation5 + $0x1218] sm:$0xff]  ;;  %2005 = vmatpush.msrb.mxu3 %v1047_v32  ;;  %v304_v55 = vld [vmem:[#allocation5 + $0x720] sm:$0xff] }
 0x189   :  { %v791_v3 = vld [vmem:[#allocation5 + $0x1658] sm:$0xff]  ;;  %1919 = vmatpush.msrb.mxu0 %v655_v2  ;;  %v1530_v62 = vadd.f32 %v1529_v17, %v1501_v31  ;;  %v544_v31 = vld [vmem:[#allocation5 + $0xea0] sm:$0xff] }
 0x18a   :  { %v903_v35 = vld [vmem:[#allocation5 + $0x19d8] sm:$0xff]  ;;  %1947 = vmatpush.msrb.mxu1 %v791_v3  ;;  %v536_v17 = vld [vmem:[#allocation5 + $0xe60] sm:$0xff] }
 0x18b   :  { %v1039_v12 = vld [vmem:[#allocation5 + $0x1e18] sm:$0xff]  ;;  %1978 = vmatpush.msrb.mxu2 %v903_v35  ;;  %1821 = vmatmul.f32.gmra.mxu0 %v3429_v4 }
 0x18c   :  { %v647_v46 = vld [vmem:[#allocation5 + $0x11d8] sm:$0xff]  ;;  %2006 = vmatpush.msrb.mxu3 %v1039_v12  ;;  %1879 = vmatmul.f32.gmra.mxu2 %v3432_v36  ;;  %v1558_v12 = vpop.f32.mrf.mxu3 }
 0x18d   :  { %v783_v39 = vld [vmem:[#allocation5 + $0x1618] sm:$0xff]  ;;  %1920 = vmatpush.msrb.mxu0 %v647_v46  ;;  %1850 = vmatmul.f32.gmra.mxu1 %v3436_v54  ;;  %v1474_v46 = vpop.f32.mrf.mxu0 }
 0x18e   :  { %v895_v37 = vld [vmem:[#allocation5 + $0x1998] sm:$0xff]  ;;  %1948 = vmatpush.msrb.mxu1 %v783_v39  ;;  %1908 = vmatmul.f32.gmra.mxu3 %v3439_v40  ;;  %v1559_v39 = vadd.f32 %v1558_v12, %v1530_v62  ;;  %v1503_v24 = vpop.f32.mrf.mxu1  ;;  %v528_v62 = vld [vmem:[#allocation5 + $0xe20] sm:$0xff] }
 0x18f   :  { %v1031_v42 = vld [vmem:[#allocation5 + $0x1dd8] sm:$0xff]  ;;  %1979 = vmatpush.msrb.mxu2 %v895_v37  ;;  %v1475_v37 = vadd.f32 %v1474_v46, %v1446_v44  ;;  %v272_v12 = vld [vmem:[#allocation5 + $0x620] sm:$0xff] }
 0x190   :  { %v639_v56 = vld [vmem:[#allocation5 + $0x1198] sm:$0xff]  ;;  %2007 = vmatpush.msrb.mxu3 %v1031_v42  ;;  %2973 = vst [vmem:[#allocation7 + $0x88] sm:$0xff] %v1559_v39  ;;  %v384_v44 = vld [vmem:[#allocation5 + $0x9a0] sm:$0xff] }
 0x191   :  { %v775_v20 = vld [vmem:[#allocation5 + $0x15d8] sm:$0xff]  ;;  %1921 = vmatpush.msrb.mxu0 %v639_v56  ;;  %v200_v56 = vld [vmem:[#allocation5 + $0x3e0] sm:$0xff] }
 0x192   :  { %v887_v9 = vld [vmem:[#allocation5 + $0x1958] sm:$0xff]  ;;  %1949 = vmatpush.msrb.mxu1 %v775_v20  ;;  %v448_v20 = vld [vmem:[#allocation5 + $0xba0] sm:$0xff] }
 0x193   :  { %v1023_v6 = vld [vmem:[#allocation5 + $0x1d98] sm:$0xff]  ;;  %1980 = vmatpush.msrb.mxu2 %v887_v9  ;;  %v1504_v9 = vadd.f32 %v1503_v24, %v1475_v37  ;;  %v264_v46 = vld [vmem:[#allocation5 + $0x5e0] sm:$0xff] }
 0x194   :  { %v631_v7 = vld [vmem:[#allocation5 + $0x1158] sm:$0xff]  ;;  %2008 = vmatpush.msrb.mxu3 %v1023_v6  ;;  %v192_v6 = vld [vmem:[#allocation5 + $0x3a0] sm:$0xff] }
 0x195   :  { %v767_v28 = vld [vmem:[#allocation5 + $0x1598] sm:$0xff]  ;;  %1922 = vmatpush.msrb.mxu0 %v631_v7  ;;  %v1532_v7 = vpop.f32.mrf.mxu2 }
 0x196   :  { %v879_v19 = vld [vmem:[#allocation5 + $0x1918] sm:$0xff]  ;;  %1950 = vmatpush.msrb.mxu1 %v767_v28  ;;  %v440_v28 = vld [vmem:[#allocation5 + $0xb60] sm:$0xff]  ;;  %v1533_v15 = vadd.f32 %v1532_v7, %v1504_v9 }
 0x197   :  { %v1015_v47 = vld [vmem:[#allocation5 + $0x1d58] sm:$0xff]  ;;  %1981 = vmatpush.msrb.mxu2 %v879_v19  ;;  %v1561_v19 = vpop.f32.mrf.mxu3  ;;  %v240_v9 = vld [vmem:[#allocation5 + $0x520] sm:$0xff] }
 0x198   :  { %v623_v8 = vld [vmem:[#allocation5 + $0x1118] sm:$0xff]  ;;  %2009 = vmatpush.msrb.mxu3 %v1015_v47  ;;  %v432_v47 = vld [vmem:[#allocation5 + $0xb20] sm:$0xff]  ;;  %v1562_v53 = vadd.f32 %v1561_v19, %v1533_v15 }
 0x199   :  { %v759_v52 = vld [vmem:[#allocation5 + $0x1558] sm:$0xff]  ;;  %1923 = vmatpush.msrb.mxu0 %v623_v8  ;;  %v3559_v8 = vpop.f32.mrf.mxu0  ;;  %v96_v7 = vld [vmem:[#allocation5 + $0xa0] sm:$0xff] }
 0x19a   :  { %v871_v14 = vld [vmem:[#allocation5 + $0x18d8] sm:$0xff]  ;;  %1951 = vmatpush.msrb.mxu1 %v759_v52  ;;  %v312_v52 = vld [vmem:[#allocation5 + $0x760] sm:$0xff]  ;;  %2981 = vst [vmem:[#allocation7 + $0xc8] sm:$0xff] %v1562_v53 }
 0x19b   :  { %v1007_v34 = vld [vmem:[#allocation5 + $0x1d18] sm:$0xff]  ;;  %1982 = vmatpush.msrb.mxu2 %v871_v14  ;;  %v3561_v14 = vpop.f32.mrf.mxu1  ;;  %v344_v15 = vld [vmem:[#allocation5 + $0x860] sm:$0xff] }
 0x19c   :  { %v615_v25 = vld [vmem:[#allocation5 + $0x10d8] sm:$0xff]  ;;  %2010 = vmatpush.msrb.mxu3 %v1007_v34  ;;  %v168_v34 = vld [vmem:[#allocation5 + $0x2e0] sm:$0xff] }
 0x19d   :  { %v751_v13 = vld [vmem:[#allocation5 + $0x1518] sm:$0xff]  ;;  %1924 = vmatpush.msrb.mxu0 %v615_v25  ;;  %v552_v25 = vld [vmem:[#allocation5 + $0xee0] sm:$0xff] }
 0x19e   :  { %v863_v0 = vld [vmem:[#allocation5 + $0x1898] sm:$0xff]  ;;  %1952 = vmatpush.msrb.mxu1 %v751_v13  ;;  %v160_v13 = vld [vmem:[#allocation5 + $0x2a0] sm:$0xff] }
 0x19f   :  { %v999_v32 = vld [vmem:[#allocation5 + $0x1cd8] sm:$0xff]  ;;  %1983 = vmatpush.msrb.mxu2 %v863_v0  ;;  %v296_v0 = vld [vmem:[#allocation5 + $0x6e0] sm:$0xff] }
 0x1a0   :  { %v607_v2 = vld [vmem:[#allocation5 + $0x1098] sm:$0xff]  ;;  %2011 = vmatpush.msrb.mxu3 %v999_v32  ;;  %v3565_v32 = vpop.f32.mrf.mxu2  ;;  %v336_v19 = vld [vmem:[#allocation5 + $0x820] sm:$0xff] }
 0x1a1   :  { %v743_v3 = vld [vmem:[#allocation5 + $0x14d8] sm:$0xff]  ;;  %1925 = vmatpush.msrb.mxu0 %v607_v2  ;;  %v3569_v2 = vpop.f32.mrf.mxu3  ;;  %v80_v53 = vld [vmem:[#allocation5 + $0x20] sm:$0xff] }
 0x1a2   :  { %v855_v41 = vld [vmem:[#allocation5 + $0x1858] sm:$0xff]  ;;  %1953 = vmatpush.msrb.mxu1 %v743_v3  ;;  %v400_v3 = vld [vmem:[#allocation5 + $0xa20] sm:$0xff] }
 0x1a3   :  { %v991_v4 = vld [vmem:[#allocation5 + $0x1c98] sm:$0xff]  ;;  %1984 = vmatpush.msrb.mxu2 %v855_v41  ;;  %v3571_v41 = vpop.f32.mrf.mxu0 }
 0x1a4   :  { %v599_v36 = vld [vmem:[#allocation5 + $0x1058] sm:$0xff]  ;;  %2012 = vmatpush.msrb.mxu3 %v991_v4  ;;  %v144_v4 = vld [vmem:[#allocation5 + $0x220] sm:$0xff] }
 0x1a5   :  { %v735_v35 = vld [vmem:[#allocation5 + $0x1498] sm:$0xff]  ;;  %1926 = vmatpush.msrb.mxu0 %v599_v36  ;;  %v3573_v36 = vpop.f32.mrf.mxu1 }
 0x1a6   :  { %v847_v16 = vld [vmem:[#allocation5 + $0x1818] sm:$0xff]  ;;  %1954 = vmatpush.msrb.mxu1 %v735_v35  ;;  %v136_v35 = vld [vmem:[#allocation5 + $0x1e0] sm:$0xff] }
 0x1a7   :  { %v983_v23 = vld [vmem:[#allocation5 + $0x1c58] sm:$0xff]  ;;  %1985 = vmatpush.msrb.mxu2 %v847_v16  ;;  %v520_v16 = vld [vmem:[#allocation5 + $0xde0] sm:$0xff] }
 0x1a8   :  { %v591_v54 = vld [vmem:[#allocation5 + $0x1018] sm:$0xff]  ;;  %2013 = vmatpush.msrb.mxu3 %v983_v23  ;;  %1986 = vmatmul.f32.vlgmr.msrb.gmra.mxu2 %v3446_v38  ;;  %v320_v38 = vld [vmem:[#allocation5 + $0x7a0] sm:$0xff]  ;;  %v3577_v39 = vpop.f32.mrf.mxu2 }
 0x1a9   :  { %v727_v40 = vld [vmem:[#allocation5 + $0x1458] sm:$0xff]  ;;  %1927 = vmatpush.msrb.mxu0 %v591_v54  ;;  %2086 = vmatpush.msra.mxu2 %v456_v21  ;;  %v128_v23 = vld [vmem:[#allocation5 + $0x1a0] sm:$0xff]  ;;  %v3581_v37 = vpop.f32.mrf.mxu3 }
 0x1aa   :  { %v975_v42 = vld [vmem:[#allocation5 + $0x1c18] sm:$0xff]  ;;  %1955 = vmatpush.msrb.mxu1 %v727_v40  ;;  %1928 = vmatmul.f32.vlgmr.msrb.gmra.mxu0 %v3443_v5  ;;  %v184_v5 = vld [vmem:[#allocation5 + $0x360] sm:$0xff] }
 0x1ab   :  { %v719_v26 = vld [vmem:[#allocation5 + $0x1418] sm:$0xff]  ;;  %2014 = vmatpush.msrb.mxu3 %v975_v42  ;;  %2028 = vmatpush.msra.mxu0 %v200_v56  ;;  %v376_v54 = vld [vmem:[#allocation5 + $0x960] sm:$0xff]  ;;  %v3583_v24 = vpop.f32.mrf.mxu0 }
 0x1ac   :  { %1956 = vmatpush.msrb.mxu1 %v719_v26  ;;  %2015 = vmatmul.f32.vlgmr.msrb.gmra.mxu3 %v3452_v30  ;;  %v424_v30 = vld [vmem:[#allocation5 + $0xae0] sm:$0xff] }
 0x1ad   :  { %1957 = vmatmul.f32.vlgmr.msrb.gmra.mxu1 %v3449_v27  ;;  %2087 = vmatpush.msra.mxu2 %v448_v20  ;;  %v176_v27 = vld [vmem:[#allocation5 + $0x320] sm:$0xff]  ;;  %v3585_v20 = vpop.f32.mrf.mxu1 }
 0x1ae   :  { %2115 = vmatpush.msra.mxu3 %v584_v43  ;;  %2029 = vmatpush.msra.mxu0 %v192_v6  ;;  %v512_v40 = vld [vmem:[#allocation5 + $0xda0] sm:$0xff] }
 0x1af   :  { %2057 = vmatpush.msra.mxu1 %v328_v57  ;;  %2088 = vmatpush.msra.mxu2 %v440_v28  ;;  %v368_v42 = vld [vmem:[#allocation5 + $0x920] sm:$0xff] }
 0x1b0   :  { %2116 = vmatpush.msra.mxu3 %v576_v1  ;;  %2030 = vmatpush.msra.mxu0 %v184_v5  ;;  %v504_v21 = vld [vmem:[#allocation5 + $0xd60] sm:$0xff]  ;;  %v3589_v1 = vpop.f32.mrf.mxu2 }
 0x1b1   :  { %2058 = vmatpush.msra.mxu1 %v320_v38  ;;  %2089 = vmatpush.msra.mxu2 %v432_v47  ;;  %v112_v26 = vld [vmem:[#allocation5 + $0x120] sm:$0xff]  ;;  %v3593_v38 = vpop.f32.mrf.mxu3 }
 0x1b2   :  { %2117 = vmatpush.msra.mxu3 %v568_v61  ;;  %2031 = vmatpush.msra.mxu0 %v176_v27  ;;  %v496_v56 = vld [vmem:[#allocation5 + $0xd20] sm:$0xff] }
 0x1b3   :  { %2059 = vmatpush.msra.mxu1 %v312_v52  ;;  %1931 = vmatmul.f32.gmra.mxu0 %v3459_v60  ;;  %v152_v60 = vld [vmem:[#allocation5 + $0x260] sm:$0xff]  ;;  %v3595_v61 = vpop.f32.mrf.mxu0 }
 0x1b4   :  { %1989 = vmatmul.f32.gmra.mxu2 %v3462_v49  ;;  %2118 = vmatpush.msra.mxu3 %v560_v11  ;;  %v288_v49 = vld [vmem:[#allocation5 + $0x6a0] sm:$0xff] }
 0x1b5   :  { %2090 = vmatpush.msra.mxu2 %v424_v30  ;;  %2032 = vmatpush.msra.mxu0 %v168_v34  ;;  %v104_v43 = vld [vmem:[#allocation5 + $0xe0] sm:$0xff]  ;;  %v3597_v52 = vpop.f32.mrf.mxu1  ;;  %v1611_v30 = vadd.f32 %v3561_v14, %v3559_v8 }
 0x1b6   :  { %2060 = vmatpush.msra.mxu1 %v304_v55  ;;  %2018 = vmatmul.f32.gmra.mxu3 %v3470_v51  ;;  %v392_v51 = vld [vmem:[#allocation5 + $0x9e0] sm:$0xff] }
 0x1b7   :  { %1960 = vmatmul.f32.gmra.mxu1 %v3467_v50  ;;  %2091 = vmatpush.msra.mxu2 %v416_v63  ;;  %v280_v50 = vld [vmem:[#allocation5 + $0x660] sm:$0xff]  ;;  %v3604_v63 = vld [vmem:[#allocation2 + $0x10] sm:$0xff] }
 0x1b8   :  { %2119 = vmatpush.msra.mxu3 %v552_v25  ;;  %2033 = vmatpush.msra.mxu0 %v160_v13  ;;  %v352_v6 = vld [vmem:[#allocation5 + $0x8a0] sm:$0xff] }
 0x1b9   :  { %2061 = vmatpush.msra.mxu1 %v296_v0  ;;  %2092 = vmatpush.msra.mxu2 %v408_v18  ;;  %v488_v57 = vld [vmem:[#allocation5 + $0xce0] sm:$0xff]  ;;  %v1640_v0 = vadd.f32 %v3565_v32, %v1611_v30 }
 0x1ba   :  { %2120 = vmatpush.msra.mxu3 %v544_v31  ;;  %2034 = vmatpush.msra.mxu0 %v152_v60  ;;  %v232_v28 = vld [vmem:[#allocation5 + $0x4e0] sm:$0xff]  ;;  %v3610_v31 = vld [vmem:[#allocation2 + $0x8] sm:$0xff]  ;;  %v3613_v60 = vld [vmem:[#allocation2 + $0x18] sm:$0xff] }
 0x1bb   :  { %2062 = vmatpush.msra.mxu1 %v288_v49  ;;  %2093 = vmatpush.msra.mxu2 %v400_v3  ;;  %v480_v5 = vld [vmem:[#allocation5 + $0xca0] sm:$0xff] }
 0x1bc   :  { %2121 = vmatpush.msra.mxu3 %v536_v17  ;;  %2035 = vmatpush.msra.mxu0 %v144_v4  ;;  %v472_v47 = vld [vmem:[#allocation5 + $0xc60] sm:$0xff]  ;;  %v3616_v4 = vpop.f32.mrf.mxu3 }
 0x1bd   :  { %2063 = vmatpush.msra.mxu1 %v280_v50  ;;  %1934 = vmatmul.f32.gmra.mxu0 %v3479_v48  ;;  %v120_v48 = vld [vmem:[#allocation5 + $0x160] sm:$0xff]  ;;  %v1669_v50 = vadd.f32 %v3569_v2, %v1640_v0  ;;  %v3640_v0 = vld [vmem:[#allocation2 + $0x90] sm:$0xff] }
 0x1be   :  { %1992 = vmatmul.f32.gmra.mxu2 %v3482_v45  ;;  %2122 = vmatpush.msra.mxu3 %v528_v62  ;;  %v256_v45 = vld [vmem:[#allocation5 + $0x5a0] sm:$0xff] }
 0x1bf   :  { %2094 = vmatpush.msra.mxu2 %v392_v51  ;;  %2036 = vmatpush.msra.mxu0 %v136_v35  ;;  %v968_v27 = vld [vmem:[#allocation5 + $0x1be0] sm:$0xff] }
 0x1c0   :  { %2064 = vmatpush.msra.mxu1 %v272_v12  ;;  %2021 = vmatmul.f32.gmra.mxu3 %v3490_v58  ;;  %v360_v58 = vld [vmem:[#allocation5 + $0x8e0] sm:$0xff]  ;;  %v3608_v18 = vpop.f32.mrf.mxu2 }
 0x1c1   :  { %1963 = vmatmul.f32.gmra.mxu1 %v3487_v10  ;;  %2095 = vmatpush.msra.mxu2 %v384_v44  ;;  %v248_v10 = vld [vmem:[#allocation5 + $0x560] sm:$0xff] }
 0x1c2   :  { %2123 = vmatpush.msra.mxu3 %v520_v16  ;;  %2037 = vmatpush.msra.mxu0 %v128_v23  ;;  %v208_v11 = vld [vmem:[#allocation5 + $0x420] sm:$0xff] }
 0x1c3   :  { %2065 = vmatpush.msra.mxu1 %v264_v46  ;;  %2096 = vmatpush.msra.mxu2 %v376_v54  ;;  %v712_v34 = vld [vmem:[#allocation5 + $0x13e0] sm:$0xff] }
 0x1c4   :  { %2124 = vmatpush.msra.mxu3 %v512_v40  ;;  %2038 = vmatpush.msra.mxu0 %v120_v48  ;;  %v3601_v55 = vld [vmem:[#allocation2] sm:$0xff]  ;;  %v1614_v40 = vadd.f32 %v3573_v36, %v3571_v41 }
 0x1c5   :  { %2066 = vmatpush.msra.mxu1 %v256_v45  ;;  %2097 = vmatpush.msra.mxu2 %v368_v42  ;;  %v960_v25 = vld [vmem:[#allocation5 + $0x1ba0] sm:$0xff]  ;;  %v3624_v42 = vld [vmem:[#allocation2 + $0x50] sm:$0xff] }
 0x1c6   :  { %2125 = vmatpush.msra.mxu3 %v504_v21  ;;  %2039 = vmatpush.msra.mxu0 %v112_v26  ;;  %v1096_v13 = vld [vmem:[#allocation5 + $0x1fe0] sm:$0xff]  ;;  %v1697_v35 = vpop.f32.mrf.mxu0 }
 0x1c7   :  { %2067 = vmatpush.msra.mxu1 %v248_v10  ;;  %1937 = vmatmul.f32.gmra.mxu0 %v3499_v29  ;;  %v88_v29 = vld [vmem:[#allocation5 + $0x60] sm:$0xff]  ;;  %v1698_v16 = vadd.f32 %v1697_v35, %v1669_v50  ;;  %v1643_v10 = vadd.f32 %v3577_v39, %v1614_v40  ;;  %v3647_v50 = vld [vmem:[#allocation2 + $0x98] sm:$0xff] }
 0x1c8   :  { %1995 = vmatmul.f32.gmra.mxu2 %v3502_v33  ;;  %2126 = vmatpush.msra.mxu3 %v496_v56  ;;  %v224_v33 = vld [vmem:[#allocation5 + $0x4a0] sm:$0xff] }
 0x1c9   :  { %2098 = vmatpush.msra.mxu2 %v360_v58  ;;  %2040 = vmatpush.msra.mxu0 %v104_v43  ;;  %v704_v8 = vld [vmem:[#allocation5 + $0x13a0] sm:$0xff]  ;;  %v1726_v54 = vpop.f32.mrf.mxu1  ;;  %v3628_v43 = vld [vmem:[#allocation2 + $0x48] sm:$0xff] }
 0x1ca   :  { %2068 = vmatpush.msra.mxu1 %v240_v9  ;;  %2024 = vmatmul.f32.gmra.mxu3 %v3510_v22  ;;  %v464_v22 = vld [vmem:[#allocation5 + $0xc20] sm:$0xff]  ;;  %v1727_v58 = vadd.f32 %v1726_v54, %v1698_v16  ;;  %v3631_v9 = vld [vmem:[#allocation2 + $0x58] sm:$0xff] }
 0x1cb   :  { %1966 = vmatmul.f32.gmra.mxu1 %v3507_v59  ;;  %2099 = vmatpush.msra.mxu2 %v352_v6  ;;  %v216_v59 = vld [vmem:[#allocation5 + $0x460] sm:$0xff] }
 0x1cc   :  { %2127 = vmatpush.msra.mxu3 %v488_v57  ;;  %2041 = vmatpush.msra.mxu0 %v96_v7  ;;  %v840_v14 = vld [vmem:[#allocation5 + $0x17e0] sm:$0xff] }
 0x1cd   :  { %2069 = vmatpush.msra.mxu1 %v232_v28  ;;  %2100 = vmatpush.msra.mxu2 %v344_v15  ;;  %v952_v49 = vld [vmem:[#allocation5 + $0x1b60] sm:$0xff] }
 0x1ce   :  { %2128 = vmatpush.msra.mxu3 %v480_v5  ;;  %2042 = vmatpush.msra.mxu0 %v88_v29  ;;  %v1088_v3 = vld [vmem:[#allocation5 + $0x1fa0] sm:$0xff]  ;;  %v1784_v15 = vpop.f32.mrf.mxu3  ;;  %v1672_v5 = vadd.f32 %v3581_v37, %v1643_v10  ;;  %v1617_v37 = vadd.f32 %v3585_v20, %v3583_v24 }
 0x1cf   :  { %2070 = vmatpush.msra.mxu1 %v224_v33  ;;  %2101 = vmatpush.msra.mxu2 %v336_v19  ;;  %v696_v17 = vld [vmem:[#allocation5 + $0x1360] sm:$0xff]  ;;  %v1755_v56 = vpop.f32.mrf.mxu2 }
 0x1d0   :  { %2129 = vmatpush.msra.mxu3 %v472_v47  ;;  %2043 = vmatpush.msra.mxu0 %v80_v53  ;;  %v832_v32 = vld [vmem:[#allocation5 + $0x17a0] sm:$0xff]  ;;  %v1756_v7 = vadd.f32 %v1755_v56, %v1727_v58  ;;  %v1700_v19 = vpop.f32.mrf.mxu0 }
 0x1d1   :  { %2071 = vmatpush.msra.mxu1 %v216_v59  ;;  %2044 = vmatmul.f32.vlgmr.msra.gmra.mxu0 %v3601_v55  ;;  %v944_v51 = vld [vmem:[#allocation5 + $0x1b20] sm:$0xff] }
 0x1d2   :  { %2102 = vmatmul.f32.vlgmr.msra.gmra.mxu2 %v3604_v63  ;;  %2130 = vmatpush.msra.mxu3 %v464_v22  ;;  %v1080_v62 = vld [vmem:[#allocation5 + $0x1f60] sm:$0xff]  ;;  %v1785_v47 = vadd.f32 %v1784_v15, %v1756_v7  ;;  %v1701_v22 = vadd.f32 %v1700_v19, %v1672_v5  ;;  %v3660_v5 = vld [vmem:[#allocation2 + $0xc8] sm:$0xff] }
 0x1d3   :  { %2202 = vmatpush.msrb.mxu2 %v968_v27  ;;  %2072 = vmatpush.msra.mxu1 %v208_v11  ;;  %v688_v12 = vld [vmem:[#allocation5 + $0x1320] sm:$0xff]  ;;  %v1729_v11 = vpop.f32.mrf.mxu1 }
 0x1d4   :  { %2144 = vmatpush.msrb.mxu0 %v712_v34  ;;  %2073 = vmatmul.f32.vlgmr.msra.gmra.mxu1 %v3610_v31  ;;  %v824_v44 = vld [vmem:[#allocation5 + $0x1760] sm:$0xff]  ;;  %2958 = vst [vmem:[#allocation7 + $0x10] sm:$0xff] %v1785_v47 }
 0x1d5   :  { %2131 = vmatmul.f32.vlgmr.msra.gmra.mxu3 %v3613_v60  ;;  %2203 = vmatpush.msrb.mxu2 %v960_v25  ;;  %v936_v23 = vld [vmem:[#allocation5 + $0x1ae0] sm:$0xff] }
 0x1d6   :  { %2231 = vmatpush.msrb.mxu3 %v1096_v13  ;;  %2145 = vmatpush.msrb.mxu0 %v704_v8  ;;  %v1072_v46 = vld [vmem:[#allocation5 + $0x1f20] sm:$0xff] }
 0x1d7   :  { %2173 = vmatpush.msrb.mxu1 %v840_v14  ;;  %2204 = vmatpush.msrb.mxu2 %v952_v49  ;;  %v680_v2 = vld [vmem:[#allocation5 + $0x12e0] sm:$0xff]  ;;  %v1646_v49 = vadd.f32 %v3589_v1, %v1617_v37 }
 0x1d8   :  { %2232 = vmatpush.msrb.mxu3 %v1088_v3  ;;  %2146 = vmatpush.msrb.mxu0 %v696_v17  ;;  %v816_v48 = vld [vmem:[#allocation5 + $0x1720] sm:$0xff]  ;;  %v1730_v3 = vadd.f32 %v1729_v11, %v1701_v22  ;;  %v1758_v17 = vpop.f32.mrf.mxu2 }
 0x1d9   :  { %2174 = vmatpush.msrb.mxu1 %v832_v32  ;;  %2205 = vmatpush.msrb.mxu2 %v944_v51  ;;  %v3621_v45 = vld [vmem:[#allocation2 + $0x40] sm:$0xff]  ;;  %v3644_v32 = vld [vmem:[#allocation2 + $0x88] sm:$0xff]  ;;  %v1675_v16 = vadd.f32 %v3593_v38, %v1646_v49  ;;  %v1620_v38 = vadd.f32 %v3597_v52, %v3595_v61 }
 0x1da   :  { %2233 = vmatpush.msrb.mxu3 %v1080_v62  ;;  %2147 = vmatpush.msrb.mxu0 %v688_v12  ;;  %v928_v21 = vld [vmem:[#allocation5 + $0x1aa0] sm:$0xff]  ;;  %v1759_v35 = vadd.f32 %v1758_v17, %v1730_v3  ;;  %v1703_v54 = vpop.f32.mrf.mxu0  ;;  %v457_v49 = vld [vmem:[#allocation5 + $0xbe8] sm:$0xff]  ;;  %v3670_v17 = vld [vmem:[#allocation2 + $0x30] sm:$0xff] }
 0x1db   :  { %2175 = vmatpush.msrb.mxu1 %v824_v44  ;;  %2047 = vmatmul.f32.gmra.mxu0 %v3621_v45  ;;  %v1064_v26 = vld [vmem:[#allocation5 + $0x1ee0] sm:$0xff]  ;;  %v1787_v44 = vpop.f32.mrf.mxu3 }
 0x1dc   :  { %2105 = vmatmul.f32.gmra.mxu2 %v3624_v42  ;;  %2234 = vmatpush.msrb.mxu3 %v1072_v46  ;;  %v672_v41 = vld [vmem:[#allocation5 + $0x12a0] sm:$0xff]  ;;  %v1788_v40 = vadd.f32 %v1787_v44, %v1759_v35 }
 0x1dd   :  { %2206 = vmatpush.msrb.mxu2 %v936_v23  ;;  %2148 = vmatpush.msrb.mxu0 %v680_v2  ;;  %v808_v36 = vld [vmem:[#allocation5 + $0x16e0] sm:$0xff]  ;;  %v1732_v58 = vpop.f32.mrf.mxu1 }
 0x1de   :  { %2176 = vmatpush.msrb.mxu1 %v816_v48  ;;  %2134 = vmatmul.f32.gmra.mxu3 %v3631_v9  ;;  %v920_v6 = vld [vmem:[#allocation5 + $0x1a60] sm:$0xff]  ;;  %2966 = vst [vmem:[#allocation7 + $0x50] sm:$0xff] %v1788_v40 }
 0x1df   :  { %2076 = vmatmul.f32.gmra.mxu1 %v3628_v43  ;;  %v1056_v57 = vld [vmem:[#allocation5 + $0x1ea0] sm:$0xff]  ;;  %2207 = vmatpush.msrb.mxu2 %v928_v21  ;;  %v1704_v21 = vadd.f32 %v1703_v54, %v1675_v16  ;;  %v3673_v16 = vld [vmem:[#allocation2 + $0x28] sm:$0xff] }
 0x1e0   :  { %2235 = vmatpush.msrb.mxu3 %v1064_v26  ;;  %v664_v39 = vld [vmem:[#allocation5 + $0x1260] sm:$0xff]  ;;  %2149 = vmatpush.msrb.mxu0 %v672_v41  ;;  %v1761_v15 = vpop.f32.mrf.mxu2  ;;  %v577_v54 = vld [vmem:[#allocation5 + $0xfa8] sm:$0xff] }
 0x1e1   :  { %v800_v28 = vld [vmem:[#allocation5 + $0x16a0] sm:$0xff]  ;;  %2177 = vmatpush.msrb.mxu1 %v808_v36  ;;  %2208 = vmatpush.msrb.mxu2 %v920_v6  ;;  %v3656_v6 = vld [vmem:[#allocation2 + $0xd0] sm:$0xff] }
 0x1e2   :  { %v912_v29 = vld [vmem:[#allocation5 + $0x1a20] sm:$0xff]  ;;  %2236 = vmatpush.msrb.mxu3 %v1056_v57  ;;  %2150 = vmatpush.msrb.mxu0 %v664_v39  ;;  %v1649_v39 = vadd.f32 %v3608_v18, %v1620_v38 }
 0x1e3   :  { %v1048_v33 = vld [vmem:[#allocation5 + $0x1e60] sm:$0xff]  ;;  %2178 = vmatpush.msrb.mxu1 %v800_v28  ;;  %2209 = vmatpush.msrb.mxu2 %v912_v29  ;;  %v1733_v28 = vadd.f32 %v1732_v58, %v1704_v21  ;;  %v3663_v29 = vld [vmem:[#allocation2 + $0xd8] sm:$0xff] }
 0x1e4   :  { %v656_v53 = vld [vmem:[#allocation5 + $0x1220] sm:$0xff]  ;;  %2237 = vmatpush.msrb.mxu3 %v1048_v33  ;;  %2108 = vmatmul.f32.gmra.mxu2 %v3640_v0  ;;  %v1678_v22 = vadd.f32 %v3616_v4, %v1649_v39  ;;  %v1706_v11 = vpop.f32.mrf.mxu0 }
 0x1e5   :  { %v792_v59 = vld [vmem:[#allocation5 + $0x1660] sm:$0xff]  ;;  %2151 = vmatpush.msrb.mxu0 %v656_v53  ;;  %v1762_v47 = vadd.f32 %v1761_v15, %v1733_v28  ;;  %v169_v28 = vld [vmem:[#allocation5 + $0x2e8] sm:$0xff]  ;;  %v3686_v15 = vld [vmem:[#allocation2 + $0x70] sm:$0xff] }
 0x1e6   :  { %v904_v27 = vld [vmem:[#allocation5 + $0x19e0] sm:$0xff]  ;;  %2179 = vmatpush.msrb.mxu1 %v792_v59  ;;  %2137 = vmatmul.f32.gmra.mxu3 %v3647_v50  ;;  %v1790_v59 = vpop.f32.mrf.mxu3 }
 0x1e7   :  { %v1040_v30 = vld [vmem:[#allocation5 + $0x1e20] sm:$0xff]  ;;  %2210 = vmatpush.msrb.mxu2 %v904_v27  ;;  %2079 = vmatmul.f32.gmra.mxu1 %v3644_v32  ;;  %v1791_v37 = vadd.f32 %v1790_v59, %v1762_v47  ;;  %v1735_v3 = vpop.f32.mrf.mxu1  ;;  %v161_v47 = vld [vmem:[#allocation5 + $0x2a8] sm:$0xff] }
 0x1e8   :  { %v648_v34 = vld [vmem:[#allocation5 + $0x11e0] sm:$0xff]  ;;  %2238 = vmatpush.msrb.mxu3 %v1040_v30  ;;  %v3691_v59 = vld [vmem:[#allocation2 + $0x68] sm:$0xff] }
 0x1e9   :  { %v784_v25 = vld [vmem:[#allocation5 + $0x1620] sm:$0xff]  ;;  %2152 = vmatpush.msrb.mxu0 %v648_v34  ;;  %2974 = vst [vmem:[#allocation7 + $0x90] sm:$0xff] %v1791_v37  ;;  %v289_v37 = vld [vmem:[#allocation5 + $0x6a8] sm:$0xff] }
 0x1ea   :  { %v3637_v13 = vld [vmem:[#allocation2 + $0x80] sm:$0xff]  ;;  %2180 = vmatpush.msrb.mxu1 %v784_v25  ;;  %v1764_v44 = vpop.f32.mrf.mxu2 }
 0x1eb   :  { %2050 = vmatmul.f32.gmra.mxu0 %v3637_v13  ;;  %v896_v8 = vld [vmem:[#allocation5 + $0x19a0] sm:$0xff] }
 0x1ec   :  { %v1032_v14 = vld [vmem:[#allocation5 + $0x1de0] sm:$0xff]  ;;  %2211 = vmatpush.msrb.mxu2 %v896_v8  ;;  %v1707_v8 = vadd.f32 %v1706_v11, %v1678_v22  ;;  %v3694_v22 = vld [vmem:[#allocation2 + $0x78] sm:$0xff]  ;;  %v153_v11 = vld [vmem:[#allocation5 + $0x268] sm:$0xff] }
 0x1ed   :  { %v640_v24 = vld [vmem:[#allocation5 + $0x11a0] sm:$0xff]  ;;  %2239 = vmatpush.msrb.mxu3 %v1032_v14  ;;  %2111 = vmatmul.f32.gmra.mxu2 %v3656_v6 }
 0x1ee   :  { %v776_v20 = vld [vmem:[#allocation5 + $0x15e0] sm:$0xff]  ;;  %2153 = vmatpush.msrb.mxu0 %v640_v24  ;;  %2140 = vmatmul.f32.gmra.mxu3 %v3663_v29  ;;  %v201_v24 = vld [vmem:[#allocation5 + $0x3e8] sm:$0xff]  ;;  %v1736_v35 = vadd.f32 %v1735_v3, %v1707_v8  ;;  %v1793_v21 = vpop.f32.mrf.mxu3  ;;  %v3679_v38 = vpop.f32.mrf.mxu0 }
 0x1ef   :  { %v888_v51 = vld [vmem:[#allocation5 + $0x1960] sm:$0xff]  ;;  %2181 = vmatpush.msrb.mxu1 %v776_v20  ;;  %v537_v8 = vld [vmem:[#allocation5 + $0xe68] sm:$0xff] }
 0x1f0   :  { %v1024_v62 = vld [vmem:[#allocation5 + $0x1da0] sm:$0xff]  ;;  %2212 = vmatpush.msrb.mxu2 %v888_v51  ;;  %2082 = vmatmul.f32.gmra.mxu1 %v3660_v5  ;;  %v449_v51 = vld [vmem:[#allocation5 + $0xba8] sm:$0xff]  ;;  %v1765_v40 = vadd.f32 %v1764_v44, %v1736_v35 }
 0x1f1   :  { %v632_v1 = vld [vmem:[#allocation5 + $0x1160] sm:$0xff]  ;;  %2240 = vmatpush.msrb.mxu3 %v1024_v62  ;;  %v585_v62 = vld [vmem:[#allocation5 + $0xfe8] sm:$0xff]  ;;  %v3681_v39 = vpop.f32.mrf.mxu1 }
 0x1f2   :  { %v768_v12 = vld [vmem:[#allocation5 + $0x15a0] sm:$0xff]  ;;  %2154 = vmatpush.msrb.mxu0 %v632_v1  ;;  %v193_v1 = vld [vmem:[#allocation5 + $0x3a8] sm:$0xff]  ;;  %v1794_v58 = vadd.f32 %v1793_v21, %v1765_v40  ;;  %v3714_v21 = vld [vmem:[#allocation2 + $0xb8] sm:$0xff] }
 0x1f3   :  { %v880_v23 = vld [vmem:[#allocation5 + $0x1920] sm:$0xff]  ;;  %2182 = vmatpush.msrb.mxu1 %v768_v12  ;;  %v329_v12 = vld [vmem:[#allocation5 + $0x7e8] sm:$0xff] }
 0x1f4   :  { %v1016_v46 = vld [vmem:[#allocation5 + $0x1d60] sm:$0xff]  ;;  %2213 = vmatpush.msrb.mxu2 %v880_v23  ;;  %v3676_v23 = vld [vmem:[#allocation2 + $0x38] sm:$0xff]  ;;  %2982 = vst [vmem:[#allocation7 + $0xd0] sm:$0xff] %v1794_v58  ;;  %v281_v3 = vld [vmem:[#allocation5 + $0x668] sm:$0xff] }
 0x1f5   :  { %v624_v2 = vld [vmem:[#allocation5 + $0x1120] sm:$0xff]  ;;  %2241 = vmatpush.msrb.mxu3 %v1016_v46  ;;  %v441_v46 = vld [vmem:[#allocation5 + $0xb68] sm:$0xff] }
 0x1f6   :  { %v760_v48 = vld [vmem:[#allocation5 + $0x1560] sm:$0xff]  ;;  %2155 = vmatpush.msrb.mxu0 %v624_v2  ;;  %v185_v2 = vld [vmem:[#allocation5 + $0x368] sm:$0xff] }
 0x1f7   :  { %v872_v26 = vld [vmem:[#allocation5 + $0x18e0] sm:$0xff]  ;;  %2183 = vmatpush.msrb.mxu1 %v760_v48  ;;  %v321_v48 = vld [vmem:[#allocation5 + $0x7a8] sm:$0xff] }
 0x1f8   :  { %v1008_v10 = vld [vmem:[#allocation5 + $0x1d20] sm:$0xff]  ;;  %2214 = vmatpush.msrb.mxu2 %v872_v26  ;;  %v433_v26 = vld [vmem:[#allocation5 + $0xb28] sm:$0xff] }
 0x1f9   :  { %v616_v41 = vld [vmem:[#allocation5 + $0x10e0] sm:$0xff]  ;;  %2242 = vmatpush.msrb.mxu3 %v1008_v10  ;;  %v569_v10 = vld [vmem:[#allocation5 + $0xf68] sm:$0xff] }
 0x1fa   :  { %v752_v36 = vld [vmem:[#allocation5 + $0x1520] sm:$0xff]  ;;  %2156 = vmatpush.msrb.mxu0 %v616_v41  ;;  %v177_v41 = vld [vmem:[#allocation5 + $0x328] sm:$0xff] }
 0x1fb   :  { %v3653_v56 = vld [vmem:[#allocation2 + $0xc0] sm:$0xff]  ;;  %2184 = vmatpush.msrb.mxu1 %v752_v36  ;;  %v313_v36 = vld [vmem:[#allocation5 + $0x768] sm:$0xff] }
 0x1fc   :  { %2053 = vmatmul.f32.gmra.mxu0 %v3653_v56  ;;  %v864_v57 = vld [vmem:[#allocation5 + $0x18a0] sm:$0xff]  ;;  %v273_v35 = vld [vmem:[#allocation5 + $0x628] sm:$0xff] }
 0x1fd   :  { %v1000_v7 = vld [vmem:[#allocation5 + $0x1ce0] sm:$0xff]  ;;  %2215 = vmatpush.msrb.mxu2 %v864_v57  ;;  %v425_v57 = vld [vmem:[#allocation5 + $0xae8] sm:$0xff] }
 0x1fe   :  { %v608_v61 = vld [vmem:[#allocation5 + $0x10a0] sm:$0xff]  ;;  %2243 = vmatpush.msrb.mxu3 %v1000_v7  ;;  %v561_v7 = vld [vmem:[#allocation5 + $0xf28] sm:$0xff] }
 0x1ff   :  { %v744_v52 = vld [vmem:[#allocation5 + $0x14e0] sm:$0xff]  ;;  %2157 = vmatpush.msrb.mxu0 %v608_v61  ;;  %v305_v61 = vld [vmem:[#allocation5 + $0x728] sm:$0xff] }
 0x200   :  { %v856_v33 = vld [vmem:[#allocation5 + $0x1860] sm:$0xff]  ;;  %2185 = vmatpush.msrb.mxu1 %v744_v52  ;;  %v385_v44 = vld [vmem:[#allocation5 + $0x9a8] sm:$0xff] }
 0x201   :  { %v992_v19 = vld [vmem:[#allocation5 + $0x1ca0] sm:$0xff]  ;;  %2216 = vmatpush.msrb.mxu2 %v856_v33  ;;  %v417_v33 = vld [vmem:[#allocation5 + $0xaa8] sm:$0xff] }
 0x202   :  { %v600_v18 = vld [vmem:[#allocation5 + $0x1060] sm:$0xff]  ;;  %2244 = vmatpush.msrb.mxu3 %v992_v19  ;;  %v553_v19 = vld [vmem:[#allocation5 + $0xee8] sm:$0xff] }
 0x203   :  { %v736_v53 = vld [vmem:[#allocation5 + $0x14a0] sm:$0xff]  ;;  %2158 = vmatpush.msrb.mxu0 %v600_v18  ;;  %v297_v18 = vld [vmem:[#allocation5 + $0x6e8] sm:$0xff] }
 0x204   :  { %v848_v27 = vld [vmem:[#allocation5 + $0x1820] sm:$0xff]  ;;  %2186 = vmatpush.msrb.mxu1 %v736_v53  ;;  %v3689_v53 = vpop.f32.mrf.mxu2  ;;  %v265_v40 = vld [vmem:[#allocation5 + $0x5e8] sm:$0xff] }
 0x205   :  { %v984_v30 = vld [vmem:[#allocation5 + $0x1c60] sm:$0xff]  ;;  %2217 = vmatpush.msrb.mxu2 %v848_v27  ;;  %v409_v27 = vld [vmem:[#allocation5 + $0xa68] sm:$0xff] }
 0x206   :  { %v592_v34 = vld [vmem:[#allocation5 + $0x1020] sm:$0xff]  ;;  %2245 = vmatpush.msrb.mxu3 %v984_v30  ;;  %2218 = vmatmul.f32.vlgmr.msrb.gmra.mxu2 %v3670_v17  ;;  %v545_v30 = vld [vmem:[#allocation5 + $0xea8] sm:$0xff] }
 0x207   :  { %v728_v25 = vld [vmem:[#allocation5 + $0x1460] sm:$0xff]  ;;  %2159 = vmatpush.msrb.mxu0 %v592_v34  ;;  %2318 = vmatpush.msra.mxu2 %v457_v49  ;;  %v3697_v34 = vpop.f32.mrf.mxu3  ;;  %v145_v49 = vld [vmem:[#allocation5 + $0x228] sm:$0xff] }
 0x208   :  { %v976_v14 = vld [vmem:[#allocation5 + $0x1c20] sm:$0xff]  ;;  %2187 = vmatpush.msrb.mxu1 %v728_v25  ;;  %v401_v25 = vld [vmem:[#allocation5 + $0xa28] sm:$0xff] }
 0x209   :  { %v720_v4 = vld [vmem:[#allocation5 + $0x1420] sm:$0xff]  ;;  %2246 = vmatpush.msrb.mxu3 %v976_v14  ;;  %2260 = vmatpush.msra.mxu0 %v201_v24  ;;  %v3699_v14 = vpop.f32.mrf.mxu0  ;;  %v529_v24 = vld [vmem:[#allocation5 + $0xe28] sm:$0xff] }
 0x20a   :  { %v3667_v20 = vld [vmem:[#allocation2 + $0x20] sm:$0xff]  ;;  %2188 = vmatpush.msrb.mxu1 %v720_v4  ;;  %2247 = vmatmul.f32.vlgmr.msrb.gmra.mxu3 %v3676_v23  ;;  %v393_v4 = vld [vmem:[#allocation5 + $0x9e8] sm:$0xff] }
 0x20b   :  { %2160 = vmatmul.f32.vlgmr.msrb.gmra.mxu0 %v3667_v20  ;;  %2189 = vmatmul.f32.vlgmr.msrb.gmra.mxu1 %v3673_v16  ;;  %v3683_v52 = vld [vmem:[#allocation2 + $0x60] sm:$0xff]  ;;  %v121_v58 = vld [vmem:[#allocation5 + $0x168] sm:$0xff] }
 0x20c   :  { %2319 = vmatpush.msra.mxu2 %v449_v51  ;;  %2347 = vmatpush.msra.mxu3 %v585_v62  ;;  %v3701_v51 = vpop.f32.mrf.mxu1  ;;  %v137_v62 = vld [vmem:[#allocation5 + $0x1e8] sm:$0xff] }
 0x20d   :  { %2261 = vmatpush.msra.mxu0 %v193_v1  ;;  %2289 = vmatpush.msra.mxu1 %v329_v12  ;;  %v3703_v1 = vld [vmem:[#allocation2 + $0xa0] sm:$0xff]  ;;  %v3706_v12 = vld [vmem:[#allocation2 + $0xb0] sm:$0xff] }
 0x20e   :  { %2320 = vmatpush.msra.mxu2 %v441_v46  ;;  %2348 = vmatpush.msra.mxu3 %v577_v54  ;;  %v521_v46 = vld [vmem:[#allocation5 + $0xde8] sm:$0xff] }
 0x20f   :  { %2262 = vmatpush.msra.mxu0 %v185_v2  ;;  %2290 = vmatpush.msra.mxu1 %v321_v48  ;;  %v129_v54 = vld [vmem:[#allocation5 + $0x1a8] sm:$0xff]  ;;  %v3709_v2 = vpop.f32.mrf.mxu2 }
 0x210   :  { %2321 = vmatpush.msra.mxu2 %v433_v26  ;;  %2349 = vmatpush.msra.mxu3 %v569_v10  ;;  %v3711_v48 = vld [vmem:[#allocation2 + $0xa8] sm:$0xff] }
 0x211   :  { %2263 = vmatpush.msra.mxu0 %v177_v41  ;;  %2291 = vmatpush.msra.mxu1 %v313_v36  ;;  %v377_v26 = vld [vmem:[#allocation5 + $0x968] sm:$0xff]  ;;  %v3717_v36 = vpop.f32.mrf.mxu3 }
 0x212   :  { %2221 = vmatmul.f32.gmra.mxu2 %v3686_v15  ;;  %2350 = vmatpush.msra.mxu3 %v561_v7  ;;  %v513_v10 = vld [vmem:[#allocation5 + $0xda8] sm:$0xff] }
 0x213   :  { %2163 = vmatmul.f32.gmra.mxu0 %v3683_v52  ;;  %2322 = vmatpush.msra.mxu2 %v425_v57  ;;  %v257_v41 = vld [vmem:[#allocation5 + $0x5a8] sm:$0xff] }
 0x214   :  { %2264 = vmatpush.msra.mxu0 %v169_v28  ;;  %2292 = vmatpush.msra.mxu1 %v305_v61  ;;  %v369_v57 = vld [vmem:[#allocation5 + $0x928] sm:$0xff]  ;;  %v3719_v28 = vpop.f32.mrf.mxu0 }
 0x215   :  { %2192 = vmatmul.f32.gmra.mxu1 %v3691_v59  ;;  %2250 = vmatmul.f32.gmra.mxu3 %v3694_v22  ;;  %v505_v7 = vld [vmem:[#allocation5 + $0xd68] sm:$0xff] }
 0x216   :  { %2323 = vmatpush.msra.mxu2 %v417_v33  ;;  %2351 = vmatpush.msra.mxu3 %v553_v19  ;;  %v113_v61 = vld [vmem:[#allocation5 + $0x128] sm:$0xff] }
 0x217   :  { %2265 = vmatpush.msra.mxu0 %v161_v47  ;;  %2293 = vmatpush.msra.mxu1 %v297_v18  ;;  %v249_v33 = vld [vmem:[#allocation5 + $0x568] sm:$0xff]  ;;  %v3721_v18 = vpop.f32.mrf.mxu1 }
 0x218   :  { %2324 = vmatpush.msra.mxu2 %v409_v27  ;;  %2352 = vmatpush.msra.mxu3 %v545_v30  ;;  %v361_v19 = vld [vmem:[#allocation5 + $0x8e8] sm:$0xff] }
 0x219   :  { %2266 = vmatpush.msra.mxu0 %v153_v11  ;;  %2294 = vmatpush.msra.mxu1 %v289_v37  ;;  %v497_v47 = vld [vmem:[#allocation5 + $0xd28] sm:$0xff]  ;;  %v3723_v11 = vld [vmem:[#allocation2 + $0xe0] sm:$0xff]  ;;  %v3726_v37 = vld [vmem:[#allocation2 + $0xf0] sm:$0xff] }
 0x21a   :  { %2325 = vmatpush.msra.mxu2 %v401_v25  ;;  %2353 = vmatpush.msra.mxu3 %v537_v8  ;;  %v105_v27 = vld [vmem:[#allocation5 + $0xe8] sm:$0xff] }
 0x21b   :  { %2267 = vmatpush.msra.mxu0 %v145_v49  ;;  %2295 = vmatpush.msra.mxu1 %v281_v3  ;;  %v241_v30 = vld [vmem:[#allocation5 + $0x528] sm:$0xff] }
 0x21c   :  { %2166 = vmatmul.f32.gmra.mxu0 %v3703_v1  ;;  %2224 = vmatmul.f32.gmra.mxu2 %v3706_v12  ;;  %v353_v25 = vld [vmem:[#allocation5 + $0x8a8] sm:$0xff] }
 0x21d   :  { %2326 = vmatpush.msra.mxu2 %v393_v4  ;;  %2354 = vmatpush.msra.mxu3 %v529_v24  ;;  %v489_v8 = vld [vmem:[#allocation5 + $0xce8] sm:$0xff]  ;;  %v3729_v4 = vpop.f32.mrf.mxu2 }
 0x21e   :  { %2268 = vmatpush.msra.mxu0 %v137_v62  ;;  %2296 = vmatpush.msra.mxu1 %v273_v35  ;;  %v97_v49 = vld [vmem:[#allocation5 + $0xa8] sm:$0xff]  ;;  %v3734_v62 = vld [vmem:[#allocation2 + $0xf8] sm:$0xff] }
 0x21f   :  { %2195 = vmatmul.f32.gmra.mxu1 %v3711_v48  ;;  %2253 = vmatmul.f32.gmra.mxu3 %v3714_v21  ;;  %v233_v3 = vld [vmem:[#allocation5 + $0x4e8] sm:$0xff] }
 0x220   :  { %2327 = vmatpush.msra.mxu2 %v385_v44  ;;  %2355 = vmatpush.msra.mxu3 %v521_v46  ;;  %v3731_v24 = vld [vmem:[#allocation2 + $0xe8] sm:$0xff] }
 0x221   :  { %2269 = vmatpush.msra.mxu0 %v129_v54  ;;  %2297 = vmatpush.msra.mxu1 %v265_v40  ;;  %v345_v35 = vld [vmem:[#allocation5 + $0x868] sm:$0xff]  ;;  %v3737_v40 = vpop.f32.mrf.mxu3 }
 0x222   :  { %2328 = vmatpush.msra.mxu2 %v377_v26  ;;  %2356 = vmatpush.msra.mxu3 %v513_v10  ;;  %v481_v44 = vld [vmem:[#allocation5 + $0xca8] sm:$0xff] }
 0x223   :  { %2270 = vmatpush.msra.mxu0 %v121_v58  ;;  %2298 = vmatpush.msra.mxu1 %v257_v41  ;;  %v89_v46 = vld [vmem:[#allocation5 + $0x68] sm:$0xff]  ;;  %v3739_v58 = vpop.f32.mrf.mxu0 }
 0x224   :  { %2329 = vmatpush.msra.mxu2 %v369_v57  ;;  %2357 = vmatpush.msra.mxu3 %v505_v7  ;;  %v225_v54 = vld [vmem:[#allocation5 + $0x4a8] sm:$0xff] }
 0x225   :  { %2271 = vmatpush.msra.mxu0 %v113_v61  ;;  %2299 = vmatpush.msra.mxu1 %v249_v33  ;;  %v337_v26 = vld [vmem:[#allocation5 + $0x828] sm:$0xff]  ;;  %v3741_v33 = vpop.f32.mrf.mxu1 }
 0x226   :  { %2169 = vmatmul.f32.gmra.mxu0 %v3723_v11  ;;  %2227 = vmatmul.f32.gmra.mxu2 %v3726_v37  ;;  %v473_v10 = vld [vmem:[#allocation5 + $0xc68] sm:$0xff] }
 0x227   :  { %2330 = vmatpush.msra.mxu2 %v361_v19  ;;  %2358 = vmatpush.msra.mxu3 %v497_v47  ;;  %v81_v41 = vld [vmem:[#allocation5 + $0x28] sm:$0xff]  ;;  %v1843_v19 = vadd.f32 %v3681_v39, %v3679_v38 }
 0x228   :  { %2272 = vmatpush.msra.mxu0 %v105_v27  ;;  %2300 = vmatpush.msra.mxu1 %v241_v30  ;;  %v217_v57 = vld [vmem:[#allocation5 + $0x468] sm:$0xff] }
 0x229   :  { %2198 = vmatmul.f32.gmra.mxu1 %v3731_v24  ;;  %2256 = vmatmul.f32.gmra.mxu3 %v3734_v62  ;;  %v465_v7 = vld [vmem:[#allocation5 + $0xc28] sm:$0xff] }
 0x22a   :  { %2331 = vmatpush.msra.mxu2 %v353_v25  ;;  %2359 = vmatpush.msra.mxu3 %v489_v8  ;;  %v969_v61 = vld [vmem:[#allocation5 + $0x1be8] sm:$0xff]  ;;  %v1872_v8 = vadd.f32 %v3689_v53, %v1843_v19 }
 0x22b   :  { %2273 = vmatpush.msra.mxu0 %v97_v49  ;;  %2301 = vmatpush.msra.mxu1 %v233_v3  ;;  %v209_v47 = vld [vmem:[#allocation5 + $0x428] sm:$0xff] }
 0x22c   :  { %2332 = vmatpush.msra.mxu2 %v345_v35  ;;  %2360 = vmatpush.msra.mxu3 %v481_v44  ;;  %v713_v27 = vld [vmem:[#allocation5 + $0x13e8] sm:$0xff]  ;;  %v3748_v35 = vpop.f32.mrf.mxu2  ;;  %v3752_v44 = vpop.f32.mrf.mxu3  ;;  %v1901_v53 = vadd.f32 %v3697_v34, %v1872_v8 }
 0x22d   :  { %2274 = vmatpush.msra.mxu0 %v89_v46  ;;  %2302 = vmatpush.msra.mxu1 %v225_v54  ;;  %v961_v30 = vld [vmem:[#allocation5 + $0x1ba8] sm:$0xff] }
 0x22e   :  { %2333 = vmatpush.msra.mxu2 %v337_v26  ;;  %2361 = vmatpush.msra.mxu3 %v473_v10  ;;  %v1097_v25 = vld [vmem:[#allocation5 + $0x1fe8] sm:$0xff]  ;;  %v1929_v26 = vpop.f32.mrf.mxu0 }
 0x22f   :  { %2275 = vmatpush.msra.mxu0 %v81_v41  ;;  %2303 = vmatpush.msra.mxu1 %v217_v57  ;;  %v705_v49 = vld [vmem:[#allocation5 + $0x13a8] sm:$0xff] }
 0x230   :  { %2276 = vmatmul.f32.vlgmr.msra.gmra.mxu0 %v3601_v55  ;;  %2334 = vmatmul.f32.vlgmr.msra.gmra.mxu2 %v3604_v63  ;;  %v841_v3 = vld [vmem:[#allocation5 + $0x17e8] sm:$0xff] }
 0x231   :  { %2362 = vmatpush.msra.mxu3 %v465_v7  ;;  %2434 = vmatpush.msrb.mxu2 %v969_v61  ;;  %v953_v38 = vld [vmem:[#allocation5 + $0x1b68] sm:$0xff]  ;;  %v1958_v7 = vpop.f32.mrf.mxu1  ;;  %v1846_v61 = vadd.f32 %v3701_v51, %v3699_v14 }
 0x232   :  { %2304 = vmatpush.msra.mxu1 %v209_v47  ;;  %2376 = vmatpush.msrb.mxu0 %v713_v27  ;;  %v1089_v55 = vld [vmem:[#allocation5 + $0x1fa8] sm:$0xff] }
 0x233   :  { %2305 = vmatmul.f32.vlgmr.msra.gmra.mxu1 %v3610_v31  ;;  %2363 = vmatmul.f32.vlgmr.msra.gmra.mxu3 %v3613_v60  ;;  %v697_v63 = vld [vmem:[#allocation5 + $0x1368] sm:$0xff]  ;;  %v1930_v60 = vadd.f32 %v1929_v26, %v1901_v53 }
 0x234   :  { %2435 = vmatpush.msrb.mxu2 %v961_v30  ;;  %2463 = vmatpush.msrb.mxu3 %v1097_v25  ;;  %v833_v39 = vld [vmem:[#allocation5 + $0x17a8] sm:$0xff]  ;;  %v1875_v30 = vadd.f32 %v3709_v2, %v1846_v61  ;;  %v1987_v14 = vpop.f32.mrf.mxu2 }
 0x235   :  { %2377 = vmatpush.msrb.mxu0 %v705_v49  ;;  %2405 = vmatpush.msrb.mxu1 %v841_v3  ;;  %v945_v46 = vld [vmem:[#allocation5 + $0x1b28] sm:$0xff]  ;;  %v1959_v25 = vadd.f32 %v1958_v7, %v1930_v60 }
 0x236   :  { %v1081_v54 = vld [vmem:[#allocation5 + $0x1f68] sm:$0xff]  ;;  %2436 = vmatpush.msrb.mxu2 %v953_v38  ;;  %2464 = vmatpush.msrb.mxu3 %v1089_v55  ;;  %v2016_v55 = vpop.f32.mrf.mxu3  ;;  %v1904_v2 = vadd.f32 %v3717_v36, %v1875_v30  ;;  %v1932_v53 = vpop.f32.mrf.mxu0  ;;  %v1849_v36 = vadd.f32 %v3721_v18, %v3719_v28 }
 0x237   :  { %v689_v31 = vld [vmem:[#allocation5 + $0x1328] sm:$0xff]  ;;  %2378 = vmatpush.msrb.mxu0 %v697_v63  ;;  %2406 = vmatpush.msrb.mxu1 %v833_v39  ;;  %v1988_v3 = vadd.f32 %v1987_v14, %v1959_v25 }
 0x238   :  { %v825_v10 = vld [vmem:[#allocation5 + $0x1768] sm:$0xff]  ;;  %2437 = vmatpush.msrb.mxu2 %v945_v46  ;;  %2465 = vmatpush.msrb.mxu3 %v1081_v54  ;;  %v1933_v54 = vadd.f32 %v1932_v53, %v1904_v2  ;;  %v1878_v61 = vadd.f32 %v3729_v4, %v1849_v36 }
 0x239   :  { %v937_v41 = vld [vmem:[#allocation5 + $0x1ae8] sm:$0xff]  ;;  %2379 = vmatpush.msrb.mxu0 %v689_v31  ;;  %2407 = vmatpush.msrb.mxu1 %v825_v10  ;;  %v2017_v46 = vadd.f32 %v2016_v55, %v1988_v3  ;;  %v1961_v10 = vpop.f32.mrf.mxu1 }
 0x23a   :  { %v1073_v57 = vld [vmem:[#allocation5 + $0x1f28] sm:$0xff]  ;;  %2279 = vmatmul.f32.gmra.mxu0 %v3621_v45  ;;  %2337 = vmatmul.f32.gmra.mxu2 %v3624_v42  ;;  %v1907_v4 = vadd.f32 %v3737_v40, %v1878_v61  ;;  %v1852_v40 = vadd.f32 %v3741_v33, %v3739_v58  ;;  %v458_v61 = vld [vmem:[#allocation5 + $0xbf0] sm:$0xff] }
 0x23b   :  { %v681_v34 = vld [vmem:[#allocation5 + $0x12e8] sm:$0xff]  ;;  %2438 = vmatpush.msrb.mxu2 %v937_v41  ;;  %2466 = vmatpush.msrb.mxu3 %v1073_v57  ;;  %2959 = vst [vmem:[#allocation7 + $0x18] sm:$0xff] %v2017_v46 }
 0x23c   :  { %v817_v19 = vld [vmem:[#allocation5 + $0x1728] sm:$0xff]  ;;  %2380 = vmatpush.msrb.mxu0 %v681_v34  ;;  %2308 = vmatmul.f32.gmra.mxu1 %v3628_v43  ;;  %v1962_v34 = vadd.f32 %v1961_v10, %v1933_v54  ;;  %v1990_v28 = vpop.f32.mrf.mxu2  ;;  %v1881_v53 = vadd.f32 %v3748_v35, %v1852_v40  ;;  %v418_v40 = vld [vmem:[#allocation5 + $0xab0] sm:$0xff] }
 0x23d   :  { %v929_v47 = vld [vmem:[#allocation5 + $0x1aa8] sm:$0xff]  ;;  %2408 = vmatpush.msrb.mxu1 %v817_v19  ;;  %2366 = vmatmul.f32.gmra.mxu3 %v3631_v9 }
 0x23e   :  { %v1065_v27 = vld [vmem:[#allocation5 + $0x1ee8] sm:$0xff]  ;;  %2439 = vmatpush.msrb.mxu2 %v929_v47  ;;  %v2019_v25 = vpop.f32.mrf.mxu3  ;;  %v1935_v14 = vpop.f32.mrf.mxu0  ;;  %v1910_v35 = vadd.f32 %v3752_v44, %v1881_v53  ;;  %v410_v53 = vld [vmem:[#allocation5 + $0xa70] sm:$0xff] }
 0x23f   :  { %v673_v8 = vld [vmem:[#allocation5 + $0x12a8] sm:$0xff]  ;;  %2467 = vmatpush.msrb.mxu3 %v1065_v27  ;;  %v1991_v27 = vadd.f32 %v1990_v28, %v1962_v34  ;;  %v586_v28 = vld [vmem:[#allocation5 + $0xff0] sm:$0xff] }
 0x240   :  { %v809_v49 = vld [vmem:[#allocation5 + $0x16e8] sm:$0xff]  ;;  %2381 = vmatpush.msrb.mxu0 %v673_v8 }
 0x241   :  { %v921_v51 = vld [vmem:[#allocation5 + $0x1a68] sm:$0xff]  ;;  %2409 = vmatpush.msrb.mxu1 %v809_v49 }
 0x242   :  { %v1057_v45 = vld [vmem:[#allocation5 + $0x1ea8] sm:$0xff]  ;;  %2440 = vmatpush.msrb.mxu2 %v921_v51  ;;  %2282 = vmatmul.f32.gmra.mxu0 %v3637_v13  ;;  %v2020_v51 = vadd.f32 %v2019_v25, %v1991_v27  ;;  %v330_v27 = vld [vmem:[#allocation5 + $0x7f0] sm:$0xff] }
 0x243   :  { %v665_v42 = vld [vmem:[#allocation5 + $0x1268] sm:$0xff]  ;;  %2468 = vmatpush.msrb.mxu3 %v1057_v45  ;;  %2340 = vmatmul.f32.gmra.mxu2 %v3640_v0  ;;  %v1936_v45 = vadd.f32 %v1935_v14, %v1907_v4  ;;  %v578_v25 = vld [vmem:[#allocation5 + $0xfb0] sm:$0xff] }
 0x244   :  { %v801_v38 = vld [vmem:[#allocation5 + $0x16a8] sm:$0xff]  ;;  %2382 = vmatpush.msrb.mxu0 %v665_v42  ;;  %2311 = vmatmul.f32.gmra.mxu1 %v3644_v32  ;;  %2967 = vst [vmem:[#allocation7 + $0x58] sm:$0xff] %v2020_v51  ;;  %v1993_v58 = vpop.f32.mrf.mxu2  ;;  %v570_v14 = vld [vmem:[#allocation5 + $0xf70] sm:$0xff] }
 0x245   :  { %v913_v63 = vld [vmem:[#allocation5 + $0x1a28] sm:$0xff]  ;;  %2410 = vmatpush.msrb.mxu1 %v801_v38  ;;  %2369 = vmatmul.f32.gmra.mxu3 %v3647_v50  ;;  %v1964_v38 = vpop.f32.mrf.mxu1 }
 0x246   :  { %v1049_v39 = vld [vmem:[#allocation5 + $0x1e68] sm:$0xff]  ;;  %2441 = vmatpush.msrb.mxu2 %v913_v63  ;;  %v1965_v46 = vadd.f32 %v1964_v38, %v1936_v45  ;;  %v562_v45 = vld [vmem:[#allocation5 + $0xf30] sm:$0xff] }
 0x247   :  { %v657_v43 = vld [vmem:[#allocation5 + $0x1228] sm:$0xff]  ;;  %2469 = vmatpush.msrb.mxu3 %v1049_v39  ;;  %v306_v38 = vld [vmem:[#allocation5 + $0x730] sm:$0xff] }
 0x248   :  { %v793_v9 = vld [vmem:[#allocation5 + $0x1668] sm:$0xff]  ;;  %2383 = vmatpush.msrb.mxu0 %v657_v43  ;;  %v1994_v54 = vadd.f32 %v1993_v58, %v1965_v46  ;;  %v546_v46 = vld [vmem:[#allocation5 + $0xeb0] sm:$0xff] }
 0x249   :  { %v905_v26 = vld [vmem:[#allocation5 + $0x19e8] sm:$0xff]  ;;  %2411 = vmatpush.msrb.mxu1 %v793_v9  ;;  %v538_v58 = vld [vmem:[#allocation5 + $0xe70] sm:$0xff] }
 0x24a   :  { %v1041_v31 = vld [vmem:[#allocation5 + $0x1e28] sm:$0xff]  ;;  %2442 = vmatpush.msrb.mxu2 %v905_v26  ;;  %2285 = vmatmul.f32.gmra.mxu0 %v3653_v56 }
 0x24b   :  { %v649_v60 = vld [vmem:[#allocation5 + $0x11e8] sm:$0xff]  ;;  %2470 = vmatpush.msrb.mxu3 %v1041_v31  ;;  %2343 = vmatmul.f32.gmra.mxu2 %v3656_v6  ;;  %v2022_v31 = vpop.f32.mrf.mxu3 }
 0x24c   :  { %v785_v41 = vld [vmem:[#allocation5 + $0x1628] sm:$0xff]  ;;  %2384 = vmatpush.msrb.mxu0 %v649_v60  ;;  %2314 = vmatmul.f32.gmra.mxu1 %v3660_v5  ;;  %v1938_v60 = vpop.f32.mrf.mxu0 }
 0x24d   :  { %v897_v57 = vld [vmem:[#allocation5 + $0x19a8] sm:$0xff]  ;;  %2412 = vmatpush.msrb.mxu1 %v785_v41  ;;  %2372 = vmatmul.f32.gmra.mxu3 %v3663_v29  ;;  %v2023_v41 = vadd.f32 %v2022_v31, %v1994_v54  ;;  %v1967_v34 = vpop.f32.mrf.mxu1  ;;  %v530_v54 = vld [vmem:[#allocation5 + $0xe30] sm:$0xff] }
 0x24e   :  { %v1033_v7 = vld [vmem:[#allocation5 + $0x1de8] sm:$0xff]  ;;  %2443 = vmatpush.msrb.mxu2 %v897_v57  ;;  %v1939_v57 = vadd.f32 %v1938_v60, %v1910_v35  ;;  %v274_v31 = vld [vmem:[#allocation5 + $0x630] sm:$0xff] }
 0x24f   :  { %v641_v19 = vld [vmem:[#allocation5 + $0x11a8] sm:$0xff]  ;;  %2471 = vmatpush.msrb.mxu3 %v1033_v7  ;;  %2975 = vst [vmem:[#allocation7 + $0x98] sm:$0xff] %v2023_v41  ;;  %v386_v35 = vld [vmem:[#allocation5 + $0x9b0] sm:$0xff] }
 0x250   :  { %v777_v47 = vld [vmem:[#allocation5 + $0x15e8] sm:$0xff]  ;;  %2385 = vmatpush.msrb.mxu0 %v641_v19  ;;  %v202_v19 = vld [vmem:[#allocation5 + $0x3f0] sm:$0xff] }
 0x251   :  { %v889_v18 = vld [vmem:[#allocation5 + $0x1968] sm:$0xff]  ;;  %2413 = vmatpush.msrb.mxu1 %v777_v47  ;;  %v450_v47 = vld [vmem:[#allocation5 + $0xbb0] sm:$0xff] }
 0x252   :  { %v1025_v13 = vld [vmem:[#allocation5 + $0x1da8] sm:$0xff]  ;;  %2444 = vmatpush.msrb.mxu2 %v889_v18  ;;  %v1968_v18 = vadd.f32 %v1967_v34, %v1939_v57  ;;  %v266_v60 = vld [vmem:[#allocation5 + $0x5f0] sm:$0xff] }
 0x253   :  { %v633_v0 = vld [vmem:[#allocation5 + $0x1168] sm:$0xff]  ;;  %2472 = vmatpush.msrb.mxu3 %v1025_v13  ;;  %v194_v13 = vld [vmem:[#allocation5 + $0x3b0] sm:$0xff] }
 0x254   :  { %v769_v30 = vld [vmem:[#allocation5 + $0x15a8] sm:$0xff]  ;;  %2386 = vmatpush.msrb.mxu0 %v633_v0  ;;  %v1996_v0 = vpop.f32.mrf.mxu2 }
 0x255   :  { %v881_v8 = vld [vmem:[#allocation5 + $0x1928] sm:$0xff]  ;;  %2414 = vmatpush.msrb.mxu1 %v769_v30  ;;  %v442_v30 = vld [vmem:[#allocation5 + $0xb70] sm:$0xff]  ;;  %v1997_v4 = vadd.f32 %v1996_v0, %v1968_v18 }
 0x256   :  { %v1017_v49 = vld [vmem:[#allocation5 + $0x1d68] sm:$0xff]  ;;  %2445 = vmatpush.msrb.mxu2 %v881_v8  ;;  %v2025_v8 = vpop.f32.mrf.mxu3  ;;  %v242_v18 = vld [vmem:[#allocation5 + $0x530] sm:$0xff] }
 0x257   :  { %v625_v32 = vld [vmem:[#allocation5 + $0x1128] sm:$0xff]  ;;  %2473 = vmatpush.msrb.mxu3 %v1017_v49  ;;  %v434_v49 = vld [vmem:[#allocation5 + $0xb30] sm:$0xff]  ;;  %v2026_v51 = vadd.f32 %v2025_v8, %v1997_v4 }
 0x258   :  { %v761_v50 = vld [vmem:[#allocation5 + $0x1568] sm:$0xff]  ;;  %2387 = vmatpush.msrb.mxu0 %v625_v32  ;;  %v3783_v32 = vpop.f32.mrf.mxu0  ;;  %v98_v0 = vld [vmem:[#allocation5 + $0xb0] sm:$0xff] }
 0x259   :  { %v873_v3 = vld [vmem:[#allocation5 + $0x18e8] sm:$0xff]  ;;  %2415 = vmatpush.msrb.mxu1 %v761_v50  ;;  %v314_v50 = vld [vmem:[#allocation5 + $0x770] sm:$0xff]  ;;  %2983 = vst [vmem:[#allocation7 + $0xd8] sm:$0xff] %v2026_v51 }
 0x25a   :  { %v1009_v42 = vld [vmem:[#allocation5 + $0x1d28] sm:$0xff]  ;;  %2446 = vmatpush.msrb.mxu2 %v873_v3  ;;  %v3785_v3 = vpop.f32.mrf.mxu1  ;;  %v346_v4 = vld [vmem:[#allocation5 + $0x870] sm:$0xff] }
 0x25b   :  { %v617_v55 = vld [vmem:[#allocation5 + $0x10e8] sm:$0xff]  ;;  %2474 = vmatpush.msrb.mxu3 %v1009_v42  ;;  %v170_v42 = vld [vmem:[#allocation5 + $0x2f0] sm:$0xff] }
 0x25c   :  { %v753_v2 = vld [vmem:[#allocation5 + $0x1528] sm:$0xff]  ;;  %2388 = vmatpush.msrb.mxu0 %v617_v55  ;;  %v554_v55 = vld [vmem:[#allocation5 + $0xef0] sm:$0xff] }
 0x25d   :  { %v865_v63 = vld [vmem:[#allocation5 + $0x18a8] sm:$0xff]  ;;  %2416 = vmatpush.msrb.mxu1 %v753_v2  ;;  %v162_v2 = vld [vmem:[#allocation5 + $0x2b0] sm:$0xff] }
 0x25e   :  { %v1001_v39 = vld [vmem:[#allocation5 + $0x1ce8] sm:$0xff]  ;;  %2447 = vmatpush.msrb.mxu2 %v865_v63  ;;  %v298_v63 = vld [vmem:[#allocation5 + $0x6f0] sm:$0xff] }
 0x25f   :  { %v609_v43 = vld [vmem:[#allocation5 + $0x10a8] sm:$0xff]  ;;  %2475 = vmatpush.msrb.mxu3 %v1001_v39  ;;  %v3789_v39 = vpop.f32.mrf.mxu2  ;;  %v338_v8 = vld [vmem:[#allocation5 + $0x830] sm:$0xff] }
 0x260   :  { %v745_v9 = vld [vmem:[#allocation5 + $0x14e8] sm:$0xff]  ;;  %2389 = vmatpush.msrb.mxu0 %v609_v43  ;;  %v3793_v43 = vpop.f32.mrf.mxu3  ;;  %v82_v51 = vld [vmem:[#allocation5 + $0x30] sm:$0xff] }
 0x261   :  { %v857_v33 = vld [vmem:[#allocation5 + $0x1868] sm:$0xff]  ;;  %2417 = vmatpush.msrb.mxu1 %v745_v9  ;;  %v402_v9 = vld [vmem:[#allocation5 + $0xa30] sm:$0xff] }
 0x262   :  { %v993_v56 = vld [vmem:[#allocation5 + $0x1ca8] sm:$0xff]  ;;  %2448 = vmatpush.msrb.mxu2 %v857_v33  ;;  %v3795_v33 = vpop.f32.mrf.mxu0 }
 0x263   :  { %v601_v6 = vld [vmem:[#allocation5 + $0x1068] sm:$0xff]  ;;  %2476 = vmatpush.msrb.mxu3 %v993_v56  ;;  %v146_v56 = vld [vmem:[#allocation5 + $0x230] sm:$0xff] }
 0x264   :  { %v737_v26 = vld [vmem:[#allocation5 + $0x14a8] sm:$0xff]  ;;  %2390 = vmatpush.msrb.mxu0 %v601_v6  ;;  %v3797_v6 = vpop.f32.mrf.mxu1 }
 0x265   :  { %v849_v10 = vld [vmem:[#allocation5 + $0x1828] sm:$0xff]  ;;  %2418 = vmatpush.msrb.mxu1 %v737_v26  ;;  %v138_v26 = vld [vmem:[#allocation5 + $0x1f0] sm:$0xff] }
 0x266   :  { %v985_v36 = vld [vmem:[#allocation5 + $0x1c68] sm:$0xff]  ;;  %2449 = vmatpush.msrb.mxu2 %v849_v10  ;;  %v522_v10 = vld [vmem:[#allocation5 + $0xdf0] sm:$0xff] }
 0x267   :  { %v593_v5 = vld [vmem:[#allocation5 + $0x1028] sm:$0xff]  ;;  %2477 = vmatpush.msrb.mxu3 %v985_v36  ;;  %2450 = vmatmul.f32.vlgmr.msrb.gmra.mxu2 %v3670_v17  ;;  %v322_v17 = vld [vmem:[#allocation5 + $0x7b0] sm:$0xff]  ;;  %v3801_v41 = vpop.f32.mrf.mxu2 }
 0x268   :  { %v729_v29 = vld [vmem:[#allocation5 + $0x1468] sm:$0xff]  ;;  %2391 = vmatpush.msrb.mxu0 %v593_v5  ;;  %2550 = vmatpush.msra.mxu2 %v458_v61  ;;  %v130_v36 = vld [vmem:[#allocation5 + $0x1b0] sm:$0xff]  ;;  %v3805_v57 = vpop.f32.mrf.mxu3 }
 0x269   :  { %v977_v7 = vld [vmem:[#allocation5 + $0x1c28] sm:$0xff]  ;;  %2419 = vmatpush.msrb.mxu1 %v729_v29  ;;  %2392 = vmatmul.f32.vlgmr.msrb.gmra.mxu0 %v3667_v20  ;;  %v186_v20 = vld [vmem:[#allocation5 + $0x370] sm:$0xff] }
 0x26a   :  { %v721_v44 = vld [vmem:[#allocation5 + $0x1428] sm:$0xff]  ;;  %2478 = vmatpush.msrb.mxu3 %v977_v7  ;;  %2492 = vmatpush.msra.mxu0 %v202_v19  ;;  %v378_v5 = vld [vmem:[#allocation5 + $0x970] sm:$0xff]  ;;  %v3807_v34 = vpop.f32.mrf.mxu0 }
 0x26b   :  { %2420 = vmatpush.msrb.mxu1 %v721_v44  ;;  %2479 = vmatmul.f32.vlgmr.msrb.gmra.mxu3 %v3676_v23  ;;  %v426_v23 = vld [vmem:[#allocation5 + $0xaf0] sm:$0xff] }
 0x26c   :  { %2421 = vmatmul.f32.vlgmr.msrb.gmra.mxu1 %v3673_v16  ;;  %2551 = vmatpush.msra.mxu2 %v450_v47  ;;  %v178_v16 = vld [vmem:[#allocation5 + $0x330] sm:$0xff]  ;;  %v3809_v47 = vpop.f32.mrf.mxu1 }
 0x26d   :  { %2579 = vmatpush.msra.mxu3 %v586_v28  ;;  %2493 = vmatpush.msra.mxu0 %v194_v13  ;;  %v514_v29 = vld [vmem:[#allocation5 + $0xdb0] sm:$0xff] }
 0x26e   :  { %2521 = vmatpush.msra.mxu1 %v330_v27  ;;  %2552 = vmatpush.msra.mxu2 %v442_v30  ;;  %v370_v7 = vld [vmem:[#allocation5 + $0x930] sm:$0xff] }
 0x26f   :  { %2580 = vmatpush.msra.mxu3 %v578_v25  ;;  %2494 = vmatpush.msra.mxu0 %v186_v20  ;;  %v506_v61 = vld [vmem:[#allocation5 + $0xd70] sm:$0xff]  ;;  %v3813_v25 = vpop.f32.mrf.mxu2 }
 0x270   :  { %2522 = vmatpush.msra.mxu1 %v322_v17  ;;  %2553 = vmatpush.msra.mxu2 %v434_v49  ;;  %v114_v44 = vld [vmem:[#allocation5 + $0x130] sm:$0xff]  ;;  %v3817_v17 = vpop.f32.mrf.mxu3 }
 0x271   :  { %2581 = vmatpush.msra.mxu3 %v570_v14  ;;  %2495 = vmatpush.msra.mxu0 %v178_v16  ;;  %v498_v19 = vld [vmem:[#allocation5 + $0xd30] sm:$0xff] }
 0x272   :  { %2523 = vmatpush.msra.mxu1 %v314_v50  ;;  %2395 = vmatmul.f32.gmra.mxu0 %v3683_v52  ;;  %v154_v52 = vld [vmem:[#allocation5 + $0x270] sm:$0xff] }
 0x273   :  { %2453 = vmatmul.f32.gmra.mxu2 %v3686_v15  ;;  %2582 = vmatpush.msra.mxu3 %v562_v45  ;;  %v290_v15 = vld [vmem:[#allocation5 + $0x6b0] sm:$0xff] }
 0x274   :  { %2554 = vmatpush.msra.mxu2 %v426_v23  ;;  %2496 = vmatpush.msra.mxu0 %v170_v42  ;;  %v106_v28 = vld [vmem:[#allocation5 + $0xf0] sm:$0xff]  ;;  %v3821_v50 = vpop.f32.mrf.mxu1  ;;  %v2075_v23 = vadd.f32 %v3785_v3, %v3783_v32 }
 0x275   :  { %2524 = vmatpush.msra.mxu1 %v306_v38  ;;  %2482 = vmatmul.f32.gmra.mxu3 %v3694_v22  ;;  %v394_v22 = vld [vmem:[#allocation5 + $0x9f0] sm:$0xff]  ;;  %v3825_v38 = vld [vmem:[#allocation2] sm:$0xff] }
 0x276   :  { %2424 = vmatmul.f32.gmra.mxu1 %v3691_v59  ;;  %2555 = vmatpush.msra.mxu2 %v418_v40  ;;  %v282_v59 = vld [vmem:[#allocation5 + $0x670] sm:$0xff] }
 0x277   :  { %2583 = vmatpush.msra.mxu3 %v554_v55  ;;  %2497 = vmatpush.msra.mxu0 %v162_v2  ;;  %v354_v13 = vld [vmem:[#allocation5 + $0x8b0] sm:$0xff] }
 0x278   :  { %2525 = vmatpush.msra.mxu1 %v298_v63  ;;  %2556 = vmatpush.msra.mxu2 %v410_v53  ;;  %v490_v27 = vld [vmem:[#allocation5 + $0xcf0] sm:$0xff]  ;;  %v2104_v63 = vadd.f32 %v3789_v39, %v2075_v23  ;;  %v3832_v53 = vpop.f32.mrf.mxu2 }
 0x279   :  { %2584 = vmatpush.msra.mxu3 %v546_v46  ;;  %2498 = vmatpush.msra.mxu0 %v154_v52  ;;  %v234_v30 = vld [vmem:[#allocation5 + $0x4f0] sm:$0xff]  ;;  %v3819_v14 = vpop.f32.mrf.mxu0  ;;  %v3834_v46 = vld [vmem:[#allocation2 + $0x8] sm:$0xff]  ;;  %v3837_v52 = vld [vmem:[#allocation2 + $0x18] sm:$0xff] }
 0x27a   :  { %2526 = vmatpush.msra.mxu1 %v290_v15  ;;  %2557 = vmatpush.msra.mxu2 %v402_v9  ;;  %v482_v20 = vld [vmem:[#allocation5 + $0xcb0] sm:$0xff] }
 0x27b   :  { %2585 = vmatpush.msra.mxu3 %v538_v58  ;;  %2499 = vmatpush.msra.mxu0 %v146_v56  ;;  %v474_v49 = vld [vmem:[#allocation5 + $0xc70] sm:$0xff]  ;;  %v3840_v56 = vpop.f32.mrf.mxu3 }
 0x27c   :  { %2527 = vmatpush.msra.mxu1 %v282_v59  ;;  %2398 = vmatmul.f32.gmra.mxu0 %v3703_v1  ;;  %v122_v1 = vld [vmem:[#allocation5 + $0x170] sm:$0xff]  ;;  %v2133_v59 = vadd.f32 %v3793_v43, %v2104_v63 }
 0x27d   :  { %2456 = vmatmul.f32.gmra.mxu2 %v3706_v12  ;;  %2586 = vmatpush.msra.mxu3 %v530_v54  ;;  %v258_v12 = vld [vmem:[#allocation5 + $0x5b0] sm:$0xff] }
 0x27e   :  { %2558 = vmatpush.msra.mxu2 %v394_v22  ;;  %2500 = vmatpush.msra.mxu0 %v138_v26  ;;  %v970_v16 = vld [vmem:[#allocation5 + $0x1bf0] sm:$0xff] }
 0x27f   :  { %2528 = vmatpush.msra.mxu1 %v274_v31  ;;  %2485 = vmatmul.f32.gmra.mxu3 %v3714_v21  ;;  %v362_v21 = vld [vmem:[#allocation5 + $0x8f0] sm:$0xff] }
 0x280   :  { %2427 = vmatmul.f32.gmra.mxu1 %v3711_v48  ;;  %2559 = vmatpush.msra.mxu2 %v386_v35  ;;  %v250_v48 = vld [vmem:[#allocation5 + $0x570] sm:$0xff] }
 0x281   :  { %2587 = vmatpush.msra.mxu3 %v522_v10  ;;  %2501 = vmatpush.msra.mxu0 %v130_v36  ;;  %v210_v45 = vld [vmem:[#allocation5 + $0x430] sm:$0xff] }
 0x282   :  { %2529 = vmatpush.msra.mxu1 %v266_v60  ;;  %2560 = vmatpush.msra.mxu2 %v378_v5  ;;  %v714_v42 = vld [vmem:[#allocation5 + $0x13f0] sm:$0xff] }
 0x283   :  { %2588 = vmatpush.msra.mxu3 %v514_v29  ;;  %2502 = vmatpush.msra.mxu0 %v122_v1  ;;  %v3828_v40 = vld [vmem:[#allocation2 + $0x10] sm:$0xff]  ;;  %v2078_v29 = vadd.f32 %v3797_v6, %v3795_v33 }
 0x284   :  { %2530 = vmatpush.msra.mxu1 %v258_v12  ;;  %2561 = vmatpush.msra.mxu2 %v370_v7  ;;  %v962_v55 = vld [vmem:[#allocation5 + $0x1bb0] sm:$0xff]  ;;  %v3845_v12 = vld [vmem:[#allocation2 + $0x40] sm:$0xff] }
 0x285   :  { %2589 = vmatpush.msra.mxu3 %v506_v61  ;;  %2503 = vmatpush.msra.mxu0 %v114_v44  ;;  %v1098_v2 = vld [vmem:[#allocation5 + $0x1ff0] sm:$0xff] }
 0x286   :  { %2531 = vmatpush.msra.mxu1 %v250_v48  ;;  %2401 = vmatmul.f32.gmra.mxu0 %v3723_v11  ;;  %v90_v11 = vld [vmem:[#allocation5 + $0x70] sm:$0xff]  ;;  %v2107_v48 = vadd.f32 %v3801_v41, %v2078_v29 }
 0x287   :  { %2459 = vmatmul.f32.gmra.mxu2 %v3726_v37  ;;  %2590 = vmatpush.msra.mxu3 %v498_v19  ;;  %v226_v37 = vld [vmem:[#allocation5 + $0x4b0] sm:$0xff] }
 0x288   :  { %2562 = vmatpush.msra.mxu2 %v362_v21  ;;  %2504 = vmatpush.msra.mxu0 %v106_v28  ;;  %v706_v32 = vld [vmem:[#allocation5 + $0x13b0] sm:$0xff]  ;;  %v2161_v26 = vpop.f32.mrf.mxu0  ;;  %v2190_v5 = vpop.f32.mrf.mxu1  ;;  %v3852_v28 = vld [vmem:[#allocation2 + $0x48] sm:$0xff] }
 0x289   :  { %2532 = vmatpush.msra.mxu1 %v242_v18  ;;  %2488 = vmatmul.f32.gmra.mxu3 %v3734_v62  ;;  %v466_v62 = vld [vmem:[#allocation5 + $0xc30] sm:$0xff]  ;;  %v2162_v10 = vadd.f32 %v2161_v26, %v2133_v59  ;;  %v2219_v19 = vpop.f32.mrf.mxu2  ;;  %v3855_v18 = vld [vmem:[#allocation2 + $0x58] sm:$0xff] }
 0x28a   :  { %2430 = vmatmul.f32.gmra.mxu1 %v3731_v24  ;;  %2563 = vmatpush.msra.mxu2 %v354_v13  ;;  %v218_v24 = vld [vmem:[#allocation5 + $0x470] sm:$0xff]  ;;  %v3871_v59 = vld [vmem:[#allocation2 + $0x98] sm:$0xff] }
 0x28b   :  { %2591 = vmatpush.msra.mxu3 %v490_v27  ;;  %2505 = vmatpush.msra.mxu0 %v98_v0  ;;  %v842_v3 = vld [vmem:[#allocation5 + $0x17f0] sm:$0xff]  ;;  %v2191_v21 = vadd.f32 %v2190_v5, %v2162_v10 }
 0x28c   :  { %2533 = vmatpush.msra.mxu1 %v234_v30  ;;  %2564 = vmatpush.msra.mxu2 %v346_v4  ;;  %v954_v15 = vld [vmem:[#allocation5 + $0x1b70] sm:$0xff] }
 0x28d   :  { %2592 = vmatpush.msra.mxu3 %v482_v20  ;;  %2506 = vmatpush.msra.mxu0 %v90_v11  ;;  %v1090_v9 = vld [vmem:[#allocation5 + $0x1fb0] sm:$0xff]  ;;  %v2220_v0 = vadd.f32 %v2219_v19, %v2191_v21  ;;  %v2248_v4 = vpop.f32.mrf.mxu3  ;;  %v2136_v20 = vadd.f32 %v3805_v57, %v2107_v48  ;;  %v2081_v57 = vadd.f32 %v3809_v47, %v3807_v34  ;;  %v3877_v19 = vld [vmem:[#allocation2 + $0xc0] sm:$0xff] }
 0x28e   :  { %2534 = vmatpush.msra.mxu1 %v226_v37  ;;  %2565 = vmatpush.msra.mxu2 %v338_v8  ;;  %v698_v58 = vld [vmem:[#allocation5 + $0x1370] sm:$0xff] }
 0x28f   :  { %2593 = vmatpush.msra.mxu3 %v474_v49  ;;  %2507 = vmatpush.msra.mxu0 %v82_v51  ;;  %v834_v39 = vld [vmem:[#allocation5 + $0x17b0] sm:$0xff]  ;;  %v2249_v49 = vadd.f32 %v2248_v4, %v2220_v0 }
 0x290   :  { %2535 = vmatpush.msra.mxu1 %v218_v24  ;;  %2508 = vmatmul.f32.vlgmr.msra.gmra.mxu0 %v3825_v38  ;;  %v946_v22 = vld [vmem:[#allocation5 + $0x1b30] sm:$0xff]  ;;  %v2164_v8 = vpop.f32.mrf.mxu0 }
 0x291   :  { %2566 = vmatmul.f32.vlgmr.msra.gmra.mxu2 %v3828_v40  ;;  %2594 = vmatpush.msra.mxu3 %v466_v62  ;;  %v1082_v54 = vld [vmem:[#allocation5 + $0x1f70] sm:$0xff]  ;;  %v2165_v62 = vadd.f32 %v2164_v8, %v2136_v20  ;;  %2960 = vst [vmem:[#allocation7 + $0x20] sm:$0xff] %v2249_v49  ;;  %v3884_v20 = vld [vmem:[#allocation2 + $0xc8] sm:$0xff] }
 0x292   :  { %2666 = vmatpush.msrb.mxu2 %v970_v16  ;;  %2536 = vmatpush.msra.mxu1 %v210_v45  ;;  %v690_v31 = vld [vmem:[#allocation5 + $0x1330] sm:$0xff]  ;;  %v2193_v45 = vpop.f32.mrf.mxu1 }
 0x293   :  { %2608 = vmatpush.msrb.mxu0 %v714_v42  ;;  %2537 = vmatmul.f32.vlgmr.msra.gmra.mxu1 %v3834_v46  ;;  %v826_v35 = vld [vmem:[#allocation5 + $0x1770] sm:$0xff] }
 0x294   :  { %2595 = vmatmul.f32.vlgmr.msra.gmra.mxu3 %v3837_v52  ;;  %2667 = vmatpush.msrb.mxu2 %v962_v55  ;;  %v938_v36 = vld [vmem:[#allocation5 + $0x1af0] sm:$0xff] }
 0x295   :  { %2695 = vmatpush.msrb.mxu3 %v1098_v2  ;;  %2609 = vmatpush.msrb.mxu0 %v706_v32  ;;  %v1074_v60 = vld [vmem:[#allocation5 + $0x1f30] sm:$0xff]  ;;  %v3861_v2 = vld [vmem:[#allocation2 + $0x80] sm:$0xff] }
 0x296   :  { %2637 = vmatpush.msrb.mxu1 %v842_v3  ;;  %2668 = vmatpush.msrb.mxu2 %v954_v15  ;;  %v682_v43 = vld [vmem:[#allocation5 + $0x12f0] sm:$0xff]  ;;  %v2110_v15 = vadd.f32 %v3813_v25, %v2081_v57 }
 0x297   :  { %2696 = vmatpush.msrb.mxu3 %v1090_v9  ;;  %2610 = vmatpush.msrb.mxu0 %v698_v58  ;;  %v818_v1 = vld [vmem:[#allocation5 + $0x1730] sm:$0xff]  ;;  %v2194_v9 = vadd.f32 %v2193_v45, %v2165_v62  ;;  %v2222_v58 = vpop.f32.mrf.mxu2 }
 0x298   :  { %2638 = vmatpush.msrb.mxu1 %v834_v39  ;;  %2669 = vmatpush.msrb.mxu2 %v946_v22  ;;  %v3848_v7 = vld [vmem:[#allocation2 + $0x50] sm:$0xff]  ;;  %v3868_v39 = vld [vmem:[#allocation2 + $0x88] sm:$0xff]  ;;  %v2139_v10 = vadd.f32 %v3817_v17, %v2110_v15  ;;  %v2084_v17 = vadd.f32 %v3821_v50, %v3819_v14  ;;  %v459_v15 = vld [vmem:[#allocation5 + $0xbf8] sm:$0xff] }
 0x299   :  { %2697 = vmatpush.msrb.mxu3 %v1082_v54  ;;  %2611 = vmatpush.msrb.mxu0 %v690_v31  ;;  %v930_v61 = vld [vmem:[#allocation5 + $0x1ab0] sm:$0xff]  ;;  %v2223_v26 = vadd.f32 %v2222_v58, %v2194_v9  ;;  %v2167_v5 = vpop.f32.mrf.mxu0 }
 0x29a   :  { %2639 = vmatpush.msrb.mxu1 %v826_v35  ;;  %2511 = vmatmul.f32.gmra.mxu0 %v3845_v12  ;;  %v1066_v44 = vld [vmem:[#allocation5 + $0x1ef0] sm:$0xff]  ;;  %v2251_v35 = vpop.f32.mrf.mxu3 }
 0x29b   :  { %2569 = vmatmul.f32.gmra.mxu2 %v3848_v7  ;;  %2698 = vmatpush.msrb.mxu3 %v1074_v60  ;;  %v674_v33 = vld [vmem:[#allocation5 + $0x12b0] sm:$0xff]  ;;  %v2252_v29 = vadd.f32 %v2251_v35, %v2223_v26 }
 0x29c   :  { %2670 = vmatpush.msrb.mxu2 %v938_v36  ;;  %2612 = vmatpush.msrb.mxu0 %v682_v43  ;;  %v810_v6 = vld [vmem:[#allocation5 + $0x16f0] sm:$0xff]  ;;  %v2196_v21 = vpop.f32.mrf.mxu1 }
 0x29d   :  { %2640 = vmatpush.msrb.mxu1 %v818_v1  ;;  %2598 = vmatmul.f32.gmra.mxu3 %v3855_v18  ;;  %v922_v13 = vld [vmem:[#allocation5 + $0x1a70] sm:$0xff]  ;;  %2968 = vst [vmem:[#allocation7 + $0x60] sm:$0xff] %v2252_v29 }
 0x29e   :  { %2540 = vmatmul.f32.gmra.mxu1 %v3852_v28  ;;  %v1058_v27 = vld [vmem:[#allocation5 + $0x1eb0] sm:$0xff]  ;;  %2671 = vmatpush.msrb.mxu2 %v930_v61  ;;  %v2168_v61 = vadd.f32 %v2167_v5, %v2139_v10  ;;  %v3897_v10 = vld [vmem:[#allocation2 + $0x28] sm:$0xff]  ;;  %v579_v5 = vld [vmem:[#allocation5 + $0xfb8] sm:$0xff] }
 0x29f   :  { %2699 = vmatpush.msrb.mxu3 %v1066_v44  ;;  %v666_v41 = vld [vmem:[#allocation5 + $0x1270] sm:$0xff]  ;;  %2613 = vmatpush.msrb.mxu0 %v674_v33  ;;  %v2225_v4 = vpop.f32.mrf.mxu2 }
 0x2a0   :  { %v802_v30 = vld [vmem:[#allocation5 + $0x16b0] sm:$0xff]  ;;  %2641 = vmatpush.msrb.mxu1 %v810_v6  ;;  %2672 = vmatpush.msrb.mxu2 %v922_v13 }
 0x2a1   :  { %v914_v11 = vld [vmem:[#allocation5 + $0x1a30] sm:$0xff]  ;;  %2700 = vmatpush.msrb.mxu3 %v1058_v27  ;;  %2614 = vmatpush.msrb.mxu0 %v666_v41  ;;  %v2113_v41 = vadd.f32 %v3832_v53, %v2084_v17 }
 0x2a2   :  { %v1050_v37 = vld [vmem:[#allocation5 + $0x1e70] sm:$0xff]  ;;  %2642 = vmatpush.msrb.mxu1 %v802_v30  ;;  %2673 = vmatpush.msrb.mxu2 %v914_v11  ;;  %v2197_v30 = vadd.f32 %v2196_v21, %v2168_v61  ;;  %v3887_v11 = vld [vmem:[#allocation2 + $0xd8] sm:$0xff] }
 0x2a3   :  { %v658_v51 = vld [vmem:[#allocation5 + $0x1230] sm:$0xff]  ;;  %2701 = vmatpush.msrb.mxu3 %v1050_v37  ;;  %2514 = vmatmul.f32.gmra.mxu0 %v3861_v2  ;;  %v2142_v62 = vadd.f32 %v3840_v56, %v2113_v41  ;;  %v2170_v45 = vpop.f32.mrf.mxu0 }
 0x2a4   :  { %v794_v24 = vld [vmem:[#allocation5 + $0x1670] sm:$0xff]  ;;  %2615 = vmatpush.msrb.mxu0 %v658_v51  ;;  %v2226_v49 = vadd.f32 %v2225_v4, %v2197_v30  ;;  %v171_v30 = vld [vmem:[#allocation5 + $0x2f8] sm:$0xff] }
 0x2a5   :  { %v906_v16 = vld [vmem:[#allocation5 + $0x19f0] sm:$0xff]  ;;  %2643 = vmatpush.msrb.mxu1 %v794_v24  ;;  %2601 = vmatmul.f32.gmra.mxu3 %v3871_v59  ;;  %v2254_v24 = vpop.f32.mrf.mxu3 }
 0x2a6   :  { %v1042_v23 = vld [vmem:[#allocation5 + $0x1e30] sm:$0xff]  ;;  %2674 = vmatpush.msrb.mxu2 %v906_v16  ;;  %2543 = vmatmul.f32.gmra.mxu1 %v3868_v39  ;;  %v2255_v57 = vadd.f32 %v2254_v24, %v2226_v49  ;;  %v2199_v9 = vpop.f32.mrf.mxu1  ;;  %v163_v49 = vld [vmem:[#allocation5 + $0x2b8] sm:$0xff]  ;;  %v3915_v24 = vld [vmem:[#allocation2 + $0x68] sm:$0xff] }
 0x2a7   :  { %v650_v42 = vld [vmem:[#allocation5 + $0x11f0] sm:$0xff]  ;;  %2702 = vmatpush.msrb.mxu3 %v1042_v23 }
 0x2a8   :  { %v786_v55 = vld [vmem:[#allocation5 + $0x1630] sm:$0xff]  ;;  %2616 = vmatpush.msrb.mxu0 %v650_v42  ;;  %2976 = vst [vmem:[#allocation7 + $0xa0] sm:$0xff] %v2255_v57  ;;  %v291_v57 = vld [vmem:[#allocation5 + $0x6b8] sm:$0xff] }
 0x2a9   :  { %v3864_v63 = vld [vmem:[#allocation2 + $0x90] sm:$0xff]  ;;  %2644 = vmatpush.msrb.mxu1 %v786_v55  ;;  %v2228_v35 = vpop.f32.mrf.mxu2 }
 0x2aa   :  { %2572 = vmatmul.f32.gmra.mxu2 %v3864_v63  ;;  %v898_v32 = vld [vmem:[#allocation5 + $0x19b0] sm:$0xff] }
 0x2ab   :  { %v1034_v3 = vld [vmem:[#allocation5 + $0x1df0] sm:$0xff]  ;;  %2675 = vmatpush.msrb.mxu2 %v898_v32  ;;  %2517 = vmatmul.f32.gmra.mxu0 %v3877_v19  ;;  %v2171_v32 = vadd.f32 %v2170_v45, %v2142_v62  ;;  %v3918_v62 = vld [vmem:[#allocation2 + $0x78] sm:$0xff] }
 0x2ac   :  { %v642_v34 = vld [vmem:[#allocation5 + $0x11b0] sm:$0xff]  ;;  %2703 = vmatpush.msrb.mxu3 %v1034_v3  ;;  %v155_v45 = vld [vmem:[#allocation5 + $0x278] sm:$0xff] }
 0x2ad   :  { %v778_v47 = vld [vmem:[#allocation5 + $0x15f0] sm:$0xff]  ;;  %2617 = vmatpush.msrb.mxu0 %v642_v34  ;;  %2604 = vmatmul.f32.gmra.mxu3 %v3887_v11  ;;  %v203_v34 = vld [vmem:[#allocation5 + $0x3f8] sm:$0xff]  ;;  %v2200_v26 = vadd.f32 %v2199_v9, %v2171_v32  ;;  %v2257_v61 = vpop.f32.mrf.mxu3  ;;  %v3903_v17 = vpop.f32.mrf.mxu0 }
 0x2ae   :  { %v890_v22 = vld [vmem:[#allocation5 + $0x1970] sm:$0xff]  ;;  %2645 = vmatpush.msrb.mxu1 %v778_v47  ;;  %v3891_v47 = vld [vmem:[#allocation2 + $0x20] sm:$0xff]  ;;  %v539_v32 = vld [vmem:[#allocation5 + $0xe78] sm:$0xff] }
 0x2af   :  { %v1026_v54 = vld [vmem:[#allocation5 + $0x1db0] sm:$0xff]  ;;  %2676 = vmatpush.msrb.mxu2 %v890_v22  ;;  %2546 = vmatmul.f32.gmra.mxu1 %v3884_v20  ;;  %v451_v22 = vld [vmem:[#allocation5 + $0xbb8] sm:$0xff]  ;;  %v2229_v29 = vadd.f32 %v2228_v35, %v2200_v26 }
 0x2b0   :  { %v634_v25 = vld [vmem:[#allocation5 + $0x1170] sm:$0xff]  ;;  %2704 = vmatpush.msrb.mxu3 %v1026_v54  ;;  %v587_v54 = vld [vmem:[#allocation5 + $0xff8] sm:$0xff]  ;;  %v3905_v41 = vpop.f32.mrf.mxu1 }
 0x2b1   :  { %v770_v31 = vld [vmem:[#allocation5 + $0x15b0] sm:$0xff]  ;;  %2618 = vmatpush.msrb.mxu0 %v634_v25  ;;  %v195_v25 = vld [vmem:[#allocation5 + $0x3b8] sm:$0xff]  ;;  %v2258_v21 = vadd.f32 %v2257_v61, %v2229_v29 }
 0x2b2   :  { %v882_v36 = vld [vmem:[#allocation5 + $0x1930] sm:$0xff]  ;;  %2646 = vmatpush.msrb.mxu1 %v770_v31  ;;  %v331_v31 = vld [vmem:[#allocation5 + $0x7f8] sm:$0xff] }
 0x2b3   :  { %v1018_v60 = vld [vmem:[#allocation5 + $0x1d70] sm:$0xff]  ;;  %2677 = vmatpush.msrb.mxu2 %v882_v36  ;;  %v3900_v36 = vld [vmem:[#allocation2 + $0x38] sm:$0xff]  ;;  %2984 = vst [vmem:[#allocation7 + $0xe0] sm:$0xff] %v2258_v21 }
 0x2b4   :  { %v626_v43 = vld [vmem:[#allocation5 + $0x1130] sm:$0xff]  ;;  %2705 = vmatpush.msrb.mxu3 %v1018_v60  ;;  %v443_v60 = vld [vmem:[#allocation5 + $0xb78] sm:$0xff] }
 0x2b5   :  { %v762_v1 = vld [vmem:[#allocation5 + $0x1570] sm:$0xff]  ;;  %2619 = vmatpush.msrb.mxu0 %v626_v43  ;;  %v187_v43 = vld [vmem:[#allocation5 + $0x378] sm:$0xff] }
 0x2b6   :  { %v874_v44 = vld [vmem:[#allocation5 + $0x18f0] sm:$0xff]  ;;  %2647 = vmatpush.msrb.mxu1 %v762_v1  ;;  %v323_v1 = vld [vmem:[#allocation5 + $0x7b8] sm:$0xff] }
 0x2b7   :  { %v1010_v48 = vld [vmem:[#allocation5 + $0x1d30] sm:$0xff]  ;;  %2678 = vmatpush.msrb.mxu2 %v874_v44  ;;  %v435_v44 = vld [vmem:[#allocation5 + $0xb38] sm:$0xff] }
 0x2b8   :  { %v618_v33 = vld [vmem:[#allocation5 + $0x10f0] sm:$0xff]  ;;  %2706 = vmatpush.msrb.mxu3 %v1010_v48  ;;  %v571_v48 = vld [vmem:[#allocation5 + $0xf78] sm:$0xff] }
 0x2b9   :  { %v754_v6 = vld [vmem:[#allocation5 + $0x1530] sm:$0xff]  ;;  %2620 = vmatpush.msrb.mxu0 %v618_v33  ;;  %v179_v33 = vld [vmem:[#allocation5 + $0x338] sm:$0xff] }
 0x2ba   :  { %v3880_v13 = vld [vmem:[#allocation2 + $0xd0] sm:$0xff]  ;;  %2648 = vmatpush.msrb.mxu1 %v754_v6  ;;  %v315_v6 = vld [vmem:[#allocation5 + $0x778] sm:$0xff] }
 0x2bb   :  { %2575 = vmatmul.f32.gmra.mxu2 %v3880_v13  ;;  %v866_v27 = vld [vmem:[#allocation5 + $0x18b0] sm:$0xff]  ;;  %v283_v9 = vld [vmem:[#allocation5 + $0x678] sm:$0xff] }
 0x2bc   :  { %v1002_v0 = vld [vmem:[#allocation5 + $0x1cf0] sm:$0xff]  ;;  %2679 = vmatpush.msrb.mxu2 %v866_v27  ;;  %v427_v27 = vld [vmem:[#allocation5 + $0xaf8] sm:$0xff] }
 0x2bd   :  { %v610_v14 = vld [vmem:[#allocation5 + $0x10b0] sm:$0xff]  ;;  %2707 = vmatpush.msrb.mxu3 %v1002_v0  ;;  %v563_v0 = vld [vmem:[#allocation5 + $0xf38] sm:$0xff] }
 0x2be   :  { %v746_v50 = vld [vmem:[#allocation5 + $0x14f0] sm:$0xff]  ;;  %2621 = vmatpush.msrb.mxu0 %v610_v14  ;;  %v307_v14 = vld [vmem:[#allocation5 + $0x738] sm:$0xff] }
 0x2bf   :  { %v858_v37 = vld [vmem:[#allocation5 + $0x1870] sm:$0xff]  ;;  %2649 = vmatpush.msrb.mxu1 %v746_v50  ;;  %v3907_v50 = vld [vmem:[#allocation2 + $0x60] sm:$0xff]  ;;  %v275_v26 = vld [vmem:[#allocation5 + $0x638] sm:$0xff] }
 0x2c0   :  { %v994_v8 = vld [vmem:[#allocation5 + $0x1cb0] sm:$0xff]  ;;  %2680 = vmatpush.msrb.mxu2 %v858_v37  ;;  %v419_v37 = vld [vmem:[#allocation5 + $0xab8] sm:$0xff] }
 0x2c1   :  { %v602_v53 = vld [vmem:[#allocation5 + $0x1070] sm:$0xff]  ;;  %2708 = vmatpush.msrb.mxu3 %v994_v8  ;;  %v555_v8 = vld [vmem:[#allocation5 + $0xef8] sm:$0xff] }
 0x2c2   :  { %v738_v51 = vld [vmem:[#allocation5 + $0x14b0] sm:$0xff]  ;;  %2622 = vmatpush.msrb.mxu0 %v602_v53  ;;  %v299_v53 = vld [vmem:[#allocation5 + $0x6f8] sm:$0xff] }
 0x2c3   :  { %v850_v16 = vld [vmem:[#allocation5 + $0x1830] sm:$0xff]  ;;  %2650 = vmatpush.msrb.mxu1 %v738_v51  ;;  %v3913_v51 = vpop.f32.mrf.mxu2  ;;  %v387_v35 = vld [vmem:[#allocation5 + $0x9b8] sm:$0xff] }
 0x2c4   :  { %v986_v23 = vld [vmem:[#allocation5 + $0x1c70] sm:$0xff]  ;;  %2681 = vmatpush.msrb.mxu2 %v850_v16  ;;  %v411_v16 = vld [vmem:[#allocation5 + $0xa78] sm:$0xff] }
 0x2c5   :  { %v594_v42 = vld [vmem:[#allocation5 + $0x1030] sm:$0xff]  ;;  %2709 = vmatpush.msrb.mxu3 %v986_v23  ;;  %v547_v23 = vld [vmem:[#allocation5 + $0xeb8] sm:$0xff] }
 0x2c6   :  { %v730_v55 = vld [vmem:[#allocation5 + $0x1470] sm:$0xff]  ;;  %2623 = vmatpush.msrb.mxu0 %v594_v42  ;;  %2782 = vmatpush.msra.mxu2 %v459_v15  ;;  %v3921_v42 = vpop.f32.mrf.mxu3  ;;  %v147_v15 = vld [vmem:[#allocation5 + $0x238] sm:$0xff] }
 0x2c7   :  { %v978_v3 = vld [vmem:[#allocation5 + $0x1c30] sm:$0xff]  ;;  %2651 = vmatpush.msrb.mxu1 %v730_v55  ;;  %2624 = vmatmul.f32.vlgmr.msrb.gmra.mxu0 %v3891_v47  ;;  %v403_v55 = vld [vmem:[#allocation5 + $0xa38] sm:$0xff] }
 0x2c8   :  { %v722_v56 = vld [vmem:[#allocation5 + $0x1430] sm:$0xff]  ;;  %2710 = vmatpush.msrb.mxu3 %v978_v3  ;;  %2724 = vmatpush.msra.mxu0 %v203_v34  ;;  %v3923_v3 = vpop.f32.mrf.mxu0  ;;  %v531_v34 = vld [vmem:[#allocation5 + $0xe38] sm:$0xff] }
 0x2c9   :  { %v3894_v58 = vld [vmem:[#allocation2 + $0x30] sm:$0xff]  ;;  %2652 = vmatpush.msrb.mxu1 %v722_v56  ;;  %2711 = vmatmul.f32.vlgmr.msrb.gmra.mxu3 %v3900_v36  ;;  %v395_v56 = vld [vmem:[#allocation5 + $0x9f8] sm:$0xff] }
 0x2ca   :  { %2682 = vmatmul.f32.vlgmr.msrb.gmra.mxu2 %v3894_v58  ;;  %2653 = vmatmul.f32.vlgmr.msrb.gmra.mxu1 %v3897_v10  ;;  %v3910_v4 = vld [vmem:[#allocation2 + $0x70] sm:$0xff]  ;;  %v267_v29 = vld [vmem:[#allocation5 + $0x5f8] sm:$0xff] }
 0x2cb   :  { %2783 = vmatpush.msra.mxu2 %v451_v22  ;;  %2811 = vmatpush.msra.mxu3 %v587_v54  ;;  %v3925_v22 = vpop.f32.mrf.mxu1  ;;  %v139_v54 = vld [vmem:[#allocation5 + $0x1f8] sm:$0xff] }
 0x2cc   :  { %2725 = vmatpush.msra.mxu0 %v195_v25  ;;  %2753 = vmatpush.msra.mxu1 %v331_v31  ;;  %v3927_v25 = vld [vmem:[#allocation2 + $0xa0] sm:$0xff]  ;;  %v3930_v31 = vld [vmem:[#allocation2 + $0xb0] sm:$0xff]  ;;  %v3938_v61 = vld [vmem:[#allocation2 + $0xb8] sm:$0xff] }
 0x2cd   :  { %2784 = vmatpush.msra.mxu2 %v443_v60  ;;  %2812 = vmatpush.msra.mxu3 %v579_v5  ;;  %v523_v60 = vld [vmem:[#allocation5 + $0xdf8] sm:$0xff] }
 0x2ce   :  { %2726 = vmatpush.msra.mxu0 %v187_v43  ;;  %2754 = vmatpush.msra.mxu1 %v323_v1  ;;  %v131_v5 = vld [vmem:[#allocation5 + $0x1b8] sm:$0xff]  ;;  %v3933_v43 = vpop.f32.mrf.mxu2  ;;  %v3935_v1 = vld [vmem:[#allocation2 + $0xa8] sm:$0xff] }
 0x2cf   :  { %2785 = vmatpush.msra.mxu2 %v435_v44  ;;  %2813 = vmatpush.msra.mxu3 %v571_v48  ;;  %v379_v44 = vld [vmem:[#allocation5 + $0x978] sm:$0xff] }
 0x2d0   :  { %2727 = vmatpush.msra.mxu0 %v179_v33  ;;  %2755 = vmatpush.msra.mxu1 %v315_v6  ;;  %v515_v48 = vld [vmem:[#allocation5 + $0xdb8] sm:$0xff]  ;;  %v3941_v6 = vpop.f32.mrf.mxu3 }
 0x2d1   :  { %2627 = vmatmul.f32.gmra.mxu0 %v3907_v50  ;;  %2786 = vmatpush.msra.mxu2 %v427_v27  ;;  %v123_v21 = vld [vmem:[#allocation5 + $0x178] sm:$0xff] }
 0x2d2   :  { %2685 = vmatmul.f32.gmra.mxu2 %v3910_v4  ;;  %2814 = vmatpush.msra.mxu3 %v563_v0  ;;  %v259_v33 = vld [vmem:[#allocation5 + $0x5b8] sm:$0xff] }
 0x2d3   :  { %2728 = vmatpush.msra.mxu0 %v171_v30  ;;  %2756 = vmatpush.msra.mxu1 %v307_v14  ;;  %v371_v27 = vld [vmem:[#allocation5 + $0x938] sm:$0xff]  ;;  %v3943_v30 = vpop.f32.mrf.mxu0 }
 0x2d4   :  { %2656 = vmatmul.f32.gmra.mxu1 %v3915_v24  ;;  %2714 = vmatmul.f32.gmra.mxu3 %v3918_v62  ;;  %v507_v0 = vld [vmem:[#allocation5 + $0xd78] sm:$0xff] }
 0x2d5   :  { %2787 = vmatpush.msra.mxu2 %v419_v37  ;;  %2815 = vmatpush.msra.mxu3 %v555_v8  ;;  %v115_v14 = vld [vmem:[#allocation5 + $0x138] sm:$0xff] }
 0x2d6   :  { %2729 = vmatpush.msra.mxu0 %v163_v49  ;;  %2757 = vmatpush.msra.mxu1 %v299_v53  ;;  %v251_v37 = vld [vmem:[#allocation5 + $0x578] sm:$0xff]  ;;  %v3945_v53 = vpop.f32.mrf.mxu1 }
 0x2d7   :  { %2788 = vmatpush.msra.mxu2 %v411_v16  ;;  %2816 = vmatpush.msra.mxu3 %v547_v23  ;;  %v363_v8 = vld [vmem:[#allocation5 + $0x8f8] sm:$0xff] }
 0x2d8   :  { %2730 = vmatpush.msra.mxu0 %v155_v45  ;;  %2758 = vmatpush.msra.mxu1 %v291_v57  ;;  %v499_v49 = vld [vmem:[#allocation5 + $0xd38] sm:$0xff]  ;;  %v3947_v45 = vld [vmem:[#allocation2 + $0xe0] sm:$0xff]  ;;  %v3950_v57 = vld [vmem:[#allocation2 + $0xf0] sm:$0xff] }
 0x2d9   :  { %2789 = vmatpush.msra.mxu2 %v403_v55  ;;  %2817 = vmatpush.msra.mxu3 %v539_v32  ;;  %v107_v16 = vld [vmem:[#allocation5 + $0xf8] sm:$0xff] }
 0x2da   :  { %2731 = vmatpush.msra.mxu0 %v147_v15  ;;  %2759 = vmatpush.msra.mxu1 %v283_v9  ;;  %v243_v23 = vld [vmem:[#allocation5 + $0x538] sm:$0xff] }
 0x2db   :  { %2630 = vmatmul.f32.gmra.mxu0 %v3927_v25  ;;  %2688 = vmatmul.f32.gmra.mxu2 %v3930_v31  ;;  %v355_v55 = vld [vmem:[#allocation5 + $0x8b8] sm:$0xff] }
 0x2dc   :  { %2790 = vmatpush.msra.mxu2 %v395_v56  ;;  %2818 = vmatpush.msra.mxu3 %v531_v34  ;;  %v491_v32 = vld [vmem:[#allocation5 + $0xcf8] sm:$0xff]  ;;  %v3953_v56 = vpop.f32.mrf.mxu2  ;;  %v3955_v34 = vld [vmem:[#allocation2 + $0xe8] sm:$0xff] }
 0x2dd   :  { %2732 = vmatpush.msra.mxu0 %v139_v54  ;;  %2760 = vmatpush.msra.mxu1 %v275_v26  ;;  %v99_v15 = vld [vmem:[#allocation5 + $0xb8] sm:$0xff] }
 0x2de   :  { %2659 = vmatmul.f32.gmra.mxu1 %v3935_v1  ;;  %2717 = vmatmul.f32.gmra.mxu3 %v3938_v61  ;;  %v235_v9 = vld [vmem:[#allocation5 + $0x4f8] sm:$0xff] }
 0x2df   :  { %2791 = vmatpush.msra.mxu2 %v387_v35  ;;  %2819 = vmatpush.msra.mxu3 %v523_v60  ;;  %v3958_v54 = vld [vmem:[#allocation2 + $0xf8] sm:$0xff] }
 0x2e0   :  { %2733 = vmatpush.msra.mxu0 %v131_v5  ;;  %2761 = vmatpush.msra.mxu1 %v267_v29  ;;  %v347_v26 = vld [vmem:[#allocation5 + $0x878] sm:$0xff]  ;;  %v3961_v29 = vpop.f32.mrf.mxu3 }
 0x2e1   :  { %2792 = vmatpush.msra.mxu2 %v379_v44  ;;  %2820 = vmatpush.msra.mxu3 %v515_v48  ;;  %v483_v35 = vld [vmem:[#allocation5 + $0xcb8] sm:$0xff] }
 0x2e2   :  { %2734 = vmatpush.msra.mxu0 %v123_v21  ;;  %2762 = vmatpush.msra.mxu1 %v259_v33  ;;  %v91_v60 = vld [vmem:[#allocation5 + $0x78] sm:$0xff]  ;;  %v3963_v21 = vpop.f32.mrf.mxu0 }
 0x2e3   :  { %2793 = vmatpush.msra.mxu2 %v371_v27  ;;  %2821 = vmatpush.msra.mxu3 %v507_v0  ;;  %v227_v5 = vld [vmem:[#allocation5 + $0x4b8] sm:$0xff]  ;;  %v2307_v0 = vadd.f32 %v3905_v41, %v3903_v17 }
 0x2e4   :  { %2735 = vmatpush.msra.mxu0 %v115_v14  ;;  %2763 = vmatpush.msra.mxu1 %v251_v37  ;;  %v339_v44 = vld [vmem:[#allocation5 + $0x838] sm:$0xff] }
 0x2e5   :  { %2633 = vmatmul.f32.gmra.mxu0 %v3947_v45  ;;  %2691 = vmatmul.f32.gmra.mxu2 %v3950_v57  ;;  %v475_v48 = vld [vmem:[#allocation5 + $0xc78] sm:$0xff] }
 0x2e6   :  { %2794 = vmatpush.msra.mxu2 %v363_v8  ;;  %2822 = vmatpush.msra.mxu3 %v499_v49  ;;  %v83_v33 = vld [vmem:[#allocation5 + $0x38] sm:$0xff]  ;;  %v3967_v8 = vpop.f32.mrf.mxu1 }
 0x2e7   :  { %2736 = vmatpush.msra.mxu0 %v107_v16  ;;  %2764 = vmatpush.msra.mxu1 %v243_v23  ;;  %v219_v27 = vld [vmem:[#allocation5 + $0x478] sm:$0xff]  ;;  %v2336_v23 = vadd.f32 %v3913_v51, %v2307_v0 }
 0x2e8   :  { %2662 = vmatmul.f32.gmra.mxu1 %v3955_v34  ;;  %2720 = vmatmul.f32.gmra.mxu3 %v3958_v54  ;;  %v467_v14 = vld [vmem:[#allocation5 + $0xc38] sm:$0xff] }
 0x2e9   :  { %2795 = vmatpush.msra.mxu2 %v355_v55  ;;  %2823 = vmatpush.msra.mxu3 %v491_v32  ;;  %v971_v37 = vld [vmem:[#allocation5 + $0x1bf8] sm:$0xff] }
 0x2ea   :  { %2737 = vmatpush.msra.mxu0 %v99_v15  ;;  %2765 = vmatpush.msra.mxu1 %v235_v9  ;;  %v211_v49 = vld [vmem:[#allocation5 + $0x438] sm:$0xff]  ;;  %v3972_v15 = vpop.f32.mrf.mxu2 }
 0x2eb   :  { %2796 = vmatpush.msra.mxu2 %v347_v26  ;;  %2824 = vmatpush.msra.mxu3 %v483_v35  ;;  %v715_v16 = vld [vmem:[#allocation5 + $0x13f8] sm:$0xff]  ;;  %v3977_v35 = vpop.f32.mrf.mxu3 }
 0x2ec   :  { %2738 = vmatpush.msra.mxu0 %v91_v60  ;;  %2766 = vmatpush.msra.mxu1 %v227_v5  ;;  %v963_v55 = vld [vmem:[#allocation5 + $0x1bb8] sm:$0xff] }
 0x2ed   :  { %2797 = vmatpush.msra.mxu2 %v339_v44  ;;  %2825 = vmatpush.msra.mxu3 %v475_v48  ;;  %v1099_v32 = vld [vmem:[#allocation5 + $0x1ff8] sm:$0xff]  ;;  %v2393_v44 = vpop.f32.mrf.mxu0 }
 0x2ee   :  { %2739 = vmatpush.msra.mxu0 %v83_v33  ;;  %2767 = vmatpush.msra.mxu1 %v219_v27  ;;  %v707_v17 = vld [vmem:[#allocation5 + $0x13b8] sm:$0xff]  ;;  %v2422_v0 = vpop.f32.mrf.mxu1 }
 0x2ef   :  { %2740 = vmatmul.f32.vlgmr.msra.gmra.mxu0 %v3825_v38  ;;  %2798 = vmatmul.f32.vlgmr.msra.gmra.mxu2 %v3828_v40  ;;  %v843_v41 = vld [vmem:[#allocation5 + $0x17f8] sm:$0xff]  ;;  %v2365_v40 = vadd.f32 %v3921_v42, %v2336_v23  ;;  %v2310_v42 = vadd.f32 %v3925_v22, %v3923_v3 }
 0x2f0   :  { %2826 = vmatpush.msra.mxu3 %v467_v14  ;;  %2898 = vmatpush.msrb.mxu2 %v971_v37  ;;  %v955_v9 = vld [vmem:[#allocation5 + $0x1b78] sm:$0xff] }
 0x2f1   :  { %2768 = vmatpush.msra.mxu1 %v211_v49  ;;  %2840 = vmatpush.msrb.mxu0 %v715_v16  ;;  %v1091_v38 = vld [vmem:[#allocation5 + $0x1fb8] sm:$0xff]  ;;  %v2339_v49 = vadd.f32 %v3933_v43, %v2310_v42 }
 0x2f2   :  { %2769 = vmatmul.f32.vlgmr.msra.gmra.mxu1 %v3834_v46  ;;  %2827 = vmatmul.f32.vlgmr.msra.gmra.mxu3 %v3837_v52  ;;  %v699_v51 = vld [vmem:[#allocation5 + $0x1378] sm:$0xff]  ;;  %v2394_v52 = vadd.f32 %v2393_v44, %v2365_v40 }
 0x2f3   :  { %2899 = vmatpush.msrb.mxu2 %v963_v55  ;;  %2927 = vmatpush.msrb.mxu3 %v1099_v32  ;;  %v835_v26 = vld [vmem:[#allocation5 + $0x17b8] sm:$0xff]  ;;  %v2451_v32 = vpop.f32.mrf.mxu2 }
 0x2f4   :  { %2841 = vmatpush.msrb.mxu0 %v707_v17  ;;  %2869 = vmatpush.msrb.mxu1 %v843_v41  ;;  %v947_v60 = vld [vmem:[#allocation5 + $0x1b38] sm:$0xff]  ;;  %v2423_v16 = vadd.f32 %v2422_v0, %v2394_v52 }
 0x2f5   :  { %v1083_v5 = vld [vmem:[#allocation5 + $0x1f78] sm:$0xff]  ;;  %2900 = vmatpush.msrb.mxu2 %v955_v9  ;;  %2928 = vmatpush.msrb.mxu3 %v1091_v38  ;;  %v2480_v38 = vpop.f32.mrf.mxu3 }
 0x2f6   :  { %v691_v46 = vld [vmem:[#allocation5 + $0x1338] sm:$0xff]  ;;  %2842 = vmatpush.msrb.mxu0 %v699_v51  ;;  %2870 = vmatpush.msrb.mxu1 %v835_v26  ;;  %v2452_v17 = vadd.f32 %v2451_v32, %v2423_v16  ;;  %v2396_v26 = vpop.f32.mrf.mxu0 }
 0x2f7   :  { %v827_v48 = vld [vmem:[#allocation5 + $0x1778] sm:$0xff]  ;;  %2901 = vmatpush.msrb.mxu2 %v947_v60  ;;  %2929 = vmatpush.msrb.mxu3 %v1083_v5 }
 0x2f8   :  { %v939_v33 = vld [vmem:[#allocation5 + $0x1af8] sm:$0xff]  ;;  %2843 = vmatpush.msrb.mxu0 %v691_v46  ;;  %2871 = vmatpush.msrb.mxu1 %v827_v48  ;;  %v2481_v60 = vadd.f32 %v2480_v38, %v2452_v17  ;;  %v2425_v48 = vpop.f32.mrf.mxu1 }
 0x2f9   :  { %v1075_v27 = vld [vmem:[#allocation5 + $0x1f38] sm:$0xff]  ;;  %2743 = vmatmul.f32.gmra.mxu0 %v3845_v12  ;;  %2801 = vmatmul.f32.gmra.mxu2 %v3848_v7  ;;  %v2368_v7 = vadd.f32 %v3941_v6, %v2339_v49  ;;  %v2313_v6 = vadd.f32 %v3945_v53, %v3943_v30 }
 0x2fa   :  { %v683_v14 = vld [vmem:[#allocation5 + $0x12f8] sm:$0xff]  ;;  %2902 = vmatpush.msrb.mxu2 %v939_v33  ;;  %2930 = vmatpush.msrb.mxu3 %v1075_v27  ;;  %2961 = vst [vmem:[#allocation7 + $0x28] sm:$0xff] %v2481_v60 }
 0x2fb   :  { %v819_v37 = vld [vmem:[#allocation5 + $0x1738] sm:$0xff]  ;;  %2844 = vmatpush.msrb.mxu0 %v683_v14  ;;  %2772 = vmatmul.f32.gmra.mxu1 %v3852_v28  ;;  %v2342_v33 = vadd.f32 %v3953_v56, %v2313_v6 }
 0x2fc   :  { %v931_v23 = vld [vmem:[#allocation5 + $0x1ab8] sm:$0xff]  ;;  %2872 = vmatpush.msrb.mxu1 %v819_v37  ;;  %2830 = vmatmul.f32.gmra.mxu3 %v3855_v18  ;;  %v2397_v18 = vadd.f32 %v2396_v26, %v2368_v7  ;;  %v2454_v37 = vpop.f32.mrf.mxu2 }
 0x2fd   :  { %v1067_v55 = vld [vmem:[#allocation5 + $0x1ef8] sm:$0xff]  ;;  %2903 = vmatpush.msrb.mxu2 %v931_v23 }
 0x2fe   :  { %v675_v3 = vld [vmem:[#allocation5 + $0x12b8] sm:$0xff]  ;;  %2931 = vmatpush.msrb.mxu3 %v1067_v55  ;;  %v2426_v27 = vadd.f32 %v2425_v48, %v2397_v18  ;;  %v2483_v55 = vpop.f32.mrf.mxu3 }
 0x2ff   :  { %v811_v22 = vld [vmem:[#allocation5 + $0x16f8] sm:$0xff]  ;;  %2845 = vmatpush.msrb.mxu0 %v675_v3 }
 0x300   :  { %v923_v12 = vld [vmem:[#allocation5 + $0x1a78] sm:$0xff]  ;;  %2873 = vmatpush.msrb.mxu1 %v811_v22  ;;  %v2455_v49 = vadd.f32 %v2454_v37, %v2426_v27  ;;  %v2399_v22 = vpop.f32.mrf.mxu0 }
 0x301   :  { %v1059_v41 = vld [vmem:[#allocation5 + $0x1eb8] sm:$0xff]  ;;  %2904 = vmatpush.msrb.mxu2 %v923_v12  ;;  %2746 = vmatmul.f32.gmra.mxu0 %v3861_v2 }
 0x302   :  { %v667_v43 = vld [vmem:[#allocation5 + $0x1278] sm:$0xff]  ;;  %2932 = vmatpush.msrb.mxu3 %v1059_v41  ;;  %2804 = vmatmul.f32.gmra.mxu2 %v3864_v63  ;;  %v2371_v63 = vadd.f32 %v3961_v29, %v2342_v33  ;;  %v2484_v17 = vadd.f32 %v2483_v55, %v2455_v49  ;;  %v2316_v29 = vadd.f32 %v3967_v8, %v3963_v21 }
 0x303   :  { %v803_v9 = vld [vmem:[#allocation5 + $0x16b8] sm:$0xff]  ;;  %2846 = vmatpush.msrb.mxu0 %v667_v43  ;;  %2775 = vmatmul.f32.gmra.mxu1 %v3868_v39  ;;  %v2428_v43 = vpop.f32.mrf.mxu1 }
 0x304   :  { %v915_v40 = vld [vmem:[#allocation5 + $0x1a38] sm:$0xff]  ;;  %2874 = vmatpush.msrb.mxu1 %v803_v9  ;;  %2833 = vmatmul.f32.gmra.mxu3 %v3871_v59  ;;  %v2400_v59 = vadd.f32 %v2399_v22, %v2371_v63  ;;  %2969 = vst [vmem:[#allocation7 + $0x68] sm:$0xff] %v2484_v17 }
 0x305   :  { %v1051_v51 = vld [vmem:[#allocation5 + $0x1e78] sm:$0xff]  ;;  %2905 = vmatpush.msrb.mxu2 %v915_v40  ;;  %v2345_v40 = vadd.f32 %v3972_v15, %v2316_v29 }
 0x306   :  { %v659_v28 = vld [vmem:[#allocation5 + $0x1238] sm:$0xff]  ;;  %2933 = vmatpush.msrb.mxu3 %v1051_v51  ;;  %v2429_v51 = vadd.f32 %v2428_v43, %v2400_v59 }
 0x307   :  { %v795_v5 = vld [vmem:[#allocation5 + $0x1678] sm:$0xff]  ;;  %2847 = vmatpush.msrb.mxu0 %v659_v28  ;;  %v2457_v28 = vpop.f32.mrf.mxu2 }
 0x308   :  { %v907_v44 = vld [vmem:[#allocation5 + $0x19f8] sm:$0xff]  ;;  %2875 = vmatpush.msrb.mxu1 %v795_v5  ;;  %v2458_v5 = vadd.f32 %v2457_v28, %v2429_v51 }
 0x309   :  { %v1043_v46 = vld [vmem:[#allocation5 + $0x1e38] sm:$0xff]  ;;  %2906 = vmatpush.msrb.mxu2 %v907_v44  ;;  %2749 = vmatmul.f32.gmra.mxu0 %v3877_v19  ;;  %v2486_v44 = vpop.f32.mrf.mxu3 }
 0x30a   :  { %v651_v52 = vld [vmem:[#allocation5 + $0x11f8] sm:$0xff]  ;;  %2934 = vmatpush.msrb.mxu3 %v1043_v46  ;;  %2807 = vmatmul.f32.gmra.mxu2 %v3880_v13  ;;  %v2374_v13 = vadd.f32 %v3977_v35, %v2345_v40 }
 0x30b   :  { %v787_v42 = vld [vmem:[#allocation5 + $0x1638] sm:$0xff]  ;;  %2848 = vmatpush.msrb.mxu0 %v651_v52  ;;  %2778 = vmatmul.f32.gmra.mxu1 %v3884_v20  ;;  %v2402_v52 = vpop.f32.mrf.mxu0 }
 0x30c   :  { %v899_v0 = vld [vmem:[#allocation5 + $0x19b8] sm:$0xff]  ;;  %2876 = vmatpush.msrb.mxu1 %v787_v42  ;;  %2836 = vmatmul.f32.gmra.mxu3 %v3887_v11  ;;  %v2487_v42 = vadd.f32 %v2486_v44, %v2458_v5  ;;  %v2403_v11 = vadd.f32 %v2402_v52, %v2374_v13 }
 0x30d   :  { %v1035_v14 = vld [vmem:[#allocation5 + $0x1df8] sm:$0xff]  ;;  %2907 = vmatpush.msrb.mxu2 %v899_v0  ;;  %v2431_v0 = vpop.f32.mrf.mxu1 }
 0x30e   :  { %v643_v30 = vld [vmem:[#allocation5 + $0x11b8] sm:$0xff]  ;;  %2935 = vmatpush.msrb.mxu3 %v1035_v14  ;;  %2977 = vst [vmem:[#allocation7 + $0xa8] sm:$0xff] %v2487_v42  ;;  %v2432_v14 = vadd.f32 %v2431_v0, %v2403_v11 }
 0x30f   :  { %v779_v53 = vld [vmem:[#allocation5 + $0x15f8] sm:$0xff]  ;;  %2849 = vmatpush.msrb.mxu0 %v643_v30  ;;  %v2460_v37 = vpop.f32.mrf.mxu2 }
 0x310   :  { %v891_v2 = vld [vmem:[#allocation5 + $0x1978] sm:$0xff]  ;;  %2877 = vmatpush.msrb.mxu1 %v779_v53  ;;  %v2461_v30 = vadd.f32 %v2460_v37, %v2432_v14 }
 0x311   :  { %v1027_v16 = vld [vmem:[#allocation5 + $0x1db8] sm:$0xff]  ;;  %2908 = vmatpush.msrb.mxu2 %v891_v2  ;;  %v2489_v53 = vpop.f32.mrf.mxu3 }
 0x312   :  { %v635_v56 = vld [vmem:[#allocation5 + $0x1178] sm:$0xff]  ;;  %2936 = vmatpush.msrb.mxu3 %v1027_v16  ;;  %v2490_v49 = vadd.f32 %v2489_v53, %v2461_v30 }
 0x313   :  { %v771_v23 = vld [vmem:[#allocation5 + $0x15b8] sm:$0xff]  ;;  %2850 = vmatpush.msrb.mxu0 %v635_v56  ;;  %v2509_v2 = vpop.f32.mrf.mxu0 }
 0x314   :  { %v883_v32 = vld [vmem:[#allocation5 + $0x1938] sm:$0xff]  ;;  %2878 = vmatpush.msrb.mxu1 %v771_v23  ;;  %2985 = vst [vmem:[#allocation7 + $0xe8] sm:$0xff] %v2490_v49 }
 0x315   :  { %v1019_v3 = vld [vmem:[#allocation5 + $0x1d78] sm:$0xff]  ;;  %2909 = vmatpush.msrb.mxu2 %v883_v32 }
 0x316   :  { %v627_v39 = vld [vmem:[#allocation5 + $0x1138] sm:$0xff]  ;;  %2937 = vmatpush.msrb.mxu3 %v1019_v3 }
 0x317   :  { %v763_v12 = vld [vmem:[#allocation5 + $0x1578] sm:$0xff]  ;;  %2851 = vmatpush.msrb.mxu0 %v627_v39 }
 0x318   :  { %v875_v41 = vld [vmem:[#allocation5 + $0x18f8] sm:$0xff]  ;;  %2879 = vmatpush.msrb.mxu1 %v763_v12 }
 0x319   :  { %v1011_v7 = vld [vmem:[#allocation5 + $0x1d38] sm:$0xff]  ;;  %2910 = vmatpush.msrb.mxu2 %v875_v41  ;;  %v2596_v16 = vpop.f32.mrf.mxu3 }
 0x31a   :  { %v619_v9 = vld [vmem:[#allocation5 + $0x10f8] sm:$0xff]  ;;  %2938 = vmatpush.msrb.mxu3 %v1011_v7 }
 0x31b   :  { %v755_v38 = vld [vmem:[#allocation5 + $0x1538] sm:$0xff]  ;;  %2852 = vmatpush.msrb.mxu0 %v619_v9  ;;  %v2512_v63 = vpop.f32.mrf.mxu0 }
 0x31c   :  { %v867_v26 = vld [vmem:[#allocation5 + $0x18b8] sm:$0xff]  ;;  %2880 = vmatpush.msrb.mxu1 %v755_v38 }
 0x31d   :  { %v1003_v60 = vld [vmem:[#allocation5 + $0x1cf8] sm:$0xff]  ;;  %2911 = vmatpush.msrb.mxu2 %v867_v26 }
 0x31e   :  { %v611_v21 = vld [vmem:[#allocation5 + $0x10b8] sm:$0xff]  ;;  %2939 = vmatpush.msrb.mxu3 %v1003_v60 }
 0x31f   :  { %v747_v8 = vld [vmem:[#allocation5 + $0x14f8] sm:$0xff]  ;;  %2853 = vmatpush.msrb.mxu0 %v611_v21 }
 0x320   :  { %v859_v19 = vld [vmem:[#allocation5 + $0x1878] sm:$0xff]  ;;  %2881 = vmatpush.msrb.mxu1 %v747_v8 }
 0x321   :  { %v995_v18 = vld [vmem:[#allocation5 + $0x1cb8] sm:$0xff]  ;;  %2912 = vmatpush.msrb.mxu2 %v859_v19 }
 0x322   :  { %v603_v15 = vld [vmem:[#allocation5 + $0x1078] sm:$0xff]  ;;  %2940 = vmatpush.msrb.mxu3 %v995_v18 }
 0x323   :  { %v739_v6 = vld [vmem:[#allocation5 + $0x14b8] sm:$0xff]  ;;  %2854 = vmatpush.msrb.mxu0 %v603_v15 }
 0x324   :  { %v851_v46 = vld [vmem:[#allocation5 + $0x1838] sm:$0xff]  ;;  %2882 = vmatpush.msrb.mxu1 %v739_v6 }
 0x325   :  { %v987_v48 = vld [vmem:[#allocation5 + $0x1c78] sm:$0xff]  ;;  %2913 = vmatpush.msrb.mxu2 %v851_v46 }
 0x326   :  { %v595_v20 = vld [vmem:[#allocation5 + $0x1038] sm:$0xff]  ;;  %2941 = vmatpush.msrb.mxu3 %v987_v48  ;;  %2914 = vmatmul.f32.vlgmr.msrb.gmra.mxu2 %v3894_v58  ;;  %v2567_v58 = vpop.f32.mrf.mxu2 }
 0x327   :  { %v731_v33 = vld [vmem:[#allocation5 + $0x1478] sm:$0xff]  ;;  %2855 = vmatpush.msrb.mxu0 %v595_v20 }
 0x328   :  { %v979_v35 = vld [vmem:[#allocation5 + $0x1c38] sm:$0xff]  ;;  %2883 = vmatpush.msrb.mxu1 %v731_v33  ;;  %2856 = vmatmul.f32.vlgmr.msrb.gmra.mxu0 %v3891_v47  ;;  %v2538_v47 = vpop.f32.mrf.mxu1 }
 0x329   :  { %v723_v27 = vld [vmem:[#allocation5 + $0x1438] sm:$0xff]  ;;  %2942 = vmatpush.msrb.mxu3 %v979_v35  ;;  %v2539_v56 = vadd.f32 %v2538_v47, %v2509_v2 }
 0x32a   :  { %2884 = vmatpush.msrb.mxu1 %v723_v27  ;;  %2943 = vmatmul.f32.vlgmr.msrb.gmra.mxu3 %v3900_v36 }
 0x32b   :  { %2885 = vmatmul.f32.vlgmr.msrb.gmra.mxu1 %v3897_v10  ;;  %v2568_v23 = vadd.f32 %v2567_v58, %v2539_v56 }
 0x32d   :  { %v2597_v55 = vadd.f32 %v2596_v16, %v2568_v23 }
 0x32e   :  { %2917 = vmatmul.f32.gmra.mxu2 %v3910_v4  ;;  %v2570_v36 = vpop.f32.mrf.mxu2  ;;  %v2515_v4 = vpop.f32.mrf.mxu0 }
 0x330   :  { %2859 = vmatmul.f32.gmra.mxu0 %v3907_v50  ;;  %v2541_v10 = vpop.f32.mrf.mxu1  ;;  %v2599_v50 = vpop.f32.mrf.mxu3 }
 0x331   :  { %v2542_v22 = vadd.f32 %v2541_v10, %v2512_v63 }
 0x332   :  { %2946 = vmatmul.f32.gmra.mxu3 %v3918_v62 }
 0x333   :  { %2888 = vmatmul.f32.gmra.mxu1 %v3915_v24  ;;  %v2571_v17 = vadd.f32 %v2570_v36, %v2542_v22 }
 0x335   :  { %v2600_v59 = vadd.f32 %v2599_v50, %v2571_v17 }
 0x336   :  { %2920 = vmatmul.f32.gmra.mxu2 %v3930_v31  ;;  %v2573_v62 = vpop.f32.mrf.mxu2  ;;  %v2518_v31 = vpop.f32.mrf.mxu0 }
 0x338   :  { %2862 = vmatmul.f32.gmra.mxu0 %v3927_v25  ;;  %v2544_v24 = vpop.f32.mrf.mxu1  ;;  %v2602_v25 = vpop.f32.mrf.mxu3 }
 0x339   :  { %v2545_v43 = vadd.f32 %v2544_v24, %v2515_v4 }
 0x33a   :  { %2949 = vmatmul.f32.gmra.mxu3 %v3938_v61 }
 0x33b   :  { %2891 = vmatmul.f32.gmra.mxu1 %v3935_v1  ;;  %v2574_v38 = vadd.f32 %v2573_v62, %v2545_v43 }
 0x33d   :  { %v2603_v60 = vadd.f32 %v2602_v25, %v2574_v38 }
 0x33e   :  { %2923 = vmatmul.f32.gmra.mxu2 %v3950_v57  ;;  %v2576_v61 = vpop.f32.mrf.mxu2 }
 0x340   :  { %2865 = vmatmul.f32.gmra.mxu0 %v3947_v45  ;;  %v2547_v1 = vpop.f32.mrf.mxu1  ;;  %v2605_v32 = vpop.f32.mrf.mxu3 }
 0x341   :  { %v2548_v19 = vadd.f32 %v2547_v1, %v2518_v31 }
 0x342   :  { %2952 = vmatmul.f32.gmra.mxu3 %v3958_v54 }
 0x343   :  { %2894 = vmatmul.f32.gmra.mxu1 %v3955_v34  ;;  %v2577_v13 = vadd.f32 %v2576_v61, %v2548_v19 }
 0x344   :  { %v2625_v3 = vpop.f32.mrf.mxu0 }
 0x345   :  { %v2626_v45 = vadd.f32 %v2625_v3, %v2597_v55  ;;  %v2606_v46 = vadd.f32 %v2605_v32, %v2577_v13 }
 0x348   :  { %v2654_v57 = vpop.f32.mrf.mxu1 }
 0x349   :  { %v2655_v39 = vadd.f32 %v2654_v57, %v2626_v45 }
 0x34c   :  { %v2712_v54 = vpop.f32.mrf.mxu3 }
 0x34d   :  { %v2683_v12 = vpop.f32.mrf.mxu2 }
 0x34e   :  { %v2684_v34 = vadd.f32 %v2683_v12, %v2655_v39  ;;  %v2628_v29 = vpop.f32.mrf.mxu0 }
 0x34f   :  { %v2629_v7 = vadd.f32 %v2628_v29, %v2600_v59 }
 0x350   :  { %v2713_v41 = vadd.f32 %v2712_v54, %v2684_v34 }
 0x351   :  { %v2657_v9 = vpop.f32.mrf.mxu1 }
 0x352   :  { %2962 = vst [vmem:[#allocation7 + $0x30] sm:$0xff] %v2713_v41  ;;  %v2658_v40 = vadd.f32 %v2657_v9, %v2629_v7 }
 0x355   :  { %v2686_v51 = vpop.f32.mrf.mxu2 }
 0x356   :  { %v2687_v26 = vadd.f32 %v2686_v51, %v2658_v40 }
 0x357   :  { %v2715_v28 = vpop.f32.mrf.mxu3 }
 0x358   :  { %v2631_v21 = vpop.f32.mrf.mxu0  ;;  %v2716_v8 = vadd.f32 %v2715_v28, %v2687_v26 }
 0x359   :  { %v2632_v5 = vadd.f32 %v2631_v21, %v2603_v60 }
 0x35a   :  { %2970 = vst [vmem:[#allocation7 + $0x70] sm:$0xff] %v2716_v8 }
 0x35b   :  { %v2660_v18 = vpop.f32.mrf.mxu1 }
 0x35c   :  { %v2661_v15 = vadd.f32 %v2660_v18, %v2632_v5 }
 0x35e   :  { %v2689_v6 = vpop.f32.mrf.mxu2 }
 0x35f   :  { %v2690_v44 = vadd.f32 %v2689_v6, %v2661_v15 }
 0x361   :  { %v2718_v48 = vpop.f32.mrf.mxu3 }
 0x362   :  { %v2634_v52 = vpop.f32.mrf.mxu0  ;;  %v2719_v42 = vadd.f32 %v2718_v48, %v2690_v44 }
 0x363   :  { %v2635_v20 = vadd.f32 %v2634_v52, %v2606_v46 }
 0x364   :  { %2978 = vst [vmem:[#allocation7 + $0xb0] sm:$0xff] %v2719_v42 }
 0x365   :  { %v2663_v33 = vpop.f32.mrf.mxu1 }
 0x366   :  { %v2664_v11 = vadd.f32 %v2663_v33, %v2635_v20 }
 0x368   :  { %v2692_v35 = vpop.f32.mrf.mxu2 }
 0x369   :  { %v2693_v27 = vadd.f32 %v2692_v35, %v2664_v11 }
 0x36b   :  { %v2721_v0 = vpop.f32.mrf.mxu3 }
 0x36c   :  { %v2722_v14 = vadd.f32 %v2721_v0, %v2693_v27  ;;  %v2741_v37 = vpop.f32.mrf.mxu0 }
 0x36e   :  { %2986 = vst [vmem:[#allocation7 + $0xf0] sm:$0xff] %v2722_v14 }
 0x36f   :  { %v2770_v30 = vpop.f32.mrf.mxu1 }
 0x370   :  { %v2771_v24 = vadd.f32 %v2770_v30, %v2741_v37 }
 0x372   :  { %v2799_v53 = vpop.f32.mrf.mxu2 }
 0x373   :  { %v2800_v25 = vadd.f32 %v2799_v53, %v2771_v24 }
 0x375   :  { %v2828_v49 = vpop.f32.mrf.mxu3 }
 0x376   :  { %v2744_v2 = vpop.f32.mrf.mxu0  ;;  %v2829_v56 = vadd.f32 %v2828_v49, %v2800_v25 }
 0x378   :  { %v2773_v47 = vpop.f32.mrf.mxu1 }
 0x379   :  { %v2774_v61 = vadd.f32 %v2773_v47, %v2744_v2 }
 0x37c   :  { %v2802_v58 = vpop.f32.mrf.mxu2 }
 0x37d   :  { %v2803_v3 = vadd.f32 %v2802_v58, %v2774_v61 }
 0x37e   :  { %v2747_v63 = vpop.f32.mrf.mxu0 }
 0x37f   :  { %v2831_v16 = vpop.f32.mrf.mxu3 }
 0x380   :  { %v2776_v10 = vpop.f32.mrf.mxu1  ;;  %v2832_v57 = vadd.f32 %v2831_v16, %v2803_v3 }
 0x381   :  { %v2777_v34 = vadd.f32 %v2776_v10, %v2747_v63 }
 0x385   :  { %v2805_v36 = vpop.f32.mrf.mxu2 }
 0x386   :  { %v2750_v4 = vpop.f32.mrf.mxu0  ;;  %v2806_v41 = vadd.f32 %v2805_v36, %v2777_v34 }
 0x387   :  { %v2834_v50 = vpop.f32.mrf.mxu3 }
 0x388   :  { %v2779_v62 = vpop.f32.mrf.mxu1  ;;  %v2835_v9 = vadd.f32 %v2834_v50, %v2806_v41 }
 0x389   :  { %v2780_v26 = vadd.f32 %v2779_v62, %v2750_v4 }
 0x38d   :  { %v2808_v31 = vpop.f32.mrf.mxu2 }
 0x38e   :  { %v2809_v8 = vadd.f32 %v2808_v31, %v2780_v26 }
 0x38f   :  { %v2837_v1 = vpop.f32.mrf.mxu3 }
 0x390   :  { %v2838_v18 = vadd.f32 %v2837_v1, %v2809_v8 }
 0x3a5   :  { %v2857_v23 = vpop.f32.mrf.mxu0 }
 0x3a6   :  { %v2858_v55 = vadd.f32 %v2857_v23, %v2829_v56 }
 0x3a8   :  { %v2886_v32 = vpop.f32.mrf.mxu1 }
 0x3a9   :  { %v2887_v45 = vadd.f32 %v2886_v32, %v2858_v55  ;;  %v2915_v22 = vpop.f32.mrf.mxu2 }
 0x3ab   :  { %v2916_v17 = vadd.f32 %v2915_v22, %v2887_v45 }
 0x3ad   :  { %v2860_v39 = vpop.f32.mrf.mxu0  ;;  %v2944_v12 = vpop.f32.mrf.mxu3 }
 0x3ae   :  { %v2861_v59 = vadd.f32 %v2860_v39, %v2832_v57  ;;  %v2945_v54 = vadd.f32 %v2944_v12, %v2916_v17 }
 0x3b0   :  { %v2889_v29 = vpop.f32.mrf.mxu1  ;;  %2963 = vst [vmem:[#allocation7 + $0x38] sm:$0xff] %v2945_v54 }
 0x3b1   :  { %v2890_v7 = vadd.f32 %v2889_v29, %v2861_v59  ;;  %v2918_v43 = vpop.f32.mrf.mxu2 }
 0x3b3   :  { %v2919_v38 = vadd.f32 %v2918_v43, %v2890_v7 }
 0x3b5   :  { %v2863_v40 = vpop.f32.mrf.mxu0  ;;  %v2947_v51 = vpop.f32.mrf.mxu3 }
 0x3b6   :  { %v2864_v60 = vadd.f32 %v2863_v40, %v2835_v9  ;;  %v2948_v28 = vadd.f32 %v2947_v51, %v2919_v38 }
 0x3b8   :  { %v2892_v21 = vpop.f32.mrf.mxu1  ;;  %2971 = vst [vmem:[#allocation7 + $0x78] sm:$0xff] %v2948_v28 }
 0x3b9   :  { %v2893_v5 = vadd.f32 %v2892_v21, %v2864_v60  ;;  %v2921_v19 = vpop.f32.mrf.mxu2 }
 0x3bb   :  { %v2922_v13 = vadd.f32 %v2921_v19, %v2893_v5 }
 0x3bd   :  { %v2866_v15 = vpop.f32.mrf.mxu0  ;;  %v2950_v6 = vpop.f32.mrf.mxu3 }
 0x3be   :  { %v2867_v44 = vadd.f32 %v2866_v15, %v2838_v18  ;;  %v2951_v46 = vadd.f32 %v2950_v6, %v2922_v13 }
 0x3c0   :  { %v2895_v48 = vpop.f32.mrf.mxu1  ;;  %2979 = vst [vmem:[#allocation7 + $0xb8] sm:$0xff] %v2951_v46 }
 0x3c1   :  { %v2896_v52 = vadd.f32 %v2895_v48, %v2867_v44  ;;  %v2924_v42 = vpop.f32.mrf.mxu2 }
 0x3c3   :  { %v2925_v20 = vadd.f32 %v2924_v42, %v2896_v52 }
 0x3c5   :  { %v2953_v33 = vpop.f32.mrf.mxu3 }
 0x3c6   :  { %v2954_v11 = vadd.f32 %v2953_v33, %v2925_v20 }
 0x3c8   :  { %2987 = vst [vmem:[#allocation7 + $0xf8] sm:$0xff] %v2954_v11 }
 0x3c9   :  { %3000 = dma.vmem_to_hbm [thread:$0]  %s2993_s1, 4096, %s2995_s23, [#allocation4], %s3188_s17, %s3188_s17, %s3189_s18  }
 0x3ca   :  { %3185 = dma.done.wait [#allocation4], 4096  }
 0x3cb   :  { %3186 = vsyncadd [#allocation4], 4294963200 }
 0x3cc   :  { %3005 = vsyncpa [#allocation3], 1 }
 0x3cd   :  { %3006 = vsyncpa [#allocation6], 1 }
 0x3ce   :  { %3007 = vsyncpa [#allocation4], 1 }

</bundles_post_ra>
